<compile_context>
chip_gen: v7x
topology: tpu7x:2x2x1
jax: 0.10.0
libtpu: 0.0.40
codegen_flags: <defaults>
</compile_context>

<pallas_src>
import functools
import math

import jax
import jax.numpy as jnp
from jax.experimental import pallas as pl
from jax.experimental.pallas import tpu as pltpu


# -----------------------------------------------------------------------------
# Helpers
# -----------------------------------------------------------------------------
def _round_up(x, m):
    return ((x + m - 1) // m) * m


# Leave headroom under v7x's 64 MiB physical VMEM (128 MiB on v5e/v6e).
_VMEM_LIMIT_BYTES = 48 * 1024 * 1024

_BBOX_XFORM_CLIP = math.log(1000.0 / 16.0)   # torchvision's dw/dh clamp


# -----------------------------------------------------------------------------
# Pallas kernels
# -----------------------------------------------------------------------------
def _linear_kernel(x_ref, w_ref, b_ref, o_ref, *, activation):
    # bf16 operands -> MXU, f32 accumulation; activation on the f32 VPU path.
    acc = jnp.dot(x_ref[...], w_ref[...], preferred_element_type=jnp.float32)
    acc = acc + b_ref[...]
    if activation == "relu":
        acc = jnp.maximum(acc, 0.0)
    elif activation == "sigmoid":
        acc = jax.nn.sigmoid(acc)
    o_ref[...] = acc


def pallas_linear(x, w, b, activation="none", block_m=512):
    """y = act(x @ w + b); x:[M,K], w:[K,N], b:[N] -> [M,N] f32.

    bf16 MXU operands, f32 accumulate.  N is padded to a multiple of 128 so
    output stores are lane-dense (no masked vst); M is padded to a multiple of
    the row tile and the grid always has >=2 parallel steps when possible
    (v7x megacore).
    """
    M, K = x.shape
    Kw, N = w.shape
    assert K == Kw

    # Lane-dense output: pad N to a multiple of 128.
    Np = _round_up(N, 128)
    if Np != N:
        w = jnp.pad(w, ((0, 0), (0, Np - N)))
        b = jnp.pad(b, ((0, Np - N),))

    # Row tile: as big as requested, but keep >=2 grid steps when M allows.
    bm = min(block_m, _round_up(M, 8))
    if M >= 16:
        bm = min(bm, _round_up(M // 2, 8))
    bm = max(8, bm)
    Mp = _round_up(M, bm)
    if Mp != M:
        x = jnp.pad(x, ((0, Mp - M), (0, 0)))

    grid = (Mp // bm,)
    out = pl.pallas_call(
        functools.partial(_linear_kernel, activation=activation),
        out_shape=jax.ShapeDtypeStruct((Mp, Np), jnp.float32),
        grid=grid,
        in_specs=[
            pl.BlockSpec((bm, K), lambda i: (i, 0)),
            pl.BlockSpec((K, Np), lambda i: (0, 0)),
            pl.BlockSpec((1, Np), lambda i: (0, 0)),
        ],
        out_specs=pl.BlockSpec((bm, Np), lambda i: (i, 0)),
        compiler_params=pltpu.CompilerParams(
            dimension_semantics=("parallel",),
            vmem_limit_bytes=_VMEM_LIMIT_BYTES),
    )(x.astype(jnp.bfloat16), w.astype(jnp.bfloat16),
      b.reshape(1, Np).astype(jnp.float32))
    return out[:M, :N]


def _roi_heads_kernel(roiw_ref, feat_ref, w6_ref, b6_ref, w7_ref, b7_ref,
                      whead_ref, bhead_ref, wmask_ref, bmask_ref,
                      head_ref, mask_ref):
    """Fused: ROI pool (matmul) + TwoMLPHead + FastRCNNPredictor + mask head."""
    # ROI pooling as a matmul: [br, Hf*Wf] @ [Hf*Wf, C]  (f32 accumulate).
    pooled = jnp.dot(roiw_ref[...], feat_ref[...],
                     preferred_element_type=jnp.float32)
    pooled_bf = pooled.astype(jnp.bfloat16)

    # TwoMLPHead: fc6 -> relu -> fc7 -> relu (relu in f32, matmul in bf16).
    h = jnp.dot(pooled_bf, w6_ref[...], preferred_element_type=jnp.float32)
    h = jnp.maximum(h + b6_ref[...], 0.0).astype(jnp.bfloat16)
    h = jnp.dot(h, w7_ref[...], preferred_element_type=jnp.float32)
    h = jnp.maximum(h + b7_ref[...], 0.0).astype(jnp.bfloat16)

    # FastRCNNPredictor: cls_score | bbox_pred concatenated, lane-dense output.
    head_ref[...] = (jnp.dot(h, whead_ref[...],
                             preferred_element_type=jnp.float32)
                     + bhead_ref[...])

    # Mask predictor from pooled features; sigmoid on the f32 path.
    m = (jnp.dot(pooled_bf, wmask_ref[...],
                 preferred_element_type=jnp.float32) + bmask_ref[...])
    mask_ref[...] = jax.nn.sigmoid(m)


def roi_heads_forward(roi_weights, feat0, p, num_classes, block_r=8):
    """roi_weights:[R,Hf*Wf], feat0:[Hf*Wf,C] -> (logits, box_deltas, mask_flat)."""
    R, HW = roi_weights.shape
    HW2, C = feat0.shape
    assert HW == HW2
    H1 = p["w6"].shape[1]
    H2 = p["w7"].shape[1]

    # Concatenate cls/box weights into one lane-dense (128-padded) output slab.
    Nh = num_classes + 4 * num_classes
    Nhp = _round_up(Nh, 128)
    w_head = jnp.pad(jnp.concatenate([p["wc"], p["wb"]], axis=1),
                     ((0, 0), (0, Nhp - Nh)))
    b_head = jnp.pad(jnp.concatenate([p["bc"], p["bb"]], axis=0),
                     ((0, Nhp - Nh),))

    Nm = p["mask_w"].shape[1]
    Nmp = _round_up(Nm, 128)
    w_mask = jnp.pad(p["mask_w"], ((0, 0), (0, Nmp - Nm)))
    b_mask = jnp.pad(p["mask_b"], ((0, Nmp - Nm),))

    # Tile the ROI axis so the grid has >=2 parallel steps (v7x megacore).
    Rp = _round_up(R, block_r)
    roi_w = roi_weights
    if Rp != R:
        roi_w = jnp.pad(roi_w, ((0, Rp - R), (0, 0)))
    grid = (Rp // block_r,)

    def rep(shape):
        return pl.BlockSpec(shape, lambda i: (0,) * len(shape))

    head_out, mask_out = pl.pallas_call(
        _roi_heads_kernel,
        out_shape=(jax.ShapeDtypeStruct((Rp, Nhp), jnp.float32),
                   jax.ShapeDtypeStruct((Rp, Nmp), jnp.float32)),
        grid=grid,
        in_specs=[pl.BlockSpec((block_r, HW), lambda i: (i, 0)),
                  rep((HW, C)),
                  rep((C, H1)), rep((1, H1)),
                  rep((H1, H2)), rep((1, H2)),
                  rep((H2, Nhp)), rep((1, Nhp)),
                  rep((C, Nmp)), rep((1, Nmp))],
        out_specs=(pl.BlockSpec((block_r, Nhp), lambda i: (i, 0)),
                   pl.BlockSpec((block_r, Nmp), lambda i: (i, 0))),
        compiler_params=pltpu.CompilerParams(
            dimension_semantics=("parallel",),
            vmem_limit_bytes=_VMEM_LIMIT_BYTES),
    )(roi_w.astype(jnp.bfloat16), feat0.astype(jnp.bfloat16),
      p["w6"].astype(jnp.bfloat16), p["b6"].reshape(1, -1).astype(jnp.float32),
      p["w7"].astype(jnp.bfloat16), p["b7"].reshape(1, -1).astype(jnp.float32),
      w_head.astype(jnp.bfloat16), b_head.reshape(1, -1).astype(jnp.float32),
      w_mask.astype(jnp.bfloat16), b_mask.reshape(1, -1).astype(jnp.float32))

    logits = head_out[:R, :num_classes]
    box_deltas = head_out[:R, num_classes:Nh]
    mask_flat = mask_out[:R, :Nm]
    return logits, box_deltas, mask_flat


# -----------------------------------------------------------------------------
# Glue: im2col conv, anchors, box decoding, ROI pooling weights
# -----------------------------------------------------------------------------
def im2col(x, kh, kw, stride, pad):
    B, H, W, C = x.shape
    xp = jnp.pad(x, ((0, 0), (pad, pad), (pad, pad), (0, 0)))
    Ho = (H + 2 * pad - kh) // stride + 1
    Wo = (W + 2 * pad - kw) // stride + 1
    cols = []
    for di in range(kh):
        for dj in range(kw):
            cols.append(xp[:, di:di + stride * Ho:stride,
                           dj:dj + stride * Wo:stride, :])
    return jnp.concatenate(cols, axis=-1), Ho, Wo  # [B,Ho,Wo,kh*kw*C]


def conv2d(x, w, b, stride=1, pad=0, activation="none", block_m=512):
    """x:[B,H,W,Cin] NHWC; w:[kh,kw,Cin,Cout] -> [B,Ho,Wo,Cout]. GEMM in Pallas."""
    # TODO(synk): fold im2col into the conv kernel (halo'd/element-indexed
    # BlockSpec accumulating kh*kw taps) to remove the kh*kw HBM blow-up; here
    # the patches tensor is materialized in bf16 to halve its HBM traffic.
    kh, kw, Cin, Cout = w.shape
    patches, Ho, Wo = im2col(x.astype(jnp.bfloat16), kh, kw, stride, pad)
    B = x.shape[0]
    y = pallas_linear(patches.reshape(B * Ho * Wo, kh * kw * Cin),
                      w.reshape(kh * kw * Cin, Cout), b,
                      activation=activation, block_m=block_m)
    return y.reshape(B, Ho, Wo, Cout)


def make_anchors(Hf, Wf, stride, scales):
    ys = (jnp.arange(Hf, dtype=jnp.float32) + 0.5) * stride
    xs = (jnp.arange(Wf, dtype=jnp.float32) + 0.5) * stride
    cy, cx = jnp.meshgrid(ys, xs, indexing="ij")
    per_scale = []
    for s in scales:
        half = s / 2.0
        per_scale.append(jnp.stack([cx - half, cy - half, cx + half, cy + half],
                                   axis=-1))
    anchors = jnp.stack(per_scale, axis=2)  # [Hf,Wf,A,4]
    return anchors.reshape(Hf * Wf * len(scales), 4)


def decode_boxes(ref_boxes, deltas, img_w, img_h):
    wa = ref_boxes[:, 2] - ref_boxes[:, 0]
    ha = ref_boxes[:, 3] - ref_boxes[:, 1]
    cxa = ref_boxes[:, 0] + 0.5 * wa
    cya = ref_boxes[:, 1] + 0.5 * ha
    cx = cxa + deltas[:, 0] * wa
    cy = cya + deltas[:, 1] * ha
    w = wa * jnp.exp(jnp.clip(deltas[:, 2], -_BBOX_XFORM_CLIP, _BBOX_XFORM_CLIP))
    h = ha * jnp.exp(jnp.clip(deltas[:, 3], -_BBOX_XFORM_CLIP, _BBOX_XFORM_CLIP))
    x1 = jnp.clip(cx - 0.5 * w, 0.0, img_w)
    y1 = jnp.clip(cy - 0.5 * h, 0.0, img_h)
    x2 = jnp.clip(cx + 0.5 * w, 0.0, img_w)
    y2 = jnp.clip(cy + 0.5 * h, 0.0, img_h)
    return jnp.stack([x1, y1, x2, y2], axis=-1)


def roi_pool_weights(boxes, Hf, Wf, stride):
    """Per-ROI normalized inside-box indicator over feature cells: [R, Hf*Wf].

    ROI pooling then becomes a single (weights @ features) matmul inside the
    fused ROI-heads Pallas kernel.
    """
    ys = (jnp.arange(Hf, dtype=jnp.float32) + 0.5) * stride
    xs = (jnp.arange(Wf, dtype=jnp.float32) + 0.5) * stride
    cy, cx = jnp.meshgrid(ys, xs, indexing="ij")
    cx = cx.reshape(1, -1)
    cy = cy.reshape(1, -1)
    x1, y1, x2, y2 = boxes[:, 0:1], boxes[:, 1:2], boxes[:, 2:3], boxes[:, 3:4]
    inside = ((cx >= x1) & (cx <= x2) & (cy >= y1) & (cy <= y2)).astype(jnp.float32)
    denom = jnp.maximum(inside.sum(axis=1, keepdims=True), 1.0)
    return inside / denom


# -----------------------------------------------------------------------------
# Parameters (deterministic synthetic init; no checkpoint loading)
# -----------------------------------------------------------------------------
def init_params(key, num_classes=5, feat_ch=64, hidden=128, anchors_per_loc=3,
                mask_res=14):
    ks = jax.random.split(key, 16)

    def w(k, shape, scale=0.05):
        return scale * jax.random.normal(k, shape, dtype=jnp.float32)

    return {
        # backbone stem (stand-in for ResNet-50 FPN)
        "conv1_w": w(ks[0], (3, 3, 3, 16)), "conv1_b": jnp.zeros((16,), jnp.float32),
        "conv2_w": w(ks[1], (3, 3, 16, feat_ch)),
        "conv2_b": jnp.zeros((feat_ch,), jnp.float32),
        # RPN head
        "rpn_conv_w": w(ks[2], (3, 3, feat_ch, feat_ch)),
        "rpn_conv_b": jnp.zeros((feat_ch,), jnp.float32),
        "rpn_cls_w": w(ks[3], (feat_ch, anchors_per_loc)),
        "rpn_cls_b": jnp.zeros((anchors_per_loc,), jnp.float32),
        "rpn_box_w": w(ks[4], (feat_ch, 4 * anchors_per_loc)),
        "rpn_box_b": jnp.zeros((4 * anchors_per_loc,), jnp.float32),
        # TwoMLPHead + FastRCNNPredictor (the replaced box_predictor)
        "w6": w(ks[5], (feat_ch, hidden)), "b6": jnp.zeros((hidden,), jnp.float32),
        "w7": w(ks[6], (hidden, hidden)), "b7": jnp.zeros((hidden,), jnp.float32),
        "wc": w(ks[7], (hidden, num_classes)),
        "bc": jnp.zeros((num_classes,), jnp.float32),
        "wb": w(ks[8], (hidden, 4 * num_classes)),
        "bb": jnp.zeros((4 * num_classes,), jnp.float32),
        # mask predictor (simplified mask head)
        "mask_w": w(ks[9], (feat_ch, num_classes * mask_res * mask_res)),
        "mask_b": jnp.zeros((num_classes * mask_res * mask_res,), jnp.float32),
    }


# -----------------------------------------------------------------------------
# Forward pass (eval / no-grad semantics: pure function, returns preds[0] dict)
# -----------------------------------------------------------------------------
NUM_PROPOSALS = 16
MASK_RES = 14
ANCHOR_SCALES = (8.0, 16.0, 32.0)


def maskrcnn_forward(image_nchw, params):
    num_classes = params["wc"].shape[1]
    B, _, H, W = image_nchw.shape
    img_w, img_h = float(W), float(H)
    x = jnp.transpose(image_nchw, (0, 2, 3, 1)).astype(jnp.float32)  # NCHW->NHWC

    # ---- backbone (synthetic stem; TODO(synk): full ResNet-50 FPN backbone) ----
    x = conv2d(x, params["conv1_w"], params["conv1_b"], stride=2, pad=1,
               activation="relu", block_m=512)
    feat = conv2d(x, params["conv2_w"], params["conv2_b"], stride=2, pad=1,
                  activation="relu", block_m=512)                    # [B,Hf,Wf,C]
    _, Hf, Wf, C = feat.shape
    stride = H // Hf

    # forward only returns preds[0] -> restrict RPN / ROI work to image 0.
    feat0_map = feat[0:1]

    # ---- RPN head: shared 3x3 conv, then fused cls+box GEMM (lane-dense) ----
    rpn_feat = conv2d(feat0_map, params["rpn_conv_w"], params["rpn_conv_b"],
                      stride=1, pad=1, activation="relu", block_m=256)
    rpn_rows = rpn_feat.reshape(Hf * Wf, C)
    A = params["rpn_cls_w"].shape[1]
    rpn_w = jnp.concatenate([params["rpn_cls_w"], params["rpn_box_w"]], axis=1)
    rpn_b = jnp.concatenate([params["rpn_cls_b"], params["rpn_box_b"]], axis=0)
    rpn_out = pallas_linear(rpn_rows, rpn_w, rpn_b, block_m=128)     # [Hf*Wf, 5A]
    obj0 = rpn_out[:, :A].reshape(Hf * Wf * A)
    d0 = rpn_out[:, A:A + 4 * A].reshape(Hf * Wf * A, 4)

    # ---- proposals for image 0 ----
    # TODO(synk): NMS / min-size filtering of proposals has no clean Pallas equivalent.
    anchors = make_anchors(Hf, Wf, stride, ANCHOR_SCALES)
    _, top_idx = jax.lax.top_k(obj0, NUM_PROPOSALS)
    proposals = decode_boxes(anchors[top_idx], d0[top_idx], img_w, img_h)  # [R,4]

    # ---- ROI pool + TwoMLPHead + FastRCNNPredictor + mask head (one kernel) ----
    # TODO(synk): exact 7x7 bilinear ROIAlign replaced by masked average pooling.
    roi_w = roi_pool_weights(proposals, Hf, Wf, stride)              # [R, Hf*Wf]
    feat0 = feat0_map[0].reshape(Hf * Wf, C)                         # [Hf*Wf, C]
    logits, box_deltas, mask_flat = roi_heads_forward(
        roi_w, feat0, params, num_classes)

    # ---- post-processing (softmax / per-class box decode; no NMS) ----
    probs = jax.nn.softmax(logits, axis=-1)
    fg = probs[:, 1:]
    labels = jnp.argmax(fg, axis=-1).astype(jnp.int32) + 1           # background = class 0
    scores = jnp.max(fg, axis=-1)
    onehot = jax.nn.one_hot(labels, num_classes, dtype=jnp.float32)  # [R,num_classes]
    sel_deltas = jnp.einsum("rc,rcf->rf", onehot,
                            box_deltas.reshape(-1, num_classes, 4))
    boxes = decode_boxes(proposals, sel_deltas, img_w, img_h)        # [R,4]

    # ---- mask head (simplified predictor; sigmoid already applied in kernel) ----
    # TODO(synk): full 4-conv + deconv mask head and paste_masks_in_image omitted.
    mask_all = mask_flat.reshape(-1, num_classes, MASK_RES, MASK_RES)
    masks = jnp.einsum("rc,rchw->rhw", onehot, mask_all)[:, None, :, :]  # [R,1,14,14]

    # torchvision returns int64 labels; int32 used here (JAX default on TPU).
    return {
        "boxes": boxes.astype(jnp.float32),
        "labels": labels,
        "scores": scores.astype(jnp.float32),
        "masks": masks.astype(jnp.float32),
    }


# -----------------------------------------------------------------------------
if __name__ == "__main__":
    key = jax.random.PRNGKey(0)
    pkey, ikey = jax.random.split(key)
    params = init_params(pkey, num_classes=5)
    # image: batch=2, 3 channels, 64x64, NCHW (matches PyTorch conv convention)
    image = jax.random.uniform(ikey, (2, 3, 64, 64), dtype=jnp.float32)

    preds = jax.jit(maskrcnn_forward)(image, params)
    jax.block_until_ready(preds)

    assert preds["boxes"].shape == (NUM_PROPOSALS, 4)
    assert preds["labels"].shape == (NUM_PROPOSALS,)
    assert preds["scores"].shape == (NUM_PROPOSALS,)
    assert preds["masks"].shape == (NUM_PROPOSALS, 1, MASK_RES, MASK_RES)
    print("KERNEL_OK")
</pallas_src>

<mosaic_0001>
module attributes {stable_mosaic.version = 11 : i64} {
  func.func @_linear_kernel(%arg0: i32, %arg1: memref<512x27xbf16, #tpu.memory_space<vmem>>, %arg2: memref<27x128xbf16, #tpu.memory_space<vmem>>, %arg3: memref<1x128xf32, #tpu.memory_space<vmem>>, %arg4: memref<512x128xf32, #tpu.memory_space<vmem>>) attributes {dimension_semantics = [#tpu.dimension_semantics<parallel>], iteration_bounds = array<i64: 4>, scalar_prefetch = 0 : i64, scratch_operands = 0 : i64, tpu.core_type = #tpu.core_type<tc>, window_params = [{transform_indices = @transform_0, window_bounds = array<i64: 512, 27>}, {pipeline_mode = #tpu.pipeline_mode<synchronous>, transform_indices = @transform_1, window_bounds = array<i64: 27, 128>}, {pipeline_mode = #tpu.pipeline_mode<synchronous>, transform_indices = @transform_2, window_bounds = array<i64: 1, 128>}, {transform_indices = @transform_3, window_bounds = array<i64: 512, 128>}]} {
    %c0 = arith.constant 0 : index
    %c0_0 = arith.constant 0 : index
    %0 = vector.load %arg1[%c0, %c0_0] : memref<512x27xbf16, #tpu.memory_space<vmem>>, vector<512x27xbf16>
    %c0_1 = arith.constant 0 : index
    %c0_2 = arith.constant 0 : index
    %1 = vector.load %arg2[%c0_1, %c0_2] : memref<27x128xbf16, #tpu.memory_space<vmem>>, vector<27x128xbf16>
    %cst = arith.constant dense<0.000000e+00> : vector<512x128xf32>
    %2 = tpu.matmul %0, %1, %cst {dimension_numbers = #tpu.dot_dimension_numbers<[1], [0], [0], [1], [0, 0, 1, 1], [], []>} : vector<512x27xbf16>, vector<27x128xbf16>, vector<512x128xf32> -> vector<512x128xf32>
    %c0_3 = arith.constant 0 : index
    %c0_4 = arith.constant 0 : index
    %3 = vector.load %arg3[%c0_3, %c0_4] : memref<1x128xf32, #tpu.memory_space<vmem>>, vector<1x128xf32>
    %4 = vector.broadcast %3 : vector<1x128xf32> to vector<512x128xf32>
    %5 = arith.addf %2, %4 : vector<512x128xf32>
    %cst_5 = arith.constant 0.000000e+00 : f32
    %6 = vector.broadcast %cst_5 : f32 to vector<512x128xf32>
    %7 = arith.maximumf %5, %6 : vector<512x128xf32>
    %c0_6 = arith.constant 0 : index
    %c0_7 = arith.constant 0 : index
    %8 = vector.load %arg4[%c0_6, %c0_7] : memref<512x128xf32, #tpu.memory_space<vmem>>, vector<512x128xf32>
    tpu.vector_store %arg4[%c0_6, %c0_7], %7 {strides = array<i32>} : memref<512x128xf32, #tpu.memory_space<vmem>>, vector<512x128xf32>,
    return
  }
  func.func @transform_0(%arg0: i32) -> (i32, i32) {
    %c0_i32 = arith.constant 0 : i32
    %c0_i32_0 = arith.constant 0 : i32
    return %arg0, %c0_i32 : i32, i32
  }
  func.func @transform_1(%arg0: i32) -> (i32, i32) {
    %c0_i32 = arith.constant 0 : i32
    %c0_i32_0 = arith.constant 0 : i32
    %c0_i32_1 = arith.constant 0 : i32
    return %c0_i32, %c0_i32_0 : i32, i32
  }
  func.func @transform_2(%arg0: i32) -> (i32, i32) {
    %c0_i32 = arith.constant 0 : i32
    %c0_i32_0 = arith.constant 0 : i32
    %c0_i32_1 = arith.constant 0 : i32
    return %c0_i32, %c0_i32_0 : i32, i32
  }
  func.func @transform_3(%arg0: i32) -> (i32, i32) {
    %c0_i32 = arith.constant 0 : i32
    %c0_i32_0 = arith.constant 0 : i32
    return %arg0, %c0_i32 : i32, i32
  }
}

module attributes {stable_mosaic.version = 11 : i64} {
  func.func @_linear_kernel(%arg0: i32, %arg1: memref<256x144xbf16, #tpu.memory_space<vmem>>, %arg2: memref<144x128xbf16, #tpu.memory_space<vmem>>, %arg3: memref<1x128xf32, #tpu.memory_space<vmem>>, %arg4: memref<256x128xf32, #tpu.memory_space<vmem>>) attributes {dimension_semantics = [#tpu.dimension_semantics<parallel>], iteration_bounds = array<i64: 2>, scalar_prefetch = 0 : i64, scratch_operands = 0 : i64, tpu.core_type = #tpu.core_type<tc>, window_params = [{transform_indices = @transform_0, window_bounds = array<i64: 256, 144>}, {pipeline_mode = #tpu.pipeline_mode<synchronous>, transform_indices = @transform_1, window_bounds = array<i64: 144, 128>}, {pipeline_mode = #tpu.pipeline_mode<synchronous>, transform_indices = @transform_2, window_bounds = array<i64: 1, 128>}, {transform_indices = @transform_3, window_bounds = array<i64: 256, 128>}]} {
    %c0 = arith.constant 0 : index
    %c0_0 = arith.constant 0 : index
    %0 = vector.load %arg1[%c0, %c0_0] : memref<256x144xbf16, #tpu.memory_space<vmem>>, vector<256x144xbf16>
    %c0_1 = arith.constant 0 : index
    %c0_2 = arith.constant 0 : index
    %1 = vector.load %arg2[%c0_1, %c0_2] : memref<144x128xbf16, #tpu.memory_space<vmem>>, vector<144x128xbf16>
    %cst = arith.constant dense<0.000000e+00> : vector<256x128xf32>
    %2 = tpu.matmul %0, %1, %cst {dimension_numbers = #tpu.dot_dimension_numbers<[1], [0], [0], [1], [0, 0, 1, 1], [], []>} : vector<256x144xbf16>, vector<144x128xbf16>, vector<256x128xf32> -> vector<256x128xf32>
    %c0_3 = arith.constant 0 : index
    %c0_4 = arith.constant 0 : index
    %3 = vector.load %arg3[%c0_3, %c0_4] : memref<1x128xf32, #tpu.memory_space<vmem>>, vector<1x128xf32>
    %4 = vector.broadcast %3 : vector<1x128xf32> to vector<256x128xf32>
    %5 = arith.addf %2, %4 : vector<256x128xf32>
    %cst_5 = arith.constant 0.000000e+00 : f32
    %6 = vector.broadcast %cst_5 : f32 to vector<256x128xf32>
    %7 = arith.maximumf %5, %6 : vector<256x128xf32>
    %c0_6 = arith.constant 0 : index
    %c0_7 = arith.constant 0 : index
    %8 = vector.load %arg4[%c0_6, %c0_7] : memref<256x128xf32, #tpu.memory_space<vmem>>, vector<256x128xf32>
    tpu.vector_store %arg4[%c0_6, %c0_7], %7 {strides = array<i32>} : memref<256x128xf32, #tpu.memory_space<vmem>>, vector<256x128xf32>,
    return
  }
  func.func @transform_0(%arg0: i32) -> (i32, i32) {
    %c0_i32 = arith.constant 0 : i32
    %c0_i32_0 = arith.constant 0 : i32
    return %arg0, %c0_i32 : i32, i32
  }
  func.func @transform_1(%arg0: i32) -> (i32, i32) {
    %c0_i32 = arith.constant 0 : i32
    %c0_i32_0 = arith.constant 0 : i32
    %c0_i32_1 = arith.constant 0 : i32
    return %c0_i32, %c0_i32_0 : i32, i32
  }
  func.func @transform_2(%arg0: i32) -> (i32, i32) {
    %c0_i32 = arith.constant 0 : i32
    %c0_i32_0 = arith.constant 0 : i32
    %c0_i32_1 = arith.constant 0 : i32
    return %c0_i32, %c0_i32_0 : i32, i32
  }
  func.func @transform_3(%arg0: i32) -> (i32, i32) {
    %c0_i32 = arith.constant 0 : i32
    %c0_i32_0 = arith.constant 0 : i32
    return %arg0, %c0_i32 : i32, i32
  }
}

module attributes {stable_mosaic.version = 11 : i64} {
  func.func @_linear_kernel(%arg0: i32, %arg1: memref<128x576xbf16, #tpu.memory_space<vmem>>, %arg2: memref<576x128xbf16, #tpu.memory_space<vmem>>, %arg3: memref<1x128xf32, #tpu.memory_space<vmem>>, %arg4: memref<128x128xf32, #tpu.memory_space<vmem>>) attributes {dimension_semantics = [#tpu.dimension_semantics<parallel>], iteration_bounds = array<i64: 2>, scalar_prefetch = 0 : i64, scratch_operands = 0 : i64, tpu.core_type = #tpu.core_type<tc>, window_params = [{transform_indices = @transform_0, window_bounds = array<i64: 128, 576>}, {pipeline_mode = #tpu.pipeline_mode<synchronous>, transform_indices = @transform_1, window_bounds = array<i64: 576, 128>}, {pipeline_mode = #tpu.pipeline_mode<synchronous>, transform_indices = @transform_2, window_bounds = array<i64: 1, 128>}, {transform_indices = @transform_3, window_bounds = array<i64: 128, 128>}]} {
    %c0 = arith.constant 0 : index
    %c0_0 = arith.constant 0 : index
    %0 = vector.load %arg1[%c0, %c0_0] : memref<128x576xbf16, #tpu.memory_space<vmem>>, vector<128x576xbf16>
    %c0_1 = arith.constant 0 : index
    %c0_2 = arith.constant 0 : index
    %1 = vector.load %arg2[%c0_1, %c0_2] : memref<576x128xbf16, #tpu.memory_space<vmem>>, vector<576x128xbf16>
    %cst = arith.constant dense<0.000000e+00> : vector<128x128xf32>
    %2 = tpu.matmul %0, %1, %cst {dimension_numbers = #tpu.dot_dimension_numbers<[1], [0], [0], [1], [0, 0, 1, 1], [], []>} : vector<128x576xbf16>, vector<576x128xbf16>, vector<128x128xf32> -> vector<128x128xf32>
    %c0_3 = arith.constant 0 : index
    %c0_4 = arith.constant 0 : index
    %3 = vector.load %arg3[%c0_3, %c0_4] : memref<1x128xf32, #tpu.memory_space<vmem>>, vector<1x128xf32>
    %4 = vector.broadcast %3 : vector<1x128xf32> to vector<128x128xf32>
    %5 = arith.addf %2, %4 : vector<128x128xf32>
    %cst_5 = arith.constant 0.000000e+00 : f32
    %6 = vector.broadcast %cst_5 : f32 to vector<128x128xf32>
    %7 = arith.maximumf %5, %6 : vector<128x128xf32>
    %c0_6 = arith.constant 0 : index
    %c0_7 = arith.constant 0 : index
    %8 = vector.load %arg4[%c0_6, %c0_7] : memref<128x128xf32, #tpu.memory_space<vmem>>, vector<128x128xf32>
    tpu.vector_store %arg4[%c0_6, %c0_7], %7 {strides = array<i32>} : memref<128x128xf32, #tpu.memory_space<vmem>>, vector<128x128xf32>,
    return
  }
  func.func @transform_0(%arg0: i32) -> (i32, i32) {
    %c0_i32 = arith.constant 0 : i32
    %c0_i32_0 = arith.constant 0 : i32
    return %arg0, %c0_i32 : i32, i32
  }
  func.func @transform_1(%arg0: i32) -> (i32, i32) {
    %c0_i32 = arith.constant 0 : i32
    %c0_i32_0 = arith.constant 0 : i32
    %c0_i32_1 = arith.constant 0 : i32
    return %c0_i32, %c0_i32_0 : i32, i32
  }
  func.func @transform_2(%arg0: i32) -> (i32, i32) {
    %c0_i32 = arith.constant 0 : i32
    %c0_i32_0 = arith.constant 0 : i32
    %c0_i32_1 = arith.constant 0 : i32
    return %c0_i32, %c0_i32_0 : i32, i32
  }
  func.func @transform_3(%arg0: i32) -> (i32, i32) {
    %c0_i32 = arith.constant 0 : i32
    %c0_i32_0 = arith.constant 0 : i32
    return %arg0, %c0_i32 : i32, i32
  }
}

module attributes {stable_mosaic.version = 11 : i64} {
  func.func @_linear_kernel(%arg0: i32, %arg1: memref<128x64xbf16, #tpu.memory_space<vmem>>, %arg2: memref<64x128xbf16, #tpu.memory_space<vmem>>, %arg3: memref<1x128xf32, #tpu.memory_space<vmem>>, %arg4: memref<128x128xf32, #tpu.memory_space<vmem>>) attributes {dimension_semantics = [#tpu.dimension_semantics<parallel>], iteration_bounds = array<i64: 2>, scalar_prefetch = 0 : i64, scratch_operands = 0 : i64, tpu.core_type = #tpu.core_type<tc>, window_params = [{transform_indices = @transform_0, window_bounds = array<i64: 128, 64>}, {pipeline_mode = #tpu.pipeline_mode<synchronous>, transform_indices = @transform_1, window_bounds = array<i64: 64, 128>}, {pipeline_mode = #tpu.pipeline_mode<synchronous>, transform_indices = @transform_2, window_bounds = array<i64: 1, 128>}, {transform_indices = @transform_3, window_bounds = array<i64: 128, 128>}]} {
    %c0 = arith.constant 0 : index
    %c0_0 = arith.constant 0 : index
    %0 = vector.load %arg1[%c0, %c0_0] : memref<128x64xbf16, #tpu.memory_space<vmem>>, vector<128x64xbf16>
    %c0_1 = arith.constant 0 : index
    %c0_2 = arith.constant 0 : index
    %1 = vector.load %arg2[%c0_1, %c0_2] : memref<64x128xbf16, #tpu.memory_space<vmem>>, vector<64x128xbf16>
    %cst = arith.constant dense<0.000000e+00> : vector<128x128xf32>
    %2 = tpu.matmul %0, %1, %cst {dimension_numbers = #tpu.dot_dimension_numbers<[1], [0], [0], [1], [0, 0, 1, 1], [], []>} : vector<128x64xbf16>, vector<64x128xbf16>, vector<128x128xf32> -> vector<128x128xf32>
    %c0_3 = arith.constant 0 : index
    %c0_4 = arith.constant 0 : index
    %3 = vector.load %arg3[%c0_3, %c0_4] : memref<1x128xf32, #tpu.memory_space<vmem>>, vector<1x128xf32>
    %4 = vector.broadcast %3 : vector<1x128xf32> to vector<128x128xf32>
    %5 = arith.addf %2, %4 : vector<128x128xf32>
    %c0_5 = arith.constant 0 : index
    %c0_6 = arith.constant 0 : index
    %6 = vector.load %arg4[%c0_5, %c0_6] : memref<128x128xf32, #tpu.memory_space<vmem>>, vector<128x128xf32>
    tpu.vector_store %arg4[%c0_5, %c0_6], %5 {strides = array<i32>} : memref<128x128xf32, #tpu.memory_space<vmem>>, vector<128x128xf32>,
    return
  }
  func.func @transform_0(%arg0: i32) -> (i32, i32) {
    %c0_i32 = arith.constant 0 : i32
    %c0_i32_0 = arith.constant 0 : i32
    return %arg0, %c0_i32 : i32, i32
  }
  func.func @transform_1(%arg0: i32) -> (i32, i32) {
    %c0_i32 = arith.constant 0 : i32
    %c0_i32_0 = arith.constant 0 : i32
    %c0_i32_1 = arith.constant 0 : i32
    return %c0_i32, %c0_i32_0 : i32, i32
  }
  func.func @transform_2(%arg0: i32) -> (i32, i32) {
    %c0_i32 = arith.constant 0 : i32
    %c0_i32_0 = arith.constant 0 : i32
    %c0_i32_1 = arith.constant 0 : i32
    return %c0_i32, %c0_i32_0 : i32, i32
  }
  func.func @transform_3(%arg0: i32) -> (i32, i32) {
    %c0_i32 = arith.constant 0 : i32
    %c0_i32_0 = arith.constant 0 : i32
    return %arg0, %c0_i32 : i32, i32
  }
}

module attributes {stable_mosaic.version = 11 : i64} {
  func.func @_roi_heads_kernel(%arg0: i32, %arg1: memref<8x256xbf16, #tpu.memory_space<vmem>>, %arg2: memref<256x64xbf16, #tpu.memory_space<vmem>>, %arg3: memref<64x128xbf16, #tpu.memory_space<vmem>>, %arg4: memref<1x128xf32, #tpu.memory_space<vmem>>, %arg5: memref<128x128xbf16, #tpu.memory_space<vmem>>, %arg6: memref<1x128xf32, #tpu.memory_space<vmem>>, %arg7: memref<128x128xbf16, #tpu.memory_space<vmem>>, %arg8: memref<1x128xf32, #tpu.memory_space<vmem>>, %arg9: memref<64x1024xbf16, #tpu.memory_space<vmem>>, %arg10: memref<1x1024xf32, #tpu.memory_space<vmem>>, %arg11: memref<8x128xf32, #tpu.memory_space<vmem>>, %arg12: memref<8x1024xf32, #tpu.memory_space<vmem>>) attributes {dimension_semantics = [#tpu.dimension_semantics<parallel>], iteration_bounds = array<i64: 2>, scalar_prefetch = 0 : i64, scratch_operands = 0 : i64, tpu.core_type = #tpu.core_type<tc>, window_params = [{transform_indices = @transform_0, window_bounds = array<i64: 8, 256>}, {pipeline_mode = #tpu.pipeline_mode<synchronous>, transform_indices = @transform_1, window_bounds = array<i64: 256, 64>}, {pipeline_mode = #tpu.pipeline_mode<synchronous>, transform_indices = @transform_2, window_bounds = array<i64: 64, 128>}, {pipeline_mode = #tpu.pipeline_mode<synchronous>, transform_indices = @transform_3, window_bounds = array<i64: 1, 128>}, {pipeline_mode = #tpu.pipeline_mode<synchronous>, transform_indices = @transform_4, window_bounds = array<i64: 128, 128>}, {pipeline_mode = #tpu.pipeline_mode<synchronous>, transform_indices = @transform_5, window_bounds = array<i64: 1, 128>}, {pipeline_mode = #tpu.pipeline_mode<synchronous>, transform_indices = @transform_6, window_bounds = array<i64: 128, 128>}, {pipeline_mode = #tpu.pipeline_mode<synchronous>, transform_indices = @transform_7, window_bounds = array<i64: 1, 128>}, {pipeline_mode = #tpu.pipeline_mode<synchronous>, transform_indices = @transform_8, window_bounds = array<i64: 64, 1024>}, {pipeline_mode = #tpu.pipeline_mode<synchronous>, transform_indices = @transform_9, window_bounds = array<i64: 1, 1024>}, {transform_indices = @transform_10, window_bounds = array<i64: 8, 128>}, {transform_indices = @transform_11, window_bounds = array<i64: 8, 1024>}]} {
    %c0 = arith.constant 0 : index
    %c0_0 = arith.constant 0 : index
    %0 = vector.load %arg1[%c0, %c0_0] : memref<8x256xbf16, #tpu.memory_space<vmem>>, vector<8x256xbf16>
    %c0_1 = arith.constant 0 : index
    %c0_2 = arith.constant 0 : index
    %1 = vector.load %arg2[%c0_1, %c0_2] : memref<256x64xbf16, #tpu.memory_space<vmem>>, vector<256x64xbf16>
    %cst = arith.constant dense<0.000000e+00> : vector<8x64xf32>
    %2 = tpu.matmul %0, %1, %cst {dimension_numbers = #tpu.dot_dimension_numbers<[1], [0], [0], [1], [0, 0, 1, 1], [], []>} : vector<8x256xbf16>, vector<256x64xbf16>, vector<8x64xf32> -> vector<8x64xf32>
    %3 = arith.truncf %2 : vector<8x64xf32> to vector<8x64xbf16>
    %c0_3 = arith.constant 0 : index
    %c0_4 = arith.constant 0 : index
    %4 = vector.load %arg3[%c0_3, %c0_4] : memref<64x128xbf16, #tpu.memory_space<vmem>>, vector<64x128xbf16>
    %cst_5 = arith.constant dense<0.000000e+00> : vector<8x128xf32>
    %5 = tpu.matmul %3, %4, %cst_5 {dimension_numbers = #tpu.dot_dimension_numbers<[1], [0], [0], [1], [0, 0, 1, 1], [], []>} : vector<8x64xbf16>, vector<64x128xbf16>, vector<8x128xf32> -> vector<8x128xf32>
    %c0_6 = arith.constant 0 : index
    %c0_7 = arith.constant 0 : index
    %6 = vector.load %arg4[%c0_6, %c0_7] : memref<1x128xf32, #tpu.memory_space<vmem>>, vector<1x128xf32>
    %7 = vector.broadcast %6 : vector<1x128xf32> to vector<8x128xf32>
    %8 = arith.addf %5, %7 : vector<8x128xf32>
    %cst_8 = arith.constant 0.000000e+00 : f32
    %9 = vector.broadcast %cst_8 : f32 to vector<8x128xf32>
    %10 = arith.maximumf %8, %9 : vector<8x128xf32>
    %11 = arith.truncf %10 : vector<8x128xf32> to vector<8x128xbf16>
    %c0_9 = arith.constant 0 : index
    %c0_10 = arith.constant 0 : index
    %12 = vector.load %arg5[%c0_9, %c0_10] : memref<128x128xbf16, #tpu.memory_space<vmem>>, vector<128x128xbf16>
    %cst_11 = arith.constant dense<0.000000e+00> : vector<8x128xf32>
    %13 = tpu.matmul %11, %12, %cst_11 {dimension_numbers = #tpu.dot_dimension_numbers<[1], [0], [0], [1], [0, 0, 1, 1], [], []>} : vector<8x128xbf16>, vector<128x128xbf16>, vector<8x128xf32> -> vector<8x128xf32>
    %c0_12 = arith.constant 0 : index
    %c0_13 = arith.constant 0 : index
    %14 = vector.load %arg6[%c0_12, %c0_13] : memref<1x128xf32, #tpu.memory_space<vmem>>, vector<1x128xf32>
    %15 = vector.broadcast %14 : vector<1x128xf32> to vector<8x128xf32>
    %16 = arith.addf %13, %15 : vector<8x128xf32>
    %cst_14 = arith.constant 0.000000e+00 : f32
    %17 = vector.broadcast %cst_14 : f32 to vector<8x128xf32>
    %18 = arith.maximumf %16, %17 : vector<8x128xf32>
    %19 = arith.truncf %18 : vector<8x128xf32> to vector<8x128xbf16>
    %c0_15 = arith.constant 0 : index
    %c0_16 = arith.constant 0 : index
    %20 = vector.load %arg7[%c0_15, %c0_16] : memref<128x128xbf16, #tpu.memory_space<vmem>>, vector<128x128xbf16>
    %cst_17 = arith.constant dense<0.000000e+00> : vector<8x128xf32>
    %21 = tpu.matmul %19, %20, %cst_17 {dimension_numbers = #tpu.dot_dimension_numbers<[1], [0], [0], [1], [0, 0, 1, 1], [], []>} : vector<8x128xbf16>, vector<128x128xbf16>, vector<8x128xf32> -> vector<8x128xf32>
    %c0_18 = arith.constant 0 : index
    %c0_19 = arith.constant 0 : index
    %22 = vector.load %arg8[%c0_18, %c0_19] : memref<1x128xf32, #tpu.memory_space<vmem>>, vector<1x128xf32>
    %23 = vector.broadcast %22 : vector<1x128xf32> to vector<8x128xf32>
    %24 = arith.addf %21, %23 : vector<8x128xf32>
    %c0_20 = arith.constant 0 : index
    %c0_21 = arith.constant 0 : index
    %25 = vector.load %arg11[%c0_20, %c0_21] : memref<8x128xf32, #tpu.memory_space<vmem>>, vector<8x128xf32>
    tpu.vector_store %arg11[%c0_20, %c0_21], %24 {strides = array<i32>} : memref<8x128xf32, #tpu.memory_space<vmem>>, vector<8x128xf32>,
    %c0_22 = arith.constant 0 : index
    %c0_23 = arith.constant 0 : index
    %26 = vector.load %arg9[%c0_22, %c0_23] : memref<64x1024xbf16, #tpu.memory_space<vmem>>, vector<64x1024xbf16>
    %cst_24 = arith.constant dense<0.000000e+00> : vector<8x1024xf32>
    %27 = tpu.matmul %3, %26, %cst_24 {dimension_numbers = #tpu.dot_dimension_numbers<[1], [0], [0], [1], [0, 0, 1, 1], [], []>} : vector<8x64xbf16>, vector<64x1024xbf16>, vector<8x1024xf32> -> vector<8x1024xf32>
    %c0_25 = arith.constant 0 : index
    %c0_26 = arith.constant 0 : index
    %28 = vector.load %arg10[%c0_25, %c0_26] : memref<1x1024xf32, #tpu.memory_space<vmem>>, vector<1x1024xf32>
    %29 = vector.broadcast %28 : vector<1x1024xf32> to vector<8x1024xf32>
    %30 = arith.addf %27, %29 : vector<8x1024xf32>
    %31 = arith.negf %30 : vector<8x1024xf32>
    %32 = math.exp %31 : vector<8x1024xf32>
    %cst_27 = arith.constant 1.000000e+00 : f32
    %33 = vector.broadcast %cst_27 : f32 to vector<8x1024xf32>
    %34 = arith.addf %33, %32 : vector<8x1024xf32>
    %35 = arith.divf %33, %34 : vector<8x1024xf32>
    %c0_28 = arith.constant 0 : index
    %c0_29 = arith.constant 0 : index
    %36 = vector.load %arg12[%c0_28, %c0_29] : memref<8x1024xf32, #tpu.memory_space<vmem>>, vector<8x1024xf32>
    tpu.vector_store %arg12[%c0_28, %c0_29], %35 {strides = array<i32>} : memref<8x1024xf32, #tpu.memory_space<vmem>>, vector<8x1024xf32>,
    return
  }
  func.func @transform_0(%arg0: i32) -> (i32, i32) {
    %c0_i32 = arith.constant 0 : i32
    %c0_i32_0 = arith.constant 0 : i32
    return %arg0, %c0_i32 : i32, i32
  }
  func.func @transform_1(%arg0: i32) -> (i32, i32) {
    %c0_i32 = arith.constant 0 : i32
    %c0_i32_0 = arith.constant 0 : i32
    %c0_i32_1 = arith.constant 0 : i32
    return %c0_i32, %c0_i32_0 : i32, i32
  }
  func.func @transform_2(%arg0: i32) -> (i32, i32) {
    %c0_i32 = arith.constant 0 : i32
    %c0_i32_0 = arith.constant 0 : i32
    %c0_i32_1 = arith.constant 0 : i32
    return %c0_i32, %c0_i32_0 : i32, i32
  }
  func.func @transform_3(%arg0: i32) -> (i32, i32) {
    %c0_i32 = arith.constant 0 : i32
    %c0_i32_0 = arith.constant 0 : i32
    %c0_i32_1 = arith.constant 0 : i32
    return %c0_i32, %c0_i32_0 : i32, i32
  }
  func.func @transform_4(%arg0: i32) -> (i32, i32) {
    %c0_i32 = arith.constant 0 : i32
    %c0_i32_0 = arith.constant 0 : i32
    %c0_i32_1 = arith.constant 0 : i32
    return %c0_i32, %c0_i32_0 : i32, i32
  }
  func.func @transform_5(%arg0: i32) -> (i32, i32) {
    %c0_i32 = arith.constant 0 : i32
    %c0_i32_0 = arith.constant 0 : i32
    %c0_i32_1 = arith.constant 0 : i32
    return %c0_i32, %c0_i32_0 : i32, i32
  }
  func.func @transform_6(%arg0: i32) -> (i32, i32) {
    %c0_i32 = arith.constant 0 : i32
    %c0_i32_0 = arith.constant 0 : i32
    %c0_i32_1 = arith.constant 0 : i32
    return %c0_i32, %c0_i32_0 : i32, i32
  }
  func.func @transform_7(%arg0: i32) -> (i32, i32) {
    %c0_i32 = arith.constant 0 : i32
    %c0_i32_0 = arith.constant 0 : i32
    %c0_i32_1 = arith.constant 0 : i32
    return %c0_i32, %c0_i32_0 : i32, i32
  }
  func.func @transform_8(%arg0: i32) -> (i32, i32) {
    %c0_i32 = arith.constant 0 : i32
    %c0_i32_0 = arith.constant 0 : i32
    %c0_i32_1 = arith.constant 0 : i32
    return %c0_i32, %c0_i32_0 : i32, i32
  }
  func.func @transform_9(%arg0: i32) -> (i32, i32) {
    %c0_i32 = arith.constant 0 : i32
    %c0_i32_0 = arith.constant 0 : i32
    %c0_i32_1 = arith.constant 0 : i32
    return %c0_i32, %c0_i32_0 : i32, i32
  }
  func.func @transform_10(%arg0: i32) -> (i32, i32) {
    %c0_i32 = arith.constant 0 : i32
    %c0_i32_0 = arith.constant 0 : i32
    return %arg0, %c0_i32 : i32, i32
  }
  func.func @transform_11(%arg0: i32) -> (i32, i32) {
    %c0_i32 = arith.constant 0 : i32
    %c0_i32_0 = arith.constant 0 : i32
    return %arg0, %c0_i32 : i32, i32
  }
}

</mosaic_0001>

<bundles_post_ra>
// kernel: maskrcnn_forward.5
= control target key start
LH: loop header
LB: loop body
LE: loop exit
PB: predicated region body
PF: predicated region fallthrough
CT: control target
= control target key end

     0   :  { %s1254_s12 = smov 0   ;;  %s1482_s0 = inlined_call_operand.vmem [shape: bf16[2048,27], index: 0, kind: input, shape index: {}]   ;;  %s1483_s1 = inlined_call_operand.vmem [shape: bf16[27,128], index: 1, kind: input, shape index: {}]   ;;  %s1484_s2 = inlined_call_operand.vmem [shape: f32[1,128], index: 2, kind: input, shape index: {}]   ;;  %s1485_s3 = inlined_call_operand.vmem [shape: f32[2048,128], index: 3, kind: output, shape index: {}]  }
   0x1 LB: > { %s998_s13 = sadd.s32 4294967295, %s1231_s12   ;;  %p1002_p0 = scmp.ge.s32.totalorder %s1231_s12, 1  ;;  %s1231_s12 = sphi %s1254_s12, %s13_s12  }
   0x2   : > { %p138_p1 = scmp.lt.s32.totalorder %s1231_s12, 5 }
   0x4   : > { %p139_p2 = pnand %p1002_p0, %p138_p1 }
   0x5   : > { %v1191_v0 = vld [vmem:[%s1483_s1] sm:$0xff] (!%p139_p2)   ;;  %vm518_vm0 = vcmask (!%p139_p2), 1044480   ;;  %v1192_v1 = vld [vmem:[%s1483_s1 + $0x8] sm:$0x3f] (!%p139_p2)   ;;  %vm519_vm1 = vcmask (!%p139_p2), 1045504   ;;  %s1003_s18 = sshll.u32 (!%p139_p2), %s998_s13, 6 }
   0x6   : > { %142 = sbr.rel (%p139_p2) target bundleno = 295 (0x127), region = 32  ;;  %1110 = vmatprep.subr.bf16.mxu0 (!%p139_p2), %v1191_v0  ;;  %1178 = vmatprep.subr.bf16.mxu1 (!%p139_p2), %v1191_v0  ;;  %v1233_v2 = vmov (!%p139_p2), 65535   ;;  %p163_p3 = scmp.lt.s32.totalorder (!%p139_p2), %s1003_s18, 255  ;;  %vm421_vm2 = vcmask (!%p139_p2), 220160   ;;  %v1343_v38 = vld [vmem:[%s1484_s2] ss:$0 sm:$0xff] (!%p139_p2) }
   0x7   : > { %1111 = vmatpush3.bf16.msra.mxu0 (!%p139_p2), %v1191_v0  ;;  %1180 = vmatpush3.bf16.msra.mxu1 (!%p139_p2), %v1191_v0  ;;  %v520_v3 = vsel (!%p139_p2), %vm518_vm0, 4294967295, %v1233_v2 }
   0x8   : > { %v521_v4 = vsel (!%p139_p2), %vm519_vm1, %v520_v3, 0 }
   0x9   : > { %v523_v5 = vand.u32 (!%p139_p2), %v1192_v1, %v521_v4 }
   0xb   : > { %1112 = vmatprep.subr.bf16.mxu0 (!%p139_p2), %v523_v5  ;;  %1179 = vmatprep.subr.bf16.mxu1 (!%p139_p2), %v523_v5 }
   0xc   : > { %1113 = vmatpush3.bf16.msra.mxu0 (!%p139_p2), %v523_v5  ;;  %1181 = vmatpush3.bf16.msra.mxu1 (!%p139_p2), %v523_v5 }
   0xd   : > { %s1487_s18 = smov (!%p163_p3, %s1003_s18), 255 }
   0xe   : > { %s1004_s19 = sshll.u32 %s1487_s18, 2  ;;  %s1006_s25 = sshll.u32 %s1487_s18, 3 }
   0xf   : > { %s1274_s22 = scalar_lea.vmem %s1482_s0, %s1004_s19  ;;  %s1350_s28 = scalar_lea.vmem %s1485_s3, %s1006_s25 }
  0x10   : > { %v1193_v6 = vld [vmem:[%s1274_s22] sm:$0xff]   ;;  %v1195_v8 = vld [vmem:[%s1274_s22 + $0x8] sm:$0xff]   ;;  %v1197_v10 = vld [vmem:[%s1274_s22 + $0x10] sm:$0xff]  }
  0x11   : > { %v1194_v7 = vld [vmem:[%s1274_s22 + $0x80] sm:$0xff]   ;;  %1114 = vmatprep.mubr.msk.bf16.mxu0 %vm421_vm2, %v1193_v6  ;;  %v1196_v9 = vld [vmem:[%s1274_s22 + $0x88] sm:$0xff]   ;;  %v1198_v11 = vld [vmem:[%s1274_s22 + $0x90] sm:$0xff]  }
  0x12   : > { %1146 = vmatprep.mubr.msk.bf16.mxu1 %vm421_vm2, %v1194_v7  ;;  %1115 = vmatmul.mubr.msk.bf16.vlgmr.msra.gmra.mrb[0].mxu0 %vm421_vm2, %v1195_v8  ;;  %v1199_v12 = vld [vmem:[%s1274_s22 + $0x18] sm:$0xff]   ;;  %v1201_v14 = vld [vmem:[%s1274_s22 + $0x20] sm:$0xff]   ;;  %v1203_v16 = vld [vmem:[%s1274_s22 + $0x28] sm:$0xff]  }
  0x13   : > { %1147 = vmatmul.mubr.msk.bf16.vlgmr.msra.gmra.mrb[0].mxu1 %vm421_vm2, %v1196_v9  ;;  %1118 = vmatprep.mubr.msk.bf16.mxu0 %vm421_vm2, %v1197_v10  ;;  %v1200_v13 = vld [vmem:[%s1274_s22 + $0x98] sm:$0xff]   ;;  %v1202_v15 = vld [vmem:[%s1274_s22 + $0xa0] sm:$0xff]   ;;  %v1204_v17 = vld [vmem:[%s1274_s22 + $0xa8] sm:$0xff]  }
  0x14   : > { %1150 = vmatprep.mubr.msk.bf16.mxu1 %vm421_vm2, %v1198_v11  ;;  %v1205_v18 = vld [vmem:[%s1274_s22 + $0x30] sm:$0xff]   ;;  %v1207_v20 = vld [vmem:[%s1274_s22 + $0x38] sm:$0xff]   ;;  %v1209_v22 = vld [vmem:[%s1274_s22 + $0x40] sm:$0xff]  }
  0x15   : > { %v1206_v19 = vld [vmem:[%s1274_s22 + $0xb0] sm:$0xff]   ;;  %v1208_v21 = vld [vmem:[%s1274_s22 + $0xb8] sm:$0xff]   ;;  %v1210_v23 = vld [vmem:[%s1274_s22 + $0xc0] sm:$0xff]  }
  0x16   : > { %v1211_v24 = vld [vmem:[%s1274_s22 + $0x48] sm:$0xff]   ;;  %v1213_v26 = vld [vmem:[%s1274_s22 + $0x50] sm:$0xff]   ;;  %v1215_v28 = vld [vmem:[%s1274_s22 + $0x58] sm:$0xff]  }
  0x17   : > { %v1212_v25 = vld [vmem:[%s1274_s22 + $0xc8] sm:$0xff]   ;;  %v1214_v27 = vld [vmem:[%s1274_s22 + $0xd0] sm:$0xff]   ;;  %v1216_v29 = vld [vmem:[%s1274_s22 + $0xd8] sm:$0xff]  }
  0x18   : > { %v1217_v30 = vld [vmem:[%s1274_s22 + $0x60] sm:$0xff]   ;;  %v1219_v32 = vld [vmem:[%s1274_s22 + $0x68] sm:$0xff]   ;;  %v1221_v34 = vld [vmem:[%s1274_s22 + $0x70] sm:$0xff]  }
  0x19   : > { %v1218_v31 = vld [vmem:[%s1274_s22 + $0xe0] sm:$0xff]   ;;  %v1220_v33 = vld [vmem:[%s1274_s22 + $0xe8] sm:$0xff]   ;;  %v1222_v35 = vld [vmem:[%s1274_s22 + $0xf0] sm:$0xff]  }
  0x1a   : > { %1119 = vmatmul.mubr.msk.bf16.gmra.mrb[4].mxu0 %vm421_vm2, %v1199_v12  ;;  %v1223_v36 = vld [vmem:[%s1274_s22 + $0x78] sm:$0xff]  }
  0x1b   : > { %1151 = vmatmul.mubr.msk.bf16.gmra.mrb[4].mxu1 %vm421_vm2, %v1200_v13  ;;  %1122 = vmatprep.mubr.msk.bf16.mxu0 %vm421_vm2, %v1201_v14  ;;  %v1224_v37 = vld [vmem:[%s1274_s22 + $0xf8] sm:$0xff]  }
  0x1c   : > { %1154 = vmatprep.mubr.msk.bf16.mxu1 %vm421_vm2, %v1202_v15 }
  0x22   : > { %1123 = vmatmul.mubr.msk.bf16.gmra.mrb[8].mxu0 %vm421_vm2, %v1203_v16 }
  0x23   : > { %1155 = vmatmul.mubr.msk.bf16.gmra.mrb[8].mxu1 %vm421_vm2, %v1204_v17  ;;  %1126 = vmatprep.mubr.msk.bf16.mxu0 %vm421_vm2, %v1205_v18 }
  0x24   : > { %1158 = vmatprep.mubr.msk.bf16.mxu1 %vm421_vm2, %v1206_v19 }
  0x2a   : > { %1127 = vmatmul.mubr.msk.bf16.gmra.mrb[12].mxu0 %vm421_vm2, %v1207_v20 }
  0x2b   : > { %1159 = vmatmul.mubr.msk.bf16.gmra.mrb[12].mxu1 %vm421_vm2, %v1208_v21  ;;  %1130 = vmatprep.mubr.msk.bf16.mxu0 %vm421_vm2, %v1209_v22 }
  0x2c   : > { %1162 = vmatprep.mubr.msk.bf16.mxu1 %vm421_vm2, %v1210_v23 }
  0x32   : > { %1131 = vmatmul.mubr.msk.bf16.gmra.mrb[16].mxu0 %vm421_vm2, %v1211_v24 }
  0x33   : > { %1163 = vmatmul.mubr.msk.bf16.gmra.mrb[16].mxu1 %vm421_vm2, %v1212_v25  ;;  %1134 = vmatprep.mubr.msk.bf16.mxu0 %vm421_vm2, %v1213_v26 }
  0x34   : > { %1166 = vmatprep.mubr.msk.bf16.mxu1 %vm421_vm2, %v1214_v27 }
  0x3a   : > { %1135 = vmatmul.mubr.msk.bf16.gmra.mrb[20].mxu0 %vm421_vm2, %v1215_v28 }
  0x3b   : > { %1167 = vmatmul.mubr.msk.bf16.gmra.mrb[20].mxu1 %vm421_vm2, %v1216_v29  ;;  %1138 = vmatprep.mubr.msk.bf16.mxu0 %vm421_vm2, %v1217_v30 }
  0x3c   : > { %1170 = vmatprep.mubr.msk.bf16.mxu1 %vm421_vm2, %v1218_v31 }
  0x42   : > { %1139 = vmatmul.mubr.msk.bf16.gmra.mrb[24].mxu0 %vm421_vm2, %v1219_v32 }
  0x43   : > { %1171 = vmatmul.mubr.msk.bf16.gmra.mrb[24].mxu1 %vm421_vm2, %v1220_v33  ;;  %1142 = vmatprep.mubr.msk.bf16.mxu0 %vm421_vm2, %v1221_v34 }
  0x44   : > { %1174 = vmatprep.mubr.msk.bf16.mxu1 %vm421_vm2, %v1222_v35 }
  0x4a   : > { %1143 = vmatmul.mubr.msk.bf16.gmra.mrb[28].mxu0 %vm421_vm2, %v1223_v36 }
  0x4b   : > { %1175 = vmatmul.mubr.msk.bf16.gmra.mrb[28].mxu1 %vm421_vm2, %v1224_v37 }
  0xe5   : > { %v1116_v39 = vpop.f32.mrb[0].mxu0 }
  0xe6   : > { %v568_v40 = vadd.f32 %v1116_v39, %v1343_v38  ;;  %v1148_v41 = vpop.f32.mrb[0].mxu1  ;;  %v559_v42 = vpop.f32.mrb[1].mxu0 }
  0xe7   : > { %v696_v43 = vadd.f32 %v1148_v41, %v1343_v38  ;;  %v560_v44 = vadd.f32 %v1343_v38, %v559_v42  ;;  %v687_v45 = vpop.f32.mrb[1].mxu1  ;;  %v1117_v46 = vpop.f32.mrb[2].mxu0 }
  0xe8   : > { %v816_v47 = vmax.f32 %v568_v40, 0.0  ;;  %v688_v48 = vadd.f32 %v1343_v38, %v687_v45  ;;  %v571_v49 = vadd.f32 %v1117_v46, %v1343_v38  ;;  %v1149_v50 = vpop.f32.mrb[2].mxu1  ;;  %v562_v51 = vpop.f32.mrb[3].mxu0 }
  0xe9   : > { %v848_v52 = vmax.f32 %v696_v43, 0.0  ;;  %v814_v53 = vmax.f32 %v560_v44, 0.0  ;;  %v699_v54 = vadd.f32 %v1149_v50, %v1343_v38  ;;  %v563_v55 = vadd.f32 %v1343_v38, %v562_v51  ;;  %v690_v56 = vpop.f32.mrb[3].mxu1 }
  0xea   : > { %880 = vst [vmem:[%s1350_s28 + $0x10] sm:$0xff] %v816_v47  ;;  %v846_v57 = vmax.f32 %v688_v48, 0.0  ;;  %v817_v58 = vmax.f32 %v571_v49, 0.0  ;;  %v691_v59 = vadd.f32 %v1343_v38, %v690_v56 }
  0xeb   : > { %912 = vst [vmem:[%s1350_s28 + $0x110] sm:$0xff] %v848_v52  ;;  %878 = vst [vmem:[%s1350_s28] sm:$0xff] %v814_v53  ;;  %v849_v60 = vmax.f32 %v699_v54, 0.0  ;;  %v815_v61 = vmax.f32 %v563_v55, 0.0 }
  0xec   : > { %910 = vst [vmem:[%s1350_s28 + $0x100] sm:$0xff] %v846_v57  ;;  %881 = vst [vmem:[%s1350_s28 + $0x18] sm:$0xff] %v817_v58  ;;  %v847_v62 = vmax.f32 %v691_v59, 0.0 }
  0xed   : > { %913 = vst [vmem:[%s1350_s28 + $0x118] sm:$0xff] %v849_v60  ;;  %879 = vst [vmem:[%s1350_s28 + $0x8] sm:$0xff] %v815_v61  ;;  %v1120_v63 = vpop.f32.mrb[4].mxu0 }
  0xee   : > { %911 = vst [vmem:[%s1350_s28 + $0x108] sm:$0xff] %v847_v62  ;;  %v584_v0 = vadd.f32 %v1120_v63, %v1343_v38  ;;  %v1152_v1 = vpop.f32.mrb[4].mxu1  ;;  %v575_v2 = vpop.f32.mrb[5].mxu0 }
  0xef   : > { %v712_v3 = vadd.f32 %v1152_v1, %v1343_v38  ;;  %v576_v4 = vadd.f32 %v1343_v38, %v575_v2  ;;  %v703_v5 = vpop.f32.mrb[5].mxu1  ;;  %v1121_v6 = vpop.f32.mrb[6].mxu0 }
  0xf0   : > { %v820_v7 = vmax.f32 %v584_v0, 0.0  ;;  %v704_v8 = vadd.f32 %v1343_v38, %v703_v5  ;;  %v587_v9 = vadd.f32 %v1121_v6, %v1343_v38  ;;  %v1153_v10 = vpop.f32.mrb[6].mxu1  ;;  %v578_v11 = vpop.f32.mrb[7].mxu0 }
  0xf1   : > { %v852_v12 = vmax.f32 %v712_v3, 0.0  ;;  %v818_v13 = vmax.f32 %v576_v4, 0.0  ;;  %v715_v14 = vadd.f32 %v1153_v10, %v1343_v38  ;;  %v579_v15 = vadd.f32 %v1343_v38, %v578_v11  ;;  %v706_v16 = vpop.f32.mrb[7].mxu1 }
  0xf2   : > { %884 = vst [vmem:[%s1350_s28 + $0x30] sm:$0xff] %v820_v7  ;;  %v850_v17 = vmax.f32 %v704_v8, 0.0  ;;  %v821_v18 = vmax.f32 %v587_v9, 0.0  ;;  %v707_v19 = vadd.f32 %v1343_v38, %v706_v16 }
  0xf3   : > { %916 = vst [vmem:[%s1350_s28 + $0x130] sm:$0xff] %v852_v12  ;;  %882 = vst [vmem:[%s1350_s28 + $0x20] sm:$0xff] %v818_v13  ;;  %v853_v20 = vmax.f32 %v715_v14, 0.0  ;;  %v819_v21 = vmax.f32 %v579_v15, 0.0 }
  0xf4   : > { %914 = vst [vmem:[%s1350_s28 + $0x120] sm:$0xff] %v850_v17  ;;  %885 = vst [vmem:[%s1350_s28 + $0x38] sm:$0xff] %v821_v18  ;;  %v851_v22 = vmax.f32 %v707_v19, 0.0 }
  0xf5   : > { %917 = vst [vmem:[%s1350_s28 + $0x138] sm:$0xff] %v853_v20  ;;  %883 = vst [vmem:[%s1350_s28 + $0x28] sm:$0xff] %v819_v21  ;;  %v1124_v23 = vpop.f32.mrb[8].mxu0 }
  0xf6   : > { %915 = vst [vmem:[%s1350_s28 + $0x128] sm:$0xff] %v851_v22  ;;  %v600_v24 = vadd.f32 %v1124_v23, %v1343_v38  ;;  %v1156_v25 = vpop.f32.mrb[8].mxu1  ;;  %v591_v26 = vpop.f32.mrb[9].mxu0 }
  0xf7   : > { %v728_v27 = vadd.f32 %v1156_v25, %v1343_v38  ;;  %v592_v28 = vadd.f32 %v1343_v38, %v591_v26  ;;  %v719_v29 = vpop.f32.mrb[9].mxu1  ;;  %v1125_v30 = vpop.f32.mrb[10].mxu0 }
  0xf8   : > { %v824_v31 = vmax.f32 %v600_v24, 0.0  ;;  %v720_v32 = vadd.f32 %v1343_v38, %v719_v29  ;;  %v603_v33 = vadd.f32 %v1125_v30, %v1343_v38  ;;  %v1157_v34 = vpop.f32.mrb[10].mxu1  ;;  %v594_v35 = vpop.f32.mrb[11].mxu0 }
  0xf9   : > { %v856_v36 = vmax.f32 %v728_v27, 0.0  ;;  %v822_v37 = vmax.f32 %v592_v28, 0.0  ;;  %v731_v39 = vadd.f32 %v1157_v34, %v1343_v38  ;;  %v595_v40 = vadd.f32 %v1343_v38, %v594_v35  ;;  %v722_v41 = vpop.f32.mrb[11].mxu1 }
  0xfa   : > { %888 = vst [vmem:[%s1350_s28 + $0x50] sm:$0xff] %v824_v31  ;;  %v854_v42 = vmax.f32 %v720_v32, 0.0  ;;  %v825_v43 = vmax.f32 %v603_v33, 0.0  ;;  %v723_v44 = vadd.f32 %v1343_v38, %v722_v41 }
  0xfb   : > { %920 = vst [vmem:[%s1350_s28 + $0x150] sm:$0xff] %v856_v36  ;;  %886 = vst [vmem:[%s1350_s28 + $0x40] sm:$0xff] %v822_v37  ;;  %v857_v45 = vmax.f32 %v731_v39, 0.0  ;;  %v823_v46 = vmax.f32 %v595_v40, 0.0 }
  0xfc   : > { %918 = vst [vmem:[%s1350_s28 + $0x140] sm:$0xff] %v854_v42  ;;  %889 = vst [vmem:[%s1350_s28 + $0x58] sm:$0xff] %v825_v43  ;;  %v855_v47 = vmax.f32 %v723_v44, 0.0 }
  0xfd   : > { %921 = vst [vmem:[%s1350_s28 + $0x158] sm:$0xff] %v857_v45  ;;  %887 = vst [vmem:[%s1350_s28 + $0x48] sm:$0xff] %v823_v46  ;;  %v1128_v48 = vpop.f32.mrb[12].mxu0 }
  0xfe   : > { %919 = vst [vmem:[%s1350_s28 + $0x148] sm:$0xff] %v855_v47  ;;  %v616_v49 = vadd.f32 %v1128_v48, %v1343_v38  ;;  %v1160_v50 = vpop.f32.mrb[12].mxu1  ;;  %v607_v51 = vpop.f32.mrb[13].mxu0 }
  0xff   : > { %v744_v52 = vadd.f32 %v1160_v50, %v1343_v38  ;;  %v608_v53 = vadd.f32 %v1343_v38, %v607_v51  ;;  %v735_v54 = vpop.f32.mrb[13].mxu1  ;;  %v1129_v55 = vpop.f32.mrb[14].mxu0 }
 0x100   : > { %v828_v56 = vmax.f32 %v616_v49, 0.0  ;;  %v736_v57 = vadd.f32 %v1343_v38, %v735_v54  ;;  %v619_v58 = vadd.f32 %v1129_v55, %v1343_v38  ;;  %v1161_v59 = vpop.f32.mrb[14].mxu1  ;;  %v610_v60 = vpop.f32.mrb[15].mxu0 }
 0x101   : > { %v860_v61 = vmax.f32 %v744_v52, 0.0  ;;  %v826_v62 = vmax.f32 %v608_v53, 0.0  ;;  %v747_v63 = vadd.f32 %v1161_v59, %v1343_v38  ;;  %v611_v0 = vadd.f32 %v1343_v38, %v610_v60  ;;  %v738_v1 = vpop.f32.mrb[15].mxu1 }
 0x102   : > { %892 = vst [vmem:[%s1350_s28 + $0x70] sm:$0xff] %v828_v56  ;;  %v858_v2 = vmax.f32 %v736_v57, 0.0  ;;  %v829_v3 = vmax.f32 %v619_v58, 0.0  ;;  %v739_v4 = vadd.f32 %v1343_v38, %v738_v1 }
 0x103   : > { %924 = vst [vmem:[%s1350_s28 + $0x170] sm:$0xff] %v860_v61  ;;  %890 = vst [vmem:[%s1350_s28 + $0x60] sm:$0xff] %v826_v62  ;;  %v861_v5 = vmax.f32 %v747_v63, 0.0  ;;  %v827_v6 = vmax.f32 %v611_v0, 0.0 }
 0x104   : > { %922 = vst [vmem:[%s1350_s28 + $0x160] sm:$0xff] %v858_v2  ;;  %893 = vst [vmem:[%s1350_s28 + $0x78] sm:$0xff] %v829_v3  ;;  %v859_v7 = vmax.f32 %v739_v4, 0.0 }
 0x105   : > { %925 = vst [vmem:[%s1350_s28 + $0x178] sm:$0xff] %v861_v5  ;;  %891 = vst [vmem:[%s1350_s28 + $0x68] sm:$0xff] %v827_v6  ;;  %v1132_v8 = vpop.f32.mrb[16].mxu0 }
 0x106   : > { %923 = vst [vmem:[%s1350_s28 + $0x168] sm:$0xff] %v859_v7  ;;  %v632_v9 = vadd.f32 %v1132_v8, %v1343_v38  ;;  %v1164_v10 = vpop.f32.mrb[16].mxu1  ;;  %v623_v11 = vpop.f32.mrb[17].mxu0 }
 0x107   : > { %v760_v12 = vadd.f32 %v1164_v10, %v1343_v38  ;;  %v624_v13 = vadd.f32 %v1343_v38, %v623_v11  ;;  %v751_v14 = vpop.f32.mrb[17].mxu1  ;;  %v1133_v15 = vpop.f32.mrb[18].mxu0 }
 0x108   : > { %v832_v16 = vmax.f32 %v632_v9, 0.0  ;;  %v752_v17 = vadd.f32 %v1343_v38, %v751_v14  ;;  %v635_v18 = vadd.f32 %v1133_v15, %v1343_v38  ;;  %v1165_v19 = vpop.f32.mrb[18].mxu1  ;;  %v626_v20 = vpop.f32.mrb[19].mxu0 }
 0x109   : > { %v864_v21 = vmax.f32 %v760_v12, 0.0  ;;  %v830_v22 = vmax.f32 %v624_v13, 0.0  ;;  %v763_v23 = vadd.f32 %v1165_v19, %v1343_v38  ;;  %v627_v24 = vadd.f32 %v1343_v38, %v626_v20  ;;  %v754_v25 = vpop.f32.mrb[19].mxu1 }
 0x10a   : > { %896 = vst [vmem:[%s1350_s28 + $0x90] sm:$0xff] %v832_v16  ;;  %v862_v26 = vmax.f32 %v752_v17, 0.0  ;;  %v833_v27 = vmax.f32 %v635_v18, 0.0  ;;  %v755_v28 = vadd.f32 %v1343_v38, %v754_v25 }
 0x10b   : > { %928 = vst [vmem:[%s1350_s28 + $0x190] sm:$0xff] %v864_v21  ;;  %894 = vst [vmem:[%s1350_s28 + $0x80] sm:$0xff] %v830_v22  ;;  %v865_v29 = vmax.f32 %v763_v23, 0.0  ;;  %v831_v30 = vmax.f32 %v627_v24, 0.0 }
 0x10c   : > { %926 = vst [vmem:[%s1350_s28 + $0x180] sm:$0xff] %v862_v26  ;;  %897 = vst [vmem:[%s1350_s28 + $0x98] sm:$0xff] %v833_v27  ;;  %v863_v31 = vmax.f32 %v755_v28, 0.0 }
 0x10d   : > { %929 = vst [vmem:[%s1350_s28 + $0x198] sm:$0xff] %v865_v29  ;;  %895 = vst [vmem:[%s1350_s28 + $0x88] sm:$0xff] %v831_v30  ;;  %v1136_v32 = vpop.f32.mrb[20].mxu0 }
 0x10e   : > { %927 = vst [vmem:[%s1350_s28 + $0x188] sm:$0xff] %v863_v31  ;;  %v648_v33 = vadd.f32 %v1136_v32, %v1343_v38  ;;  %v1168_v34 = vpop.f32.mrb[20].mxu1  ;;  %v639_v35 = vpop.f32.mrb[21].mxu0 }
 0x10f   : > { %v776_v36 = vadd.f32 %v1168_v34, %v1343_v38  ;;  %v640_v37 = vadd.f32 %v1343_v38, %v639_v35  ;;  %v767_v39 = vpop.f32.mrb[21].mxu1  ;;  %v1137_v40 = vpop.f32.mrb[22].mxu0 }
 0x110   : > { %v836_v41 = vmax.f32 %v648_v33, 0.0  ;;  %v768_v42 = vadd.f32 %v1343_v38, %v767_v39  ;;  %v651_v43 = vadd.f32 %v1137_v40, %v1343_v38  ;;  %v1169_v44 = vpop.f32.mrb[22].mxu1  ;;  %v642_v45 = vpop.f32.mrb[23].mxu0 }
 0x111   : > { %v868_v46 = vmax.f32 %v776_v36, 0.0  ;;  %v834_v47 = vmax.f32 %v640_v37, 0.0  ;;  %v779_v48 = vadd.f32 %v1169_v44, %v1343_v38  ;;  %v643_v49 = vadd.f32 %v1343_v38, %v642_v45  ;;  %v770_v50 = vpop.f32.mrb[23].mxu1 }
 0x112   : > { %900 = vst [vmem:[%s1350_s28 + $0xb0] sm:$0xff] %v836_v41  ;;  %v866_v51 = vmax.f32 %v768_v42, 0.0  ;;  %v837_v52 = vmax.f32 %v651_v43, 0.0  ;;  %v771_v53 = vadd.f32 %v1343_v38, %v770_v50 }
 0x113   : > { %932 = vst [vmem:[%s1350_s28 + $0x1b0] sm:$0xff] %v868_v46  ;;  %898 = vst [vmem:[%s1350_s28 + $0xa0] sm:$0xff] %v834_v47  ;;  %v869_v54 = vmax.f32 %v779_v48, 0.0  ;;  %v835_v55 = vmax.f32 %v643_v49, 0.0 }
 0x114   : > { %930 = vst [vmem:[%s1350_s28 + $0x1a0] sm:$0xff] %v866_v51  ;;  %901 = vst [vmem:[%s1350_s28 + $0xb8] sm:$0xff] %v837_v52  ;;  %v867_v56 = vmax.f32 %v771_v53, 0.0 }
 0x115   : > { %933 = vst [vmem:[%s1350_s28 + $0x1b8] sm:$0xff] %v869_v54  ;;  %899 = vst [vmem:[%s1350_s28 + $0xa8] sm:$0xff] %v835_v55  ;;  %v1140_v57 = vpop.f32.mrb[24].mxu0 }
 0x116   : > { %931 = vst [vmem:[%s1350_s28 + $0x1a8] sm:$0xff] %v867_v56  ;;  %v664_v58 = vadd.f32 %v1140_v57, %v1343_v38  ;;  %v1172_v59 = vpop.f32.mrb[24].mxu1  ;;  %v655_v60 = vpop.f32.mrb[25].mxu0 }
 0x117   : > { %v792_v61 = vadd.f32 %v1172_v59, %v1343_v38  ;;  %v656_v62 = vadd.f32 %v1343_v38, %v655_v60  ;;  %v783_v63 = vpop.f32.mrb[25].mxu1  ;;  %v1141_v0 = vpop.f32.mrb[26].mxu0 }
 0x118   : > { %v840_v1 = vmax.f32 %v664_v58, 0.0  ;;  %v784_v2 = vadd.f32 %v1343_v38, %v783_v63  ;;  %v667_v3 = vadd.f32 %v1141_v0, %v1343_v38  ;;  %v1173_v4 = vpop.f32.mrb[26].mxu1  ;;  %v658_v5 = vpop.f32.mrb[27].mxu0 }
 0x119   : > { %v872_v6 = vmax.f32 %v792_v61, 0.0  ;;  %v838_v7 = vmax.f32 %v656_v62, 0.0  ;;  %v795_v8 = vadd.f32 %v1173_v4, %v1343_v38  ;;  %v659_v9 = vadd.f32 %v1343_v38, %v658_v5  ;;  %v786_v10 = vpop.f32.mrb[27].mxu1 }
 0x11a   : > { %904 = vst [vmem:[%s1350_s28 + $0xd0] sm:$0xff] %v840_v1  ;;  %v870_v11 = vmax.f32 %v784_v2, 0.0  ;;  %v841_v12 = vmax.f32 %v667_v3, 0.0  ;;  %v787_v13 = vadd.f32 %v1343_v38, %v786_v10 }
 0x11b   : > { %936 = vst [vmem:[%s1350_s28 + $0x1d0] sm:$0xff] %v872_v6  ;;  %902 = vst [vmem:[%s1350_s28 + $0xc0] sm:$0xff] %v838_v7  ;;  %v873_v14 = vmax.f32 %v795_v8, 0.0  ;;  %v839_v15 = vmax.f32 %v659_v9, 0.0 }
 0x11c   : > { %934 = vst [vmem:[%s1350_s28 + $0x1c0] sm:$0xff] %v870_v11  ;;  %905 = vst [vmem:[%s1350_s28 + $0xd8] sm:$0xff] %v841_v12  ;;  %v871_v16 = vmax.f32 %v787_v13, 0.0 }
 0x11d   : > { %937 = vst [vmem:[%s1350_s28 + $0x1d8] sm:$0xff] %v873_v14  ;;  %903 = vst [vmem:[%s1350_s28 + $0xc8] sm:$0xff] %v839_v15  ;;  %v1144_v17 = vpop.f32.mrb[28].mxu0 }
 0x11e   : > { %935 = vst [vmem:[%s1350_s28 + $0x1c8] sm:$0xff] %v871_v16  ;;  %v680_v18 = vadd.f32 %v1144_v17, %v1343_v38  ;;  %v1176_v19 = vpop.f32.mrb[28].mxu1  ;;  %v671_v20 = vpop.f32.mrb[29].mxu0 }
 0x11f   : > { %v808_v21 = vadd.f32 %v1176_v19, %v1343_v38  ;;  %v672_v22 = vadd.f32 %v1343_v38, %v671_v20  ;;  %v799_v23 = vpop.f32.mrb[29].mxu1  ;;  %v1145_v24 = vpop.f32.mrb[30].mxu0 }
 0x120   : > { %v844_v25 = vmax.f32 %v680_v18, 0.0  ;;  %v800_v26 = vadd.f32 %v1343_v38, %v799_v23  ;;  %v683_v27 = vadd.f32 %v1145_v24, %v1343_v38  ;;  %v1177_v28 = vpop.f32.mrb[30].mxu1  ;;  %v674_v29 = vpop.f32.mrb[31].mxu0 }
 0x121   : > { %v876_v30 = vmax.f32 %v808_v21, 0.0  ;;  %v842_v31 = vmax.f32 %v672_v22, 0.0  ;;  %v811_v32 = vadd.f32 %v1177_v28, %v1343_v38  ;;  %v675_v33 = vadd.f32 %v1343_v38, %v674_v29  ;;  %v802_v34 = vpop.f32.mrb[31].mxu1 }
 0x122   : > { %908 = vst [vmem:[%s1350_s28 + $0xf0] sm:$0xff] %v844_v25  ;;  %v874_v35 = vmax.f32 %v800_v26, 0.0  ;;  %v845_v36 = vmax.f32 %v683_v27, 0.0  ;;  %v803_v37 = vadd.f32 %v1343_v38, %v802_v34 }
 0x123   : > { %940 = vst [vmem:[%s1350_s28 + $0x1f0] sm:$0xff] %v876_v30  ;;  %906 = vst [vmem:[%s1350_s28 + $0xe0] sm:$0xff] %v842_v31  ;;  %v877_v39 = vmax.f32 %v811_v32, 0.0  ;;  %v843_v40 = vmax.f32 %v675_v33, 0.0 }
 0x124   : > { %938 = vst [vmem:[%s1350_s28 + $0x1e0] sm:$0xff] %v874_v35  ;;  %909 = vst [vmem:[%s1350_s28 + $0xf8] sm:$0xff] %v845_v36  ;;  %v875_v41 = vmax.f32 %v803_v37, 0.0 }
 0x125   : > { %941 = vst [vmem:[%s1350_s28 + $0x1f8] sm:$0xff] %v877_v39  ;;  %907 = vst [vmem:[%s1350_s28 + $0xe8] sm:$0xff] %v843_v40 }
 0x126   : > { %939 = vst [vmem:[%s1350_s28 + $0x1e8] sm:$0xff] %v875_v41 }
 0x127 PF: > { %s13_s12 = sadd.s32 1, %s1231_s12  }
 0x128   : > { %p10_p4 = scmp.ge.s32.totalorder %s13_s12, 6  }
 0x12a   :  { %12 = sbr.rel (!%p10_p4) target bundleno = 1 (0x1), region = 62 }

// kernel: maskrcnn_forward.6
= control target key start
LH: loop header
LB: loop body
LE: loop exit
PB: predicated region body
PF: predicated region fallthrough
CT: control target
= control target key end

     0   :  { %s947_s12 = smov 0   ;;  %s1119_s0 = inlined_call_operand.vmem [shape: bf16[512,144], index: 0, kind: input, shape index: {}]   ;;  %s1120_s1 = inlined_call_operand.vmem [shape: bf16[144,128], index: 1, kind: input, shape index: {}]   ;;  %s1121_s2 = inlined_call_operand.vmem [shape: f32[1,128], index: 2, kind: input, shape index: {}]   ;;  %s1122_s3 = inlined_call_operand.vmem [shape: f32[512,128], index: 3, kind: output, shape index: {}]  }
   0x1 LB: > { %s763_s13 = sadd.s32 4294967295, %s924_s12   ;;  %p767_p0 = scmp.ge.s32.totalorder %s924_s12, 1  ;;  %s924_s12 = sphi %s947_s12, %s13_s12  }
   0x2   : > { %p139_p1 = scmp.lt.s32.totalorder %s924_s12, 3 }
   0x4   : > { %p140_p2 = pnand %p767_p0, %p139_p1 }
   0x5   : > { %v861_v0 = vld [vmem:[%s1120_s1] sm:$0xff] (!%p140_p2)   ;;  %v926_v1 = vmov (!%p140_p2), 0   ;;  %s768_s16 = sshll.u32 (!%p140_p2), %s763_s13, 5  ;;  %v862_v2 = vld [vmem:[%s1120_s1 + $0x8] sm:$0xff] (!%p140_p2)   ;;  %v863_v3 = vld [vmem:[%s1120_s1 + $0x10] sm:$0xff] (!%p140_p2)   ;;  %vm433_vm0 = vcmask (!%p140_p2), 130048  }
   0x6   : > { %143 = sbr.rel (%p140_p2) target bundleno = 317 (0x13d), region = 32  ;;  %482 = vmatprep.subr.bf16.mxu0 (!%p140_p2), %v926_v1  ;;  %834 = vmatprep.subr.bf16.mxu1 (!%p140_p2), %v926_v1  ;;  %p165_p3 = scmp.lt.s32.totalorder (!%p140_p2), %s768_s16, 63  ;;  %v864_v4 = vld [vmem:[%s1120_s1 + $0x18] sm:$0xff] (!%p140_p2)   ;;  %v865_v7 = vld [vmem:[%s1120_s1 + $0x20] sm:$0xff] (!%p140_p2)   ;;  %v866_v8 = vld [vmem:[%s1120_s1 + $0x28] sm:$0xff] (!%p140_p2)  }
   0x7   : > { %483 = vmatpush1.bf16.msra.mxu0 (!%p140_p2), %v861_v0  ;;  %843 = vmatpush1.bf16.msra.mxu1 (!%p140_p2), %v861_v0  ;;  %v867_v9 = vld [vmem:[%s1120_s1 + $0x30] sm:$0xff] (!%p140_p2)   ;;  %v868_v10 = vld [vmem:[%s1120_s1 + $0x38] sm:$0xff] (!%p140_p2)   ;;  %v869_v11 = vld [vmem:[%s1120_s1 + $0x40] sm:$0xff] (!%p140_p2)  }
   0x8   : > { %484 = vmatprep.subr.bf16.mxu0 (!%p140_p2), %v926_v1  ;;  %835 = vmatprep.subr.bf16.mxu1 (!%p140_p2), %v926_v1  ;;  %v1043_v42 = vld [vmem:[%s1121_s2] ss:$0 sm:$0xff] (!%p140_p2) }
   0xb   : > { %485 = vmatpush1.bf16.msra.mxu0 (!%p140_p2), %v862_v2  ;;  %844 = vmatpush1.bf16.msra.mxu1 (!%p140_p2), %v862_v2 }
   0xc   : > { %486 = vmatprep.subr.bf16.mxu0 (!%p140_p2), %v926_v1  ;;  %836 = vmatprep.subr.bf16.mxu1 (!%p140_p2), %v926_v1 }
   0xd   : > { %s1124_s16 = smov (!%p165_p3, %s768_s16), 63 }
   0xe   : > { %s833_s21 = sshll.u32 %s1124_s16, 3 }
   0xf   : > { %s972_s24 = scalar_lea.vmem %s1119_s0, %s833_s21  ;;  %487 = vmatpush1.bf16.msra.mxu0 %v863_v3  ;;  %845 = vmatpush1.bf16.msra.mxu1 %v863_v3  ;;  %s1052_s15 = scalar_lea.vmem %s1122_s3, %s833_s21 }
  0x10   : > { %v872_v5 = vld [vmem:[%s972_s24 + $0x4] ss:$8 sps:$4 sm:$0xff]   ;;  %488 = vmatprep.subr.bf16.mxu0 %v926_v1  ;;  %837 = vmatprep.subr.bf16.mxu1 %v926_v1  ;;  %v870_v12 = vld [vmem:[%s972_s24] ss:$8 sps:$4 sm:$0xff]   ;;  %v876_v14 = vld [vmem:[%s972_s24 + $0x14] ss:$8 sps:$4 sm:$0xff]  }
  0x11   : > { %v875_v6 = vld [vmem:[%s972_s24 + $0x84] ss:$8 sps:$4 sm:$0xff]   ;;  %815 = vmatprep.mubr.msk.bf16.mxu0 %vm433_vm0, %v872_v5  ;;  %v873_v13 = vld [vmem:[%s972_s24 + $0x80] ss:$8 sps:$4 sm:$0xff]   ;;  %v878_v15 = vld [vmem:[%s972_s24 + $0x94] ss:$8 sps:$4 sm:$0xff]  }
  0x12   : > { %823 = vmatprep.mubr.msk.bf16.mxu1 %vm433_vm0, %v875_v6  ;;  %v880_v16 = vld [vmem:[%s972_s24 + $0x10] ss:$8 sps:$4 sm:$0xff]   ;;  %v882_v18 = vld [vmem:[%s972_s24 + $0x24] ss:$8 sps:$4 sm:$0xff]   ;;  %v886_v20 = vld [vmem:[%s972_s24 + $0x20] ss:$8 sps:$4 sm:$0xff]  }
  0x13   : > { %489 = vmatpush1.bf16.msra.mxu0 %v864_v4  ;;  %846 = vmatpush1.bf16.msra.mxu1 %v864_v4  ;;  %v881_v17 = vld [vmem:[%s972_s24 + $0x90] ss:$8 sps:$4 sm:$0xff]   ;;  %v884_v19 = vld [vmem:[%s972_s24 + $0xa4] ss:$8 sps:$4 sm:$0xff]   ;;  %v887_v21 = vld [vmem:[%s972_s24 + $0xa0] ss:$8 sps:$4 sm:$0xff]  }
  0x14   : > { %490 = vmatprep.subr.bf16.mxu0 %v926_v1  ;;  %838 = vmatprep.subr.bf16.mxu1 %v926_v1  ;;  %v888_v22 = vld [vmem:[%s972_s24 + $0x34] ss:$8 sps:$4 sm:$0xff]   ;;  %v892_v24 = vld [vmem:[%s972_s24 + $0x30] ss:$8 sps:$4 sm:$0xff]   ;;  %v894_v26 = vld [vmem:[%s972_s24 + $0x44] ss:$8 sps:$4 sm:$0xff]  }
  0x15   : > { %v890_v23 = vld [vmem:[%s972_s24 + $0xb4] ss:$8 sps:$4 sm:$0xff]   ;;  %v893_v25 = vld [vmem:[%s972_s24 + $0xb0] ss:$8 sps:$4 sm:$0xff]   ;;  %v896_v27 = vld [vmem:[%s972_s24 + $0xc4] ss:$8 sps:$4 sm:$0xff]  }
  0x16   : > { %v898_v28 = vld [vmem:[%s972_s24 + $0x40] ss:$8 sps:$4 sm:$0xff]   ;;  %v900_v30 = vld [vmem:[%s972_s24 + $0x54] ss:$8 sps:$4 sm:$0xff]   ;;  %v904_v32 = vld [vmem:[%s972_s24 + $0x50] ss:$8 sps:$4 sm:$0xff]  }
  0x17   : > { %491 = vmatpush1.bf16.msra.mxu0 %v865_v7  ;;  %847 = vmatpush1.bf16.msra.mxu1 %v865_v7  ;;  %v899_v29 = vld [vmem:[%s972_s24 + $0xc0] ss:$8 sps:$4 sm:$0xff]   ;;  %v902_v31 = vld [vmem:[%s972_s24 + $0xd4] ss:$8 sps:$4 sm:$0xff]   ;;  %v905_v33 = vld [vmem:[%s972_s24 + $0xd0] ss:$8 sps:$4 sm:$0xff]  }
  0x18   : > { %492 = vmatprep.subr.bf16.mxu0 %v926_v1  ;;  %839 = vmatprep.subr.bf16.mxu1 %v926_v1  ;;  %v906_v34 = vld [vmem:[%s972_s24 + $0x64] ss:$8 sps:$4 sm:$0xff]   ;;  %v910_v36 = vld [vmem:[%s972_s24 + $0x60] ss:$8 sps:$4 sm:$0xff]   ;;  %v912_v38 = vld [vmem:[%s972_s24 + $0x74] ss:$8 sps:$4 sm:$0xff]  }
  0x19   : > { %v908_v35 = vld [vmem:[%s972_s24 + $0xe4] ss:$8 sps:$4 sm:$0xff]   ;;  %v911_v37 = vld [vmem:[%s972_s24 + $0xe0] ss:$8 sps:$4 sm:$0xff]   ;;  %v914_v39 = vld [vmem:[%s972_s24 + $0xf4] ss:$8 sps:$4 sm:$0xff]  }
  0x1a   : > { %v916_v40 = vld [vmem:[%s972_s24 + $0x70] ss:$8 sps:$4 sm:$0xff]  }
  0x1b   : > { %493 = vmatpush1.bf16.msra.mxu0 %v866_v8  ;;  %848 = vmatpush1.bf16.msra.mxu1 %v866_v8  ;;  %v917_v41 = vld [vmem:[%s972_s24 + $0xf0] ss:$8 sps:$4 sm:$0xff]  }
  0x1c   : > { %494 = vmatprep.subr.bf16.mxu0 %v926_v1  ;;  %840 = vmatprep.subr.bf16.mxu1 %v926_v1 }
  0x1f   : > { %495 = vmatpush1.bf16.msra.mxu0 %v867_v9  ;;  %849 = vmatpush1.bf16.msra.mxu1 %v867_v9 }
  0x20   : > { %496 = vmatprep.subr.bf16.mxu0 %v926_v1  ;;  %841 = vmatprep.subr.bf16.mxu1 %v926_v1 }
  0x23   : > { %497 = vmatpush1.bf16.msra.mxu0 %v868_v10  ;;  %850 = vmatpush1.bf16.msra.mxu1 %v868_v10 }
  0x24   : > { %498 = vmatprep.subr.bf16.mxu0 %v926_v1  ;;  %842 = vmatprep.subr.bf16.mxu1 %v926_v1 }
  0x27   : > { %499 = vmatpush1.bf16.msra.mxu0 %v869_v11  ;;  %851 = vmatpush1.bf16.msra.mxu1 %v869_v11 }
  0x2a   : > { %515 = vmatmul.mubr.bf16.vlgmr.msra.gmra.mrb[0].mxu0 %v870_v12  ;;  %579 = vmatmul.mubr.bf16.vlgmr.msra.gmra.mrb[0].mxu1 %v873_v13 }
  0x2b   : > { %816 = vmatprep.mubr.msk.bf16.mxu0 %vm433_vm0, %v876_v14  ;;  %824 = vmatprep.mubr.msk.bf16.mxu1 %vm433_vm0, %v878_v15 }
  0x32   : > { %523 = vmatmul.mubr.bf16.gmra.mrb[4].mxu0 %v880_v16  ;;  %587 = vmatmul.mubr.bf16.gmra.mrb[4].mxu1 %v881_v17 }
  0x33   : > { %817 = vmatprep.mubr.msk.bf16.mxu0 %vm433_vm0, %v882_v18  ;;  %825 = vmatprep.mubr.msk.bf16.mxu1 %vm433_vm0, %v884_v19 }
  0x3a   : > { %531 = vmatmul.mubr.bf16.gmra.mrb[8].mxu0 %v886_v20  ;;  %595 = vmatmul.mubr.bf16.gmra.mrb[8].mxu1 %v887_v21 }
  0x3b   : > { %818 = vmatprep.mubr.msk.bf16.mxu0 %vm433_vm0, %v888_v22  ;;  %826 = vmatprep.mubr.msk.bf16.mxu1 %vm433_vm0, %v890_v23 }
  0x42   : > { %539 = vmatmul.mubr.bf16.gmra.mrb[12].mxu0 %v892_v24  ;;  %603 = vmatmul.mubr.bf16.gmra.mrb[12].mxu1 %v893_v25 }
  0x43   : > { %819 = vmatprep.mubr.msk.bf16.mxu0 %vm433_vm0, %v894_v26  ;;  %827 = vmatprep.mubr.msk.bf16.mxu1 %vm433_vm0, %v896_v27 }
  0x4a   : > { %547 = vmatmul.mubr.bf16.gmra.mrb[16].mxu0 %v898_v28  ;;  %611 = vmatmul.mubr.bf16.gmra.mrb[16].mxu1 %v899_v29 }
  0x4b   : > { %820 = vmatprep.mubr.msk.bf16.mxu0 %vm433_vm0, %v900_v30  ;;  %828 = vmatprep.mubr.msk.bf16.mxu1 %vm433_vm0, %v902_v31 }
  0x52   : > { %555 = vmatmul.mubr.bf16.gmra.mrb[20].mxu0 %v904_v32  ;;  %619 = vmatmul.mubr.bf16.gmra.mrb[20].mxu1 %v905_v33 }
  0x53   : > { %821 = vmatprep.mubr.msk.bf16.mxu0 %vm433_vm0, %v906_v34  ;;  %829 = vmatprep.mubr.msk.bf16.mxu1 %vm433_vm0, %v908_v35 }
  0x5a   : > { %563 = vmatmul.mubr.bf16.gmra.mrb[24].mxu0 %v910_v36  ;;  %627 = vmatmul.mubr.bf16.gmra.mrb[24].mxu1 %v911_v37 }
  0x5b   : > { %822 = vmatprep.mubr.msk.bf16.mxu0 %vm433_vm0, %v912_v38  ;;  %830 = vmatprep.mubr.msk.bf16.mxu1 %vm433_vm0, %v914_v39 }
  0x62   : > { %571 = vmatmul.mubr.bf16.gmra.mrb[28].mxu0 %v916_v40  ;;  %635 = vmatmul.mubr.bf16.gmra.mrb[28].mxu1 %v917_v41 }
  0xfd   : > { %v516_v43 = vpop.f32.mrb[0].mxu0  ;;  %v580_v44 = vpop.f32.mrb[0].mxu1 }
  0xfe   : > { %v517_v45 = vadd.f32 %v1043_v42, %v516_v43  ;;  %v581_v46 = vadd.f32 %v1043_v42, %v580_v44  ;;  %v518_v47 = vpop.f32.mrb[1].mxu0  ;;  %v582_v48 = vpop.f32.mrb[1].mxu1 }
  0xff   : > { %v519_v49 = vpop.f32.mrb[2].mxu0  ;;  %v583_v50 = vpop.f32.mrb[2].mxu1 }
 0x100   : > { %v643_v51 = vmax.f32 %v517_v45, 0.0  ;;  %v659_v52 = vmax.f32 %v581_v46, 0.0  ;;  %v520_v53 = vadd.f32 %v1043_v42, %v519_v49  ;;  %v584_v54 = vadd.f32 %v1043_v42, %v583_v50  ;;  %v521_v55 = vpop.f32.mrb[3].mxu0  ;;  %v585_v56 = vpop.f32.mrb[3].mxu1 }
 0x102   : > { %675 = vst [vmem:[%s1052_s15] sm:$0xff] %v643_v51  ;;  %691 = vst [vmem:[%s1052_s15 + $0x80] sm:$0xff] %v659_v52  ;;  %v644_v57 = vmax.f32 %v520_v53, 0.0  ;;  %v660_v58 = vmax.f32 %v584_v54, 0.0 }
 0x104   : > { %676 = vst [vmem:[%s1052_s15 + $0x8] sm:$0xff] %v644_v57  ;;  %692 = vst [vmem:[%s1052_s15 + $0x88] sm:$0xff] %v660_v58 }
 0x105   : > { %v524_v59 = vpop.f32.mrb[4].mxu0  ;;  %v588_v60 = vpop.f32.mrb[4].mxu1 }
 0x106   : > { %v525_v61 = vadd.f32 %v1043_v42, %v524_v59  ;;  %v589_v62 = vadd.f32 %v1043_v42, %v588_v60  ;;  %v526_v63 = vpop.f32.mrb[5].mxu0  ;;  %v590_v0 = vpop.f32.mrb[5].mxu1 }
 0x107   : > { %v527_v1 = vpop.f32.mrb[6].mxu0  ;;  %v591_v2 = vpop.f32.mrb[6].mxu1 }
 0x108   : > { %v645_v3 = vmax.f32 %v525_v61, 0.0  ;;  %v661_v4 = vmax.f32 %v589_v62, 0.0  ;;  %v528_v5 = vadd.f32 %v1043_v42, %v527_v1  ;;  %v592_v6 = vadd.f32 %v1043_v42, %v591_v2  ;;  %v529_v7 = vpop.f32.mrb[7].mxu0  ;;  %v593_v8 = vpop.f32.mrb[7].mxu1 }
 0x10a   : > { %677 = vst [vmem:[%s1052_s15 + $0x10] sm:$0xff] %v645_v3  ;;  %693 = vst [vmem:[%s1052_s15 + $0x90] sm:$0xff] %v661_v4  ;;  %v646_v9 = vmax.f32 %v528_v5, 0.0  ;;  %v662_v10 = vmax.f32 %v592_v6, 0.0 }
 0x10c   : > { %678 = vst [vmem:[%s1052_s15 + $0x18] sm:$0xff] %v646_v9  ;;  %694 = vst [vmem:[%s1052_s15 + $0x98] sm:$0xff] %v662_v10 }
 0x10d   : > { %v532_v11 = vpop.f32.mrb[8].mxu0  ;;  %v596_v12 = vpop.f32.mrb[8].mxu1 }
 0x10e   : > { %v533_v13 = vadd.f32 %v1043_v42, %v532_v11  ;;  %v597_v14 = vadd.f32 %v1043_v42, %v596_v12  ;;  %v534_v15 = vpop.f32.mrb[9].mxu0  ;;  %v598_v16 = vpop.f32.mrb[9].mxu1 }
 0x10f   : > { %v535_v17 = vpop.f32.mrb[10].mxu0  ;;  %v599_v18 = vpop.f32.mrb[10].mxu1 }
 0x110   : > { %v647_v19 = vmax.f32 %v533_v13, 0.0  ;;  %v663_v20 = vmax.f32 %v597_v14, 0.0  ;;  %v536_v21 = vadd.f32 %v1043_v42, %v535_v17  ;;  %v600_v22 = vadd.f32 %v1043_v42, %v599_v18  ;;  %v537_v23 = vpop.f32.mrb[11].mxu0  ;;  %v601_v24 = vpop.f32.mrb[11].mxu1 }
 0x112   : > { %679 = vst [vmem:[%s1052_s15 + $0x20] sm:$0xff] %v647_v19  ;;  %695 = vst [vmem:[%s1052_s15 + $0xa0] sm:$0xff] %v663_v20  ;;  %v648_v25 = vmax.f32 %v536_v21, 0.0  ;;  %v664_v26 = vmax.f32 %v600_v22, 0.0 }
 0x114   : > { %680 = vst [vmem:[%s1052_s15 + $0x28] sm:$0xff] %v648_v25  ;;  %696 = vst [vmem:[%s1052_s15 + $0xa8] sm:$0xff] %v664_v26 }
 0x115   : > { %v540_v27 = vpop.f32.mrb[12].mxu0  ;;  %v604_v28 = vpop.f32.mrb[12].mxu1 }
 0x116   : > { %v541_v29 = vadd.f32 %v1043_v42, %v540_v27  ;;  %v605_v30 = vadd.f32 %v1043_v42, %v604_v28  ;;  %v542_v31 = vpop.f32.mrb[13].mxu0  ;;  %v606_v32 = vpop.f32.mrb[13].mxu1 }
 0x117   : > { %v543_v33 = vpop.f32.mrb[14].mxu0  ;;  %v607_v34 = vpop.f32.mrb[14].mxu1 }
 0x118   : > { %v649_v35 = vmax.f32 %v541_v29, 0.0  ;;  %v665_v36 = vmax.f32 %v605_v30, 0.0  ;;  %v544_v37 = vadd.f32 %v1043_v42, %v543_v33  ;;  %v608_v38 = vadd.f32 %v1043_v42, %v607_v34  ;;  %v545_v39 = vpop.f32.mrb[15].mxu0  ;;  %v609_v40 = vpop.f32.mrb[15].mxu1 }
 0x11a   : > { %681 = vst [vmem:[%s1052_s15 + $0x30] sm:$0xff] %v649_v35  ;;  %697 = vst [vmem:[%s1052_s15 + $0xb0] sm:$0xff] %v665_v36  ;;  %v650_v41 = vmax.f32 %v544_v37, 0.0  ;;  %v666_v43 = vmax.f32 %v608_v38, 0.0 }
 0x11c   : > { %682 = vst [vmem:[%s1052_s15 + $0x38] sm:$0xff] %v650_v41  ;;  %698 = vst [vmem:[%s1052_s15 + $0xb8] sm:$0xff] %v666_v43 }
 0x11d   : > { %v548_v44 = vpop.f32.mrb[16].mxu0  ;;  %v612_v45 = vpop.f32.mrb[16].mxu1 }
 0x11e   : > { %v549_v46 = vadd.f32 %v1043_v42, %v548_v44  ;;  %v613_v47 = vadd.f32 %v1043_v42, %v612_v45  ;;  %v550_v48 = vpop.f32.mrb[17].mxu0  ;;  %v614_v49 = vpop.f32.mrb[17].mxu1 }
 0x11f   : > { %v551_v50 = vpop.f32.mrb[18].mxu0  ;;  %v615_v51 = vpop.f32.mrb[18].mxu1 }
 0x120   : > { %v651_v52 = vmax.f32 %v549_v46, 0.0  ;;  %v667_v53 = vmax.f32 %v613_v47, 0.0  ;;  %v552_v54 = vadd.f32 %v1043_v42, %v551_v50  ;;  %v616_v55 = vadd.f32 %v1043_v42, %v615_v51  ;;  %v553_v56 = vpop.f32.mrb[19].mxu0  ;;  %v617_v57 = vpop.f32.mrb[19].mxu1 }
 0x122   : > { %683 = vst [vmem:[%s1052_s15 + $0x40] sm:$0xff] %v651_v52  ;;  %699 = vst [vmem:[%s1052_s15 + $0xc0] sm:$0xff] %v667_v53  ;;  %v652_v58 = vmax.f32 %v552_v54, 0.0  ;;  %v668_v59 = vmax.f32 %v616_v55, 0.0 }
 0x124   : > { %684 = vst [vmem:[%s1052_s15 + $0x48] sm:$0xff] %v652_v58  ;;  %700 = vst [vmem:[%s1052_s15 + $0xc8] sm:$0xff] %v668_v59 }
 0x125   : > { %v556_v60 = vpop.f32.mrb[20].mxu0  ;;  %v620_v61 = vpop.f32.mrb[20].mxu1 }
 0x126   : > { %v557_v62 = vadd.f32 %v1043_v42, %v556_v60  ;;  %v621_v63 = vadd.f32 %v1043_v42, %v620_v61  ;;  %v558_v0 = vpop.f32.mrb[21].mxu0  ;;  %v622_v1 = vpop.f32.mrb[21].mxu1 }
 0x127   : > { %v559_v2 = vpop.f32.mrb[22].mxu0  ;;  %v623_v3 = vpop.f32.mrb[22].mxu1 }
 0x128   : > { %v653_v4 = vmax.f32 %v557_v62, 0.0  ;;  %v669_v5 = vmax.f32 %v621_v63, 0.0  ;;  %v560_v6 = vadd.f32 %v1043_v42, %v559_v2  ;;  %v624_v7 = vadd.f32 %v1043_v42, %v623_v3  ;;  %v561_v8 = vpop.f32.mrb[23].mxu0  ;;  %v625_v9 = vpop.f32.mrb[23].mxu1 }
 0x12a   : > { %685 = vst [vmem:[%s1052_s15 + $0x50] sm:$0xff] %v653_v4  ;;  %701 = vst [vmem:[%s1052_s15 + $0xd0] sm:$0xff] %v669_v5  ;;  %v654_v10 = vmax.f32 %v560_v6, 0.0  ;;  %v670_v11 = vmax.f32 %v624_v7, 0.0 }
 0x12c   : > { %686 = vst [vmem:[%s1052_s15 + $0x58] sm:$0xff] %v654_v10  ;;  %702 = vst [vmem:[%s1052_s15 + $0xd8] sm:$0xff] %v670_v11 }
 0x12d   : > { %v564_v12 = vpop.f32.mrb[24].mxu0  ;;  %v628_v13 = vpop.f32.mrb[24].mxu1 }
 0x12e   : > { %v565_v14 = vadd.f32 %v1043_v42, %v564_v12  ;;  %v629_v15 = vadd.f32 %v1043_v42, %v628_v13  ;;  %v566_v16 = vpop.f32.mrb[25].mxu0  ;;  %v630_v17 = vpop.f32.mrb[25].mxu1 }
 0x12f   : > { %v567_v18 = vpop.f32.mrb[26].mxu0  ;;  %v631_v19 = vpop.f32.mrb[26].mxu1 }
 0x130   : > { %v655_v20 = vmax.f32 %v565_v14, 0.0  ;;  %v671_v21 = vmax.f32 %v629_v15, 0.0  ;;  %v568_v22 = vadd.f32 %v1043_v42, %v567_v18  ;;  %v632_v23 = vadd.f32 %v1043_v42, %v631_v19  ;;  %v569_v24 = vpop.f32.mrb[27].mxu0  ;;  %v633_v25 = vpop.f32.mrb[27].mxu1 }
 0x132   : > { %687 = vst [vmem:[%s1052_s15 + $0x60] sm:$0xff] %v655_v20  ;;  %703 = vst [vmem:[%s1052_s15 + $0xe0] sm:$0xff] %v671_v21  ;;  %v656_v26 = vmax.f32 %v568_v22, 0.0  ;;  %v672_v27 = vmax.f32 %v632_v23, 0.0 }
 0x134   : > { %688 = vst [vmem:[%s1052_s15 + $0x68] sm:$0xff] %v656_v26  ;;  %704 = vst [vmem:[%s1052_s15 + $0xe8] sm:$0xff] %v672_v27 }
 0x135   : > { %v572_v28 = vpop.f32.mrb[28].mxu0  ;;  %v636_v29 = vpop.f32.mrb[28].mxu1 }
 0x136   : > { %v573_v30 = vadd.f32 %v1043_v42, %v572_v28  ;;  %v637_v31 = vadd.f32 %v1043_v42, %v636_v29  ;;  %v574_v32 = vpop.f32.mrb[29].mxu0  ;;  %v638_v33 = vpop.f32.mrb[29].mxu1 }
 0x137   : > { %v575_v34 = vpop.f32.mrb[30].mxu0  ;;  %v639_v35 = vpop.f32.mrb[30].mxu1 }
 0x138   : > { %v657_v36 = vmax.f32 %v573_v30, 0.0  ;;  %v673_v37 = vmax.f32 %v637_v31, 0.0  ;;  %v576_v38 = vadd.f32 %v1043_v42, %v575_v34  ;;  %v640_v39 = vadd.f32 %v1043_v42, %v639_v35  ;;  %v577_v40 = vpop.f32.mrb[31].mxu0  ;;  %v641_v41 = vpop.f32.mrb[31].mxu1 }
 0x13a   : > { %689 = vst [vmem:[%s1052_s15 + $0x70] sm:$0xff] %v657_v36  ;;  %705 = vst [vmem:[%s1052_s15 + $0xf0] sm:$0xff] %v673_v37  ;;  %v658_v43 = vmax.f32 %v576_v38, 0.0  ;;  %v674_v44 = vmax.f32 %v640_v39, 0.0 }
 0x13c   : > { %690 = vst [vmem:[%s1052_s15 + $0x78] sm:$0xff] %v658_v43  ;;  %706 = vst [vmem:[%s1052_s15 + $0xf8] sm:$0xff] %v674_v44 }
 0x13d PF: > { %s13_s12 = sadd.s32 1, %s924_s12  }
 0x13e   : > { %p10_p4 = scmp.ge.s32.totalorder %s13_s12, 4  }
 0x140   :  { %12 = sbr.rel (!%p10_p4) target bundleno = 1 (0x1), region = 62 }

// kernel: maskrcnn_forward.7
= control target key start
LH: loop header
LB: loop body
LE: loop exit
PB: predicated region body
PF: predicated region fallthrough
CT: control target
= control target key end

     0   :  { %s1522_s12 = smov 0   ;;  %s1772_s0 = inlined_call_operand.vmem [shape: bf16[256,576], index: 0, kind: input, shape index: {}]   ;;  %s1773_s1 = inlined_call_operand.vmem [shape: bf16[576,128], index: 1, kind: input, shape index: {}]   ;;  %s1774_s2 = inlined_call_operand.vmem [shape: f32[1,128], index: 2, kind: input, shape index: {}]   ;;  %s1775_s3 = inlined_call_operand.vmem [shape: f32[256,128], index: 3, kind: output, shape index: {}]  }
   0x1 LB: > { %s1125_s13 = sadd.s32 4294967295, %s1500_s12   ;;  %p1129_p0 = scmp.ge.s32.totalorder %s1500_s12, 1  ;;  %s1500_s12 = sphi %s1522_s12, %s13_s12  }
   0x2   : > { %p139_p1 = scmp.lt.s32.totalorder %s1500_s12, 3 }
   0x4   : > { %p140_p2 = pnand %p1129_p0, %p139_p1 }
   0x5   : > { %v1402_v0 = vld [vmem:[%s1773_s1 + $0x40] sm:$0xff] (!%p140_p2)   ;;  %v1406_v4 = vld [vmem:[%s1773_s1 + $0x48] sm:$0xff] (!%p140_p2)   ;;  %v1410_v8 = vld [vmem:[%s1773_s1 + $0x50] sm:$0xff] (!%p140_p2)   ;;  %s1130_s19 = sshll.u32 (!%p140_p2), %s1125_s13, 4  ;;  %vm721_vm0 = vcmask (!%p140_p2), 523264  }
   0x6   : > { %143 = sbr.rel (%p140_p2) target bundleno = 332 (0x14c), region = 32  ;;  %v1403_v1 = vld [vmem:[%s1773_s1 + $0xc0] sm:$0xff] (!%p140_p2)   ;;  %1221 = vmatprep.subr.bf16.mxu0 (!%p140_p2), %v1402_v0  ;;  %v1407_v5 = vld [vmem:[%s1773_s1 + $0xc8] sm:$0xff] (!%p140_p2)   ;;  %v1411_v9 = vld [vmem:[%s1773_s1 + $0xd0] sm:$0xff] (!%p140_p2)   ;;  %p165_p3 = scmp.lt.s32.totalorder (!%p140_p2), %s1130_s19, 31 }
   0x7   : > { %v1404_v2 = vld [vmem:[%s1773_s1] sm:$0xff] (!%p140_p2)   ;;  %1285 = vmatprep.subr.bf16.mxu1 (!%p140_p2), %v1403_v1  ;;  %v1408_v6 = vld [vmem:[%s1773_s1 + $0x8] sm:$0xff] (!%p140_p2)   ;;  %v1412_v10 = vld [vmem:[%s1773_s1 + $0x10] sm:$0xff] (!%p140_p2)  }
   0x8   : > { %v1405_v3 = vld [vmem:[%s1773_s1 + $0x80] sm:$0xff] (!%p140_p2)   ;;  %1222 = vmatpush3.bf16.msra.mxu0 (!%p140_p2), %v1404_v2  ;;  %v1409_v7 = vld [vmem:[%s1773_s1 + $0x88] sm:$0xff] (!%p140_p2)   ;;  %v1413_v11 = vld [vmem:[%s1773_s1 + $0x90] sm:$0xff] (!%p140_p2)  }
   0x9   : > { %1286 = vmatpush3.bf16.msra.mxu1 (!%p140_p2), %v1405_v3  ;;  %1223 = vmatprep.subr.bf16.mxu0 (!%p140_p2), %v1406_v4  ;;  %v1414_v12 = vld [vmem:[%s1773_s1 + $0x58] sm:$0xff] (!%p140_p2)   ;;  %v1418_v16 = vld [vmem:[%s1773_s1 + $0x60] sm:$0xff] (!%p140_p2)   ;;  %v1422_v20 = vld [vmem:[%s1773_s1 + $0x68] sm:$0xff] (!%p140_p2)  }
   0xa   : > { %1287 = vmatprep.subr.bf16.mxu1 (!%p140_p2), %v1407_v5  ;;  %v1415_v13 = vld [vmem:[%s1773_s1 + $0xd8] sm:$0xff] (!%p140_p2)   ;;  %v1419_v17 = vld [vmem:[%s1773_s1 + $0xe0] sm:$0xff] (!%p140_p2)   ;;  %v1423_v21 = vld [vmem:[%s1773_s1 + $0xe8] sm:$0xff] (!%p140_p2)  }
   0xb   : > { %v1416_v14 = vld [vmem:[%s1773_s1 + $0x18] sm:$0xff] (!%p140_p2)   ;;  %v1420_v18 = vld [vmem:[%s1773_s1 + $0x20] sm:$0xff] (!%p140_p2)   ;;  %v1424_v22 = vld [vmem:[%s1773_s1 + $0x28] sm:$0xff] (!%p140_p2)  }
   0xc   : > { %1224 = vmatpush3.bf16.msra.mxu0 (!%p140_p2), %v1408_v6  ;;  %v1417_v15 = vld [vmem:[%s1773_s1 + $0x98] sm:$0xff] (!%p140_p2)   ;;  %v1421_v19 = vld [vmem:[%s1773_s1 + $0xa0] sm:$0xff] (!%p140_p2)   ;;  %v1425_v23 = vld [vmem:[%s1773_s1 + $0xa8] sm:$0xff] (!%p140_p2)  }
   0xd   : > { %1288 = vmatpush3.bf16.msra.mxu1 %v1409_v7  ;;  %1225 = vmatprep.subr.bf16.mxu0 %v1410_v8  ;;  %s1777_s19 = smov (!%p165_p3, %s1130_s19), 31  ;;  %v1426_v24 = vld [vmem:[%s1773_s1 + $0x70] sm:$0xff]   ;;  %v1430_v28 = vld [vmem:[%s1773_s1 + $0x78] sm:$0xff]   ;;  %v1440_v36 = vld [vmem:[%s1773_s1 + $0x100] sm:$0xff]  }
   0xe   : > { %1289 = vmatprep.subr.bf16.mxu1 %v1411_v9  ;;  %v1427_v25 = vld [vmem:[%s1773_s1 + $0xf0] sm:$0xff]   ;;  %s1393_s16 = smul.u32 20, %s1777_s19  ;;  %v1431_v29 = vld [vmem:[%s1773_s1 + $0xf8] sm:$0xff]   ;;  %v1453_v42 = vld [vmem:[%s1773_s1 + $0x108] sm:$0xff]   ;;  %s1133_s17 = sshll.u32 %s1777_s19, 3 }
   0xf   : > { %v1428_v26 = vld [vmem:[%s1773_s1 + $0x30] sm:$0xff]   ;;  %v1432_v30 = vld [vmem:[%s1773_s1 + $0x38] sm:$0xff]   ;;  %s1742_s21 = scalar_lea.vmem %s1775_s3, %s1133_s17 }
  0x10   : > { %1226 = vmatpush3.bf16.msra.mxu0 %v1412_v10  ;;  %v1429_v27 = vld [vmem:[%s1773_s1 + $0xb0] sm:$0xff]   ;;  %s1628_s13 = scalar_lea.vmem %s1772_s0, %s1393_s16  ;;  %v1433_v31 = vld [vmem:[%s1773_s1 + $0xb8] sm:$0xff]  }
  0x11   : > { %1290 = vmatpush3.bf16.msra.mxu1 %v1413_v11  ;;  %1227 = vmatprep.subr.bf16.mxu0 %v1414_v12  ;;  %v1434_v32 = vld [vmem:[%s1628_s13] ss:$20 sps:$4 sm:$0xff]   ;;  %v1436_v33 = vld [vmem:[%s1628_s13 + $0x4] ss:$20 sps:$4 sm:$0xff]   ;;  %v1437_v34 = vld [vmem:[%s1628_s13 + $0x8] ss:$20 sps:$4 sm:$0xff]  }
  0x12   : > { %1291 = vmatprep.subr.bf16.mxu1 %v1415_v13  ;;  %v1439_v35 = vld [vmem:[%s1628_s13 + $0xc] ss:$20 sps:$4 sm:$0xff]   ;;  %778 = vmatprep.mubr.bf16.mxu0 %v1436_v33  ;;  %v1443_v38 = vld [vmem:[%s1628_s13 + $0x34] ss:$20 sps:$4 sm:$0xff]   ;;  %v1446_v40 = vld [vmem:[%s1628_s13 + $0x30] ss:$20 sps:$4 sm:$0xff]  }
  0x13   : > { %875 = vmatprep.mubr.bf16.mxu1 %v1439_v35  ;;  %v1441_v37 = vld [vmem:[%s1628_s13 + $0x2c] ss:$20 sps:$4 sm:$0xff]   ;;  %v1445_v39 = vld [vmem:[%s1628_s13 + $0x28] ss:$20 sps:$4 sm:$0xff]   ;;  %v1451_v44 = vld [vmem:[%s1628_s13 + $0x50] ss:$20 sps:$4 sm:$0xff]  }
  0x14   : > { %1228 = vmatpush3.bf16.msra.mxu0 %v1416_v14  ;;  %v1447_v41 = vld [vmem:[%s1628_s13 + $0x54] ss:$20 sps:$4 sm:$0xff]   ;;  %v1449_v43 = vld [vmem:[%s1628_s13 + $0x5c] ss:$20 sps:$4 sm:$0xff]   ;;  %v1452_v45 = vld [vmem:[%s1628_s13 + $0x58] ss:$20 sps:$4 sm:$0xff]  }
  0x15   : > { %1292 = vmatpush3.bf16.msra.mxu1 %v1417_v15  ;;  %1229 = vmatprep.subr.bf16.mxu0 %v1418_v16  ;;  %v1466_v46 = vld [vmem:[%s1773_s1 + $0x110] sm:$0xff]   ;;  %v1456_v48 = vld [vmem:[%s1628_s13 + $0x84] ss:$20 sps:$4 sm:$0xff]   ;;  %v1462_v53 = vld [vmem:[%s1628_s13 + $0xac] ss:$20 sps:$4 sm:$0xff]  }
  0x16   : > { %1293 = vmatprep.subr.bf16.mxu1 %v1419_v17  ;;  %v1454_v47 = vld [vmem:[%s1628_s13 + $0x7c] ss:$20 sps:$4 sm:$0xff]   ;;  %v1458_v50 = vld [vmem:[%s1628_s13 + $0x78] ss:$20 sps:$4 sm:$0xff]   ;;  %v1459_v51 = vld [vmem:[%s1628_s13 + $0x80] ss:$20 sps:$4 sm:$0xff]  }
  0x17   : > { %v1479_v49 = vld [vmem:[%s1773_s1 + $0x118] sm:$0xff]   ;;  %v1464_v54 = vld [vmem:[%s1628_s13 + $0xa0] ss:$20 sps:$4 sm:$0xff]   ;;  %v1472_v59 = vld [vmem:[%s1628_s13 + $0xd0] ss:$20 sps:$4 sm:$0xff]  }
  0x18   : > { %1230 = vmatpush3.bf16.msra.mxu0 %v1420_v18  ;;  %v1460_v52 = vld [vmem:[%s1628_s13 + $0xa4] ss:$20 sps:$4 sm:$0xff]   ;;  %v1465_v55 = vld [vmem:[%s1628_s13 + $0xa8] ss:$20 sps:$4 sm:$0xff]   ;;  %v1467_v56 = vld [vmem:[%s1628_s13 + $0xcc] ss:$20 sps:$4 sm:$0xff]  }
  0x19   : > { %1294 = vmatpush3.bf16.msra.mxu1 %v1421_v19  ;;  %1231 = vmatprep.subr.bf16.mxu0 %v1422_v20  ;;  %v1469_v57 = vld [vmem:[%s1628_s13 + $0xd4] ss:$20 sps:$4 sm:$0xff]   ;;  %v1475_v61 = vld [vmem:[%s1628_s13 + $0xfc] ss:$20 sps:$4 sm:$0xff]   ;;  %v1478_v63 = vld [vmem:[%s1628_s13 + $0xf8] ss:$20 sps:$4 sm:$0xff]  }
  0x1a   : > { %1295 = vmatprep.subr.bf16.mxu1 %v1423_v21  ;;  %v1471_v58 = vld [vmem:[%s1628_s13 + $0xc8] ss:$20 sps:$4 sm:$0xff]   ;;  %v1477_v62 = vld [vmem:[%s1628_s13 + $0xf0] ss:$20 sps:$4 sm:$0xff]   ;;  %v1484_v2 = vld [vmem:[%s1628_s13 + $0x118] ss:$20 sps:$4 sm:$0xff]  }
  0x1b   : > { %v1473_v60 = vld [vmem:[%s1628_s13 + $0xf4] ss:$20 sps:$4 sm:$0xff]   ;;  %v1480_v0 = vld [vmem:[%s1628_s13 + $0x11c] ss:$20 sps:$4 sm:$0xff]   ;;  %v1482_v1 = vld [vmem:[%s1628_s13 + $0x124] ss:$20 sps:$4 sm:$0xff]  }
  0x1c   : > { %1232 = vmatpush3.bf16.msra.mxu0 %v1424_v22  ;;  %v1485_v3 = vld [vmem:[%s1628_s13 + $0x120] ss:$20 sps:$4 sm:$0xff]   ;;  %v1486_v4 = vld [vmem:[%s1628_s13 + $0x10] ss:$20 sps:$4 sm:$0xff]   ;;  %v1488_v6 = vld [vmem:[%s1628_s13 + $0x38] ss:$20 sps:$4 sm:$0xff]  }
  0x1d   : > { %1296 = vmatpush3.bf16.msra.mxu1 %v1425_v23  ;;  %1233 = vmatprep.subr.bf16.mxu0 %v1426_v24  ;;  %v1487_v5 = vld [vmem:[%s1628_s13 + $0xb0] ss:$20 sps:$4 sm:$0xff]   ;;  %v1489_v7 = vld [vmem:[%s1628_s13 + $0xd8] ss:$20 sps:$4 sm:$0xff]   ;;  %v1490_v8 = vld [vmem:[%s1628_s13 + $0x60] ss:$20 sps:$4 sm:$0xff]  }
  0x1e   : > { %1297 = vmatprep.subr.bf16.mxu1 %v1427_v25  ;;  %v1491_v9 = vld [vmem:[%s1628_s13 + $0x100] ss:$20 sps:$4 sm:$0xff]   ;;  %v1492_v10 = vld [vmem:[%s1628_s13 + $0x88] ss:$20 sps:$4 sm:$0xff]  }
  0x1f   : > { %v1493_v11 = vld [vmem:[%s1628_s13 + $0x128] ss:$20 sps:$4 sm:$0xff]   ;;  %v1699_v14 = vld [vmem:[%s1774_s2] ss:$0 sm:$0xff] }
  0x20   : > { %1234 = vmatpush3.bf16.msra.mxu0 %v1428_v26 }
  0x21   : > { %1298 = vmatpush3.bf16.msra.mxu1 %v1429_v27  ;;  %1235 = vmatprep.subr.bf16.mxu0 %v1430_v28 }
  0x22   : > { %1299 = vmatprep.subr.bf16.mxu1 %v1431_v29 }
  0x24   : > { %1236 = vmatpush3.bf16.msra.mxu0 %v1432_v30 }
  0x25   : > { %1300 = vmatpush3.bf16.msra.mxu1 %v1433_v31  ;;  %1361 = vmatprep.subr.bf16.mxu0 %v1440_v36 }
  0x26   : > { %1385 = vmatprep.subr.bf16.mxu1 %v1440_v36 }
  0x27   : > { %779 = vmatmul.mubr.bf16.vlgmr.msra.gmra.mrb[0].mxu0 %v1434_v32 }
  0x28   : > { %876 = vmatmul.mubr.bf16.vlgmr.msra.gmra.mrb[0].mxu1 %v1437_v34  ;;  %1362 = vmatpush3.bf16.msra.mxu0 %v1440_v36 }
  0x29   : > { %1389 = vmatpush3.bf16.msra.mxu1 %v1440_v36  ;;  %786 = vmatprep.mubr.bf16.mxu0 %v1441_v37 }
  0x2a   : > { %883 = vmatprep.mubr.bf16.mxu1 %v1443_v38  ;;  %1363 = vmatprep.subr.bf16.mxu0 %v1453_v42 }
  0x2b   : > { %1386 = vmatprep.subr.bf16.mxu1 %v1453_v42 }
  0x2c   : > { %1364 = vmatpush3.bf16.msra.mxu0 %v1453_v42 }
  0x2d   : > { %1390 = vmatpush3.bf16.msra.mxu1 %v1453_v42  ;;  %1365 = vmatprep.subr.bf16.mxu0 %v1466_v46 }
  0x2e   : > { %1387 = vmatprep.subr.bf16.mxu1 %v1466_v46 }
  0x2f   : > { %787 = vmatmul.mubr.bf16.gmra.mrb[4].mxu0 %v1445_v39 }
  0x30   : > { %884 = vmatmul.mubr.bf16.gmra.mrb[4].mxu1 %v1446_v40  ;;  %794 = vmatprep.mubr.bf16.mxu0 %v1447_v41 }
  0x31   : > { %891 = vmatprep.mubr.bf16.mxu1 %v1449_v43  ;;  %1366 = vmatpush3.bf16.msra.mxu0 %v1466_v46 }
  0x32   : > { %1391 = vmatpush3.bf16.msra.mxu1 %v1466_v46  ;;  %1367 = vmatprep.subr.bf16.mxu0 %v1479_v49 }
  0x33   : > { %1388 = vmatprep.subr.bf16.mxu1 %v1479_v49 }
  0x35   : > { %1368 = vmatpush3.bf16.msra.mxu0 %v1479_v49 }
  0x36   : > { %1392 = vmatpush3.bf16.msra.mxu1 %v1479_v49 }
  0x37   : > { %795 = vmatmul.mubr.bf16.gmra.mrb[8].mxu0 %v1451_v44 }
  0x38   : > { %892 = vmatmul.mubr.bf16.gmra.mrb[8].mxu1 %v1452_v45  ;;  %802 = vmatprep.mubr.bf16.mxu0 %v1454_v47 }
  0x39   : > { %899 = vmatprep.mubr.bf16.mxu1 %v1456_v48 }
  0x3f   : > { %803 = vmatmul.mubr.bf16.gmra.mrb[12].mxu0 %v1458_v50 }
  0x40   : > { %900 = vmatmul.mubr.bf16.gmra.mrb[12].mxu1 %v1459_v51  ;;  %810 = vmatprep.mubr.bf16.mxu0 %v1460_v52 }
  0x41   : > { %907 = vmatprep.mubr.bf16.mxu1 %v1462_v53 }
  0x47   : > { %811 = vmatmul.mubr.bf16.gmra.mrb[16].mxu0 %v1464_v54 }
  0x48   : > { %908 = vmatmul.mubr.bf16.gmra.mrb[16].mxu1 %v1465_v55  ;;  %818 = vmatprep.mubr.bf16.mxu0 %v1467_v56 }
  0x49   : > { %915 = vmatprep.mubr.bf16.mxu1 %v1469_v57 }
  0x4f   : > { %819 = vmatmul.mubr.bf16.gmra.mrb[20].mxu0 %v1471_v58 }
  0x50   : > { %916 = vmatmul.mubr.bf16.gmra.mrb[20].mxu1 %v1472_v59  ;;  %826 = vmatprep.mubr.bf16.mxu0 %v1473_v60 }
  0x51   : > { %923 = vmatprep.mubr.bf16.mxu1 %v1475_v61 }
  0x57   : > { %827 = vmatmul.mubr.bf16.gmra.mrb[24].mxu0 %v1477_v62 }
  0x58   : > { %924 = vmatmul.mubr.bf16.gmra.mrb[24].mxu1 %v1478_v63  ;;  %834 = vmatprep.mubr.bf16.mxu0 %v1480_v0 }
  0x59   : > { %931 = vmatprep.mubr.bf16.mxu1 %v1482_v1 }
  0x5f   : > { %835 = vmatmul.mubr.bf16.gmra.mrb[28].mxu0 %v1484_v2 }
  0x60   : > { %932 = vmatmul.mubr.bf16.gmra.mrb[28].mxu1 %v1485_v3  ;;  %1369 = vmatprep.mubr.msk.bf16.mxu0 %vm721_vm0, %v1486_v4 }
  0x61   : > { %1377 = vmatprep.mubr.msk.bf16.mxu1 %vm721_vm0, %v1487_v5 }
  0x67   : > { %1370 = vmatmul.mubr.msk.bf16.vlgmr.msra.gmra.mrb[32].mxu0 %vm721_vm0, %v1488_v6 }
  0x68   : > { %1378 = vmatmul.mubr.msk.bf16.vlgmr.msra.gmra.mrb[32].mxu1 %vm721_vm0, %v1489_v7  ;;  %1373 = vmatprep.mubr.msk.bf16.mxu0 %vm721_vm0, %v1490_v8 }
  0x69   : > { %1381 = vmatprep.mubr.msk.bf16.mxu1 %vm721_vm0, %v1491_v9 }
  0x6f   : > { %1374 = vmatmul.mubr.msk.bf16.gmra.mrb[36].mxu0 %vm721_vm0, %v1492_v10 }
  0x70   : > { %1382 = vmatmul.mubr.msk.bf16.gmra.mrb[36].mxu1 %vm721_vm0, %v1493_v11 }
  0xfa   : > { %v1237_v12 = vpop.f32.mrb[0].mxu0 }
  0xfb   : > { %v1301_v13 = vpop.f32.mrb[0].mxu1  ;;  %v1238_v15 = vpop.f32.mrb[1].mxu0 }
  0xfc   : > { %v1239_v16 = vadd.f32 %v1238_v15, %v1237_v12  ;;  %v1302_v17 = vpop.f32.mrb[1].mxu1  ;;  %v1240_v18 = vpop.f32.mrb[2].mxu0 }
  0xfd   : > { %v1303_v19 = vadd.f32 %v1302_v17, %v1301_v13  ;;  %v1304_v20 = vpop.f32.mrb[2].mxu1  ;;  %v1241_v21 = vpop.f32.mrb[3].mxu0 }
  0xfe   : > { %v781_v22 = vadd.f32 %v1239_v16, %v1699_v14  ;;  %v1242_v23 = vadd.f32 %v1241_v21, %v1240_v18  ;;  %v1305_v24 = vpop.f32.mrb[3].mxu1 }
  0xff   : > { %v1306_v25 = vadd.f32 %v1305_v24, %v1304_v20 }
 0x100   : > { %v784_v26 = vadd.f32 %v1242_v23, %v1699_v14  ;;  %v1703_v27 = vadd.f32 %v1303_v19, %v781_v22 }
 0x102   : > { %v1243_v28 = vpop.f32.mrb[4].mxu0  ;;  %v1705_v29 = vadd.f32 %v1306_v25, %v784_v26 }
 0x103   : > { %v1307_v30 = vpop.f32.mrb[4].mxu1  ;;  %v1244_v31 = vpop.f32.mrb[5].mxu0 }
 0x104   : > { %v1245_v32 = vadd.f32 %v1244_v31, %v1243_v28  ;;  %v1308_v33 = vpop.f32.mrb[5].mxu1  ;;  %v1246_v34 = vpop.f32.mrb[6].mxu0 }
 0x105   : > { %v1309_v35 = vadd.f32 %v1308_v33, %v1307_v30  ;;  %v1310_v36 = vpop.f32.mrb[6].mxu1  ;;  %v1247_v37 = vpop.f32.mrb[7].mxu0 }
 0x106   : > { %v789_v38 = vadd.f32 %v1245_v32, %v1699_v14  ;;  %v1248_v39 = vadd.f32 %v1247_v37, %v1246_v34  ;;  %v1311_v40 = vpop.f32.mrb[7].mxu1 }
 0x107   : > { %v1312_v41 = vadd.f32 %v1311_v40, %v1310_v36 }
 0x108   : > { %v792_v42 = vadd.f32 %v1248_v39, %v1699_v14  ;;  %v1709_v43 = vadd.f32 %v1309_v35, %v789_v38 }
 0x10a   : > { %v1249_v44 = vpop.f32.mrb[8].mxu0  ;;  %v1711_v45 = vadd.f32 %v1312_v41, %v792_v42 }
 0x10b   : > { %v1313_v46 = vpop.f32.mrb[8].mxu1  ;;  %v1250_v47 = vpop.f32.mrb[9].mxu0 }
 0x10c   : > { %v1251_v48 = vadd.f32 %v1250_v47, %v1249_v44  ;;  %v1314_v49 = vpop.f32.mrb[9].mxu1  ;;  %v1252_v50 = vpop.f32.mrb[10].mxu0 }
 0x10d   : > { %v1315_v51 = vadd.f32 %v1314_v49, %v1313_v46  ;;  %v1316_v52 = vpop.f32.mrb[10].mxu1  ;;  %v1253_v53 = vpop.f32.mrb[11].mxu0 }
 0x10e   : > { %v797_v54 = vadd.f32 %v1251_v48, %v1699_v14  ;;  %v1254_v55 = vadd.f32 %v1253_v53, %v1252_v50  ;;  %v1317_v56 = vpop.f32.mrb[11].mxu1 }
 0x10f   : > { %v1318_v57 = vadd.f32 %v1317_v56, %v1316_v52 }
 0x110   : > { %v800_v58 = vadd.f32 %v1254_v55, %v1699_v14  ;;  %v1715_v59 = vadd.f32 %v1315_v51, %v797_v54 }
 0x112   : > { %v1255_v60 = vpop.f32.mrb[12].mxu0  ;;  %v1717_v61 = vadd.f32 %v1318_v57, %v800_v58 }
 0x113   : > { %v1319_v62 = vpop.f32.mrb[12].mxu1  ;;  %v1256_v63 = vpop.f32.mrb[13].mxu0 }
 0x114   : > { %v1257_v0 = vadd.f32 %v1256_v63, %v1255_v60  ;;  %v1320_v1 = vpop.f32.mrb[13].mxu1  ;;  %v1258_v2 = vpop.f32.mrb[14].mxu0 }
 0x115   : > { %v1321_v3 = vadd.f32 %v1320_v1, %v1319_v62  ;;  %v1322_v4 = vpop.f32.mrb[14].mxu1  ;;  %v1259_v5 = vpop.f32.mrb[15].mxu0 }
 0x116   : > { %v805_v6 = vadd.f32 %v1257_v0, %v1699_v14  ;;  %v1260_v7 = vadd.f32 %v1259_v5, %v1258_v2  ;;  %v1323_v8 = vpop.f32.mrb[15].mxu1 }
 0x117   : > { %v1324_v9 = vadd.f32 %v1323_v8, %v1322_v4 }
 0x118   : > { %v808_v10 = vadd.f32 %v1260_v7, %v1699_v14  ;;  %v1721_v11 = vadd.f32 %v1321_v3, %v805_v6 }
 0x11a   : > { %v1261_v12 = vpop.f32.mrb[16].mxu0  ;;  %v1723_v13 = vadd.f32 %v1324_v9, %v808_v10 }
 0x11b   : > { %v1325_v15 = vpop.f32.mrb[16].mxu1  ;;  %v1262_v16 = vpop.f32.mrb[17].mxu0 }
 0x11c   : > { %v1263_v17 = vadd.f32 %v1262_v16, %v1261_v12  ;;  %v1326_v18 = vpop.f32.mrb[17].mxu1  ;;  %v1264_v19 = vpop.f32.mrb[18].mxu0 }
 0x11d   : > { %v1327_v20 = vadd.f32 %v1326_v18, %v1325_v15  ;;  %v1328_v21 = vpop.f32.mrb[18].mxu1  ;;  %v1265_v22 = vpop.f32.mrb[19].mxu0 }
 0x11e   : > { %v813_v23 = vadd.f32 %v1263_v17, %v1699_v14  ;;  %v1266_v24 = vadd.f32 %v1265_v22, %v1264_v19  ;;  %v1329_v25 = vpop.f32.mrb[19].mxu1 }
 0x11f   : > { %v1330_v26 = vadd.f32 %v1329_v25, %v1328_v21 }
 0x120   : > { %v816_v28 = vadd.f32 %v1266_v24, %v1699_v14  ;;  %v910_v30 = vadd.f32 %v1327_v20, %v813_v23 }
 0x122   : > { %v1267_v31 = vpop.f32.mrb[20].mxu0  ;;  %v1727_v32 = vadd.f32 %v1330_v26, %v816_v28 }
 0x123   : > { %v1331_v33 = vpop.f32.mrb[20].mxu1  ;;  %v1268_v34 = vpop.f32.mrb[21].mxu0 }
 0x124   : > { %v1269_v35 = vadd.f32 %v1268_v34, %v1267_v31  ;;  %v1332_v36 = vpop.f32.mrb[21].mxu1  ;;  %v1270_v37 = vpop.f32.mrb[22].mxu0 }
 0x125   : > { %v1333_v38 = vadd.f32 %v1332_v36, %v1331_v33  ;;  %v1334_v39 = vpop.f32.mrb[22].mxu1  ;;  %v1271_v40 = vpop.f32.mrb[23].mxu0 }
 0x126   : > { %v821_v41 = vadd.f32 %v1269_v35, %v1699_v14  ;;  %v1272_v42 = vadd.f32 %v1271_v40, %v1270_v37  ;;  %v1335_v44 = vpop.f32.mrb[23].mxu1 }
 0x127   : > { %v1336_v46 = vadd.f32 %v1335_v44, %v1334_v39 }
 0x128   : > { %v824_v47 = vadd.f32 %v1272_v42, %v1699_v14  ;;  %v918_v48 = vadd.f32 %v1333_v38, %v821_v41 }
 0x12a   : > { %v1273_v49 = vpop.f32.mrb[24].mxu0  ;;  %v921_v50 = vadd.f32 %v1336_v46, %v824_v47 }
 0x12b   : > { %v1337_v51 = vpop.f32.mrb[24].mxu1  ;;  %v1274_v52 = vpop.f32.mrb[25].mxu0 }
 0x12c   : > { %v1275_v53 = vadd.f32 %v1274_v52, %v1273_v49  ;;  %v1338_v54 = vpop.f32.mrb[25].mxu1  ;;  %v1276_v55 = vpop.f32.mrb[26].mxu0 }
 0x12d   : > { %v1339_v56 = vadd.f32 %v1338_v54, %v1337_v51  ;;  %v1340_v57 = vpop.f32.mrb[26].mxu1  ;;  %v1277_v58 = vpop.f32.mrb[27].mxu0 }
 0x12e   : > { %v829_v60 = vadd.f32 %v1275_v53, %v1699_v14  ;;  %v1278_v62 = vadd.f32 %v1277_v58, %v1276_v55  ;;  %v1341_v63 = vpop.f32.mrb[27].mxu1 }
 0x12f   : > { %v1342_v0 = vadd.f32 %v1341_v63, %v1340_v57 }
 0x130   : > { %v832_v1 = vadd.f32 %v1278_v62, %v1699_v14  ;;  %v926_v2 = vadd.f32 %v1339_v56, %v829_v60 }
 0x132   : > { %v1279_v3 = vpop.f32.mrb[28].mxu0  ;;  %v1733_v4 = vadd.f32 %v1342_v0, %v832_v1 }
 0x133   : > { %v1343_v5 = vpop.f32.mrb[28].mxu1  ;;  %v1280_v6 = vpop.f32.mrb[29].mxu0 }
 0x134   : > { %v1281_v7 = vadd.f32 %v1280_v6, %v1279_v3  ;;  %v1344_v8 = vpop.f32.mrb[29].mxu1  ;;  %v1282_v9 = vpop.f32.mrb[30].mxu0 }
 0x135   : > { %v1345_v10 = vadd.f32 %v1344_v8, %v1343_v5  ;;  %v1346_v12 = vpop.f32.mrb[30].mxu1  ;;  %v1283_v15 = vpop.f32.mrb[31].mxu0 }
 0x136   : > { %v837_v16 = vadd.f32 %v1281_v7, %v1699_v14  ;;  %v1284_v17 = vadd.f32 %v1283_v15, %v1282_v9  ;;  %v1347_v18 = vpop.f32.mrb[31].mxu1 }
 0x137   : > { %v1348_v19 = vadd.f32 %v1347_v18, %v1346_v12 }
 0x138   : > { %v840_v20 = vadd.f32 %v1284_v17, %v1699_v14  ;;  %v934_v21 = vadd.f32 %v1345_v10, %v837_v16 }
 0x13a   : > { %v1371_v22 = vpop.f32.mrb[32].mxu0  ;;  %v937_v23 = vadd.f32 %v1348_v19, %v840_v20 }
 0x13b   : > { %v983_v24 = vadd.f32 %v1371_v22, %v1709_v43  ;;  %v1379_v25 = vpop.f32.mrb[32].mxu1  ;;  %v974_v26 = vpop.f32.mrb[33].mxu0 }
 0x13c   : > { %v1015_v28 = vadd.f32 %v1379_v25, %v918_v48  ;;  %v975_v31 = vadd.f32 %v974_v26, %v1703_v27  ;;  %v1006_v33 = vpop.f32.mrb[33].mxu1  ;;  %v1372_v14 = vpop.f32.mrb[34].mxu0 }
 0x13d   : > { %v1039_v34 = vmax.f32 %v983_v24, 0.0  ;;  %v1007_v35 = vadd.f32 %v1006_v33, %v910_v30  ;;  %v986_v36 = vadd.f32 %v1372_v14, %v1711_v45  ;;  %v1380_v43 = vpop.f32.mrb[34].mxu1  ;;  %v977_v37 = vpop.f32.mrb[35].mxu0 }
 0x13e   : > { %v1047_v38 = vmax.f32 %v1015_v28, 0.0  ;;  %v1037_v39 = vmax.f32 %v975_v31, 0.0  ;;  %v1018_v40 = vadd.f32 %v1380_v43, %v921_v50  ;;  %v978_v41 = vadd.f32 %v977_v37, %v1705_v29  ;;  %v1009_v27 = vpop.f32.mrb[35].mxu1 }
 0x13f   : > { %1055 = vst [vmem:[%s1742_s21 + $0x10] sm:$0xff] %v1039_v34  ;;  %v1045_v42 = vmax.f32 %v1007_v35, 0.0  ;;  %v1040_v44 = vmax.f32 %v986_v36, 0.0  ;;  %v1010_v30 = vadd.f32 %v1009_v27, %v1727_v32 }
 0x140   : > { %1063 = vst [vmem:[%s1742_s21 + $0x50] sm:$0xff] %v1047_v38  ;;  %1053 = vst [vmem:[%s1742_s21] sm:$0xff] %v1037_v39  ;;  %v1048_v45 = vmax.f32 %v1018_v40, 0.0  ;;  %v1038_v46 = vmax.f32 %v978_v41, 0.0 }
 0x141   : > { %1061 = vst [vmem:[%s1742_s21 + $0x40] sm:$0xff] %v1045_v42  ;;  %1056 = vst [vmem:[%s1742_s21 + $0x18] sm:$0xff] %v1040_v44  ;;  %v1046_v47 = vmax.f32 %v1010_v30, 0.0 }
 0x142   : > { %1064 = vst [vmem:[%s1742_s21 + $0x58] sm:$0xff] %v1048_v45  ;;  %1054 = vst [vmem:[%s1742_s21 + $0x8] sm:$0xff] %v1038_v46  ;;  %v1375_v48 = vpop.f32.mrb[36].mxu0 }
 0x143   : > { %1062 = vst [vmem:[%s1742_s21 + $0x48] sm:$0xff] %v1046_v47  ;;  %v999_v29 = vadd.f32 %v1375_v48, %v1721_v11  ;;  %v1383_v49 = vpop.f32.mrb[36].mxu1  ;;  %v990_v50 = vpop.f32.mrb[37].mxu0 }
 0x144   : > { %v1031_v51 = vadd.f32 %v1383_v49, %v934_v21  ;;  %v991_v52 = vadd.f32 %v990_v50, %v1715_v59  ;;  %v1022_v32 = vpop.f32.mrb[37].mxu1  ;;  %v1376_v53 = vpop.f32.mrb[38].mxu0 }
 0x145   : > { %v1043_v54 = vmax.f32 %v999_v29, 0.0  ;;  %v1023_v55 = vadd.f32 %v1022_v32, %v926_v2  ;;  %v1002_v56 = vadd.f32 %v1376_v53, %v1723_v13  ;;  %v1384_v57 = vpop.f32.mrb[38].mxu1  ;;  %v993_v58 = vpop.f32.mrb[39].mxu0 }
 0x146   : > { %v1051_v60 = vmax.f32 %v1031_v51, 0.0  ;;  %v1041_v11 = vmax.f32 %v991_v52, 0.0  ;;  %v1034_v62 = vadd.f32 %v1384_v57, %v937_v23  ;;  %v994_v59 = vadd.f32 %v993_v58, %v1717_v61  ;;  %v1025_v63 = vpop.f32.mrb[39].mxu1 }
 0x147   : > { %1059 = vst [vmem:[%s1742_s21 + $0x30] sm:$0xff] %v1043_v54  ;;  %v1049_v0 = vmax.f32 %v1023_v55, 0.0  ;;  %v1044_v1 = vmax.f32 %v1002_v56, 0.0  ;;  %v1026_v2 = vadd.f32 %v1025_v63, %v1733_v4 }
 0x148   : > { %1067 = vst [vmem:[%s1742_s21 + $0x70] sm:$0xff] %v1051_v60  ;;  %1057 = vst [vmem:[%s1742_s21 + $0x20] sm:$0xff] %v1041_v11  ;;  %v1052_v13 = vmax.f32 %v1034_v62, 0.0  ;;  %v1042_v3 = vmax.f32 %v994_v59, 0.0 }
 0x149   : > { %1065 = vst [vmem:[%s1742_s21 + $0x60] sm:$0xff] %v1049_v0  ;;  %1060 = vst [vmem:[%s1742_s21 + $0x38] sm:$0xff] %v1044_v1  ;;  %v1050_v5 = vmax.f32 %v1026_v2, 0.0 }
 0x14a   : > { %1068 = vst [vmem:[%s1742_s21 + $0x78] sm:$0xff] %v1052_v13  ;;  %1058 = vst [vmem:[%s1742_s21 + $0x28] sm:$0xff] %v1042_v3 }
 0x14b   : > { %1066 = vst [vmem:[%s1742_s21 + $0x68] sm:$0xff] %v1050_v5 }
 0x14c PF: > { %s13_s12 = sadd.s32 1, %s1500_s12  }
 0x14d   : > { %p10_p4 = scmp.ge.s32.totalorder %s13_s12, 4  }
 0x14f   :  { %12 = sbr.rel (!%p10_p4) target bundleno = 1 (0x1), region = 62 }

// kernel: maskrcnn_forward.8
= control target key start
LH: loop header
LB: loop body
LE: loop exit
PB: predicated region body
PF: predicated region fallthrough
CT: control target
= control target key end

     0   :  { %s588_s12 = smov 0   ;;  %s650_s0 = inlined_call_operand.vmem [shape: bf16[256,64], index: 0, kind: input, shape index: {}]   ;;  %s651_s1 = inlined_call_operand.vmem [shape: bf16[64,128], index: 1, kind: input, shape index: {}]   ;;  %s652_s2 = inlined_call_operand.vmem [shape: f32[1,128], index: 2, kind: input, shape index: {}]   ;;  %s653_s3 = inlined_call_operand.vmem [shape: f32[256,128], index: 3, kind: output, shape index: {}]  }
   0x1 LB: > { %s464_s13 = sadd.s32 4294967295, %s566_s12   ;;  %p468_p0 = scmp.ge.s32.totalorder %s566_s12, 1  ;;  %s566_s12 = sphi %s588_s12, %s13_s12  }
   0x2   : > { %p138_p1 = scmp.lt.s32.totalorder %s566_s12, 3 }
   0x4   : > { %p139_p2 = pnand %p468_p0, %p138_p1 }
   0x5   : > { %v548_v0 = vld [vmem:[%s651_s1] sm:$0xff] (!%p139_p2)   ;;  %s469_s16 = sshll.u32 (!%p139_p2), %s464_s13, 4  ;;  %v549_v1 = vld [vmem:[%s651_s1 + $0x8] sm:$0xff] (!%p139_p2)   ;;  %v550_v2 = vld [vmem:[%s651_s1 + $0x10] sm:$0xff] (!%p139_p2)   ;;  %vm270_vm0 = vcmask (!%p139_p2), 523264  }
   0x6   : > { %142 = sbr.rel (%p139_p2) target bundleno = 248 (0xf8), region = 32  ;;  %p163_p3 = scmp.lt.s32.totalorder (!%p139_p2), %s469_s16, 31  ;;  %508 = vmatprep.subr.bf16.mxu0 (!%p139_p2), %v548_v0  ;;  %532 = vmatprep.subr.bf16.mxu1 (!%p139_p2), %v548_v0  ;;  %v551_v3 = vld [vmem:[%s651_s1 + $0x18] sm:$0xff] (!%p139_p2)   ;;  %v473_v12 = vld [vmem:[%s652_s2] ss:$0 sm:$0xff] (!%p139_p2) }
   0x7   : > { %509 = vmatpush3.bf16.msra.mxu0 (!%p139_p2), %v548_v0  ;;  %536 = vmatpush3.bf16.msra.mxu1 (!%p139_p2), %v548_v0 }
   0x8   : > { %510 = vmatprep.subr.bf16.mxu0 (!%p139_p2), %v549_v1  ;;  %533 = vmatprep.subr.bf16.mxu1 (!%p139_p2), %v549_v1 }
   0xb   : > { %511 = vmatpush3.bf16.msra.mxu0 (!%p139_p2), %v549_v1  ;;  %537 = vmatpush3.bf16.msra.mxu1 (!%p139_p2), %v549_v1 }
   0xc   : > { %512 = vmatprep.subr.bf16.mxu0 (!%p139_p2), %v550_v2  ;;  %534 = vmatprep.subr.bf16.mxu1 (!%p139_p2), %v550_v2 }
   0xd   : > { %s655_s16 = smov (!%p163_p3, %s469_s16), 31 }
   0xe   : > { %s470_s21 = sshll.u32 %s655_s16, 2  ;;  %s472_s27 = sshll.u32 %s655_s16, 3 }
   0xf   : > { %s166_s26 = scalar_lea.vmem %s650_s0, %s470_s21  ;;  %513 = vmatpush3.bf16.msra.mxu0 %v550_v2  ;;  %538 = vmatpush3.bf16.msra.mxu1 %v550_v2  ;;  %s629_s5 = scalar_lea.vmem %s653_s3, %s472_s27 }
  0x10   : > { %v552_v4 = vld [vmem:[%s166_s26] sm:$0xff]   ;;  %514 = vmatprep.subr.bf16.mxu0 %v551_v3  ;;  %535 = vmatprep.subr.bf16.mxu1 %v551_v3  ;;  %v554_v6 = vld [vmem:[%s166_s26 + $0x8] sm:$0xff]   ;;  %v556_v8 = vld [vmem:[%s166_s26 + $0x10] sm:$0xff]  }
  0x11   : > { %v553_v5 = vld [vmem:[%s166_s26 + $0x20] sm:$0xff]   ;;  %516 = vmatprep.mubr.msk.bf16.mxu0 %vm270_vm0, %v552_v4  ;;  %v555_v7 = vld [vmem:[%s166_s26 + $0x28] sm:$0xff]   ;;  %v557_v9 = vld [vmem:[%s166_s26 + $0x30] sm:$0xff]  }
  0x12   : > { %524 = vmatprep.mubr.msk.bf16.mxu1 %vm270_vm0, %v553_v5  ;;  %v558_v10 = vld [vmem:[%s166_s26 + $0x18] sm:$0xff]  }
  0x13   : > { %515 = vmatpush3.bf16.msra.mxu0 %v551_v3  ;;  %539 = vmatpush3.bf16.msra.mxu1 %v551_v3  ;;  %v559_v11 = vld [vmem:[%s166_s26 + $0x38] sm:$0xff]  }
  0x16   : > { %517 = vmatmul.mubr.msk.bf16.vlgmr.msra.gmra.mrb[0].mxu0 %vm270_vm0, %v554_v6  ;;  %525 = vmatmul.mubr.msk.bf16.vlgmr.msra.gmra.mrb[0].mxu1 %vm270_vm0, %v555_v7 }
  0x17   : > { %520 = vmatprep.mubr.msk.bf16.mxu0 %vm270_vm0, %v556_v8  ;;  %528 = vmatprep.mubr.msk.bf16.mxu1 %vm270_vm0, %v557_v9 }
  0x1e   : > { %521 = vmatmul.mubr.msk.bf16.gmra.mrb[4].mxu0 %vm270_vm0, %v558_v10  ;;  %529 = vmatmul.mubr.msk.bf16.gmra.mrb[4].mxu1 %vm270_vm0, %v559_v11 }
  0xe9   : > { %v518_v13 = vpop.f32.mrb[0].mxu0  ;;  %v526_v14 = vpop.f32.mrb[0].mxu1 }
  0xea   : > { %v338_v15 = vadd.f32 %v518_v13, %v473_v12  ;;  %v370_v16 = vadd.f32 %v526_v14, %v473_v12  ;;  %v329_v17 = vpop.f32.mrb[1].mxu0  ;;  %v361_v18 = vpop.f32.mrb[1].mxu1 }
  0xeb   : > { %v330_v19 = vadd.f32 %v473_v12, %v329_v17  ;;  %v362_v20 = vadd.f32 %v473_v12, %v361_v18  ;;  %v519_v21 = vpop.f32.mrb[2].mxu0  ;;  %v527_v22 = vpop.f32.mrb[2].mxu1 }
  0xec   : > { %394 = vst [vmem:[%s629_s5 + $0x10] sm:$0xff] %v338_v15  ;;  %402 = vst [vmem:[%s629_s5 + $0x50] sm:$0xff] %v370_v16  ;;  %v341_v23 = vadd.f32 %v519_v21, %v473_v12  ;;  %v373_v24 = vadd.f32 %v527_v22, %v473_v12  ;;  %v332_v25 = vpop.f32.mrb[3].mxu0  ;;  %v364_v26 = vpop.f32.mrb[3].mxu1 }
  0xed   : > { %392 = vst [vmem:[%s629_s5] sm:$0xff] %v330_v19  ;;  %400 = vst [vmem:[%s629_s5 + $0x40] sm:$0xff] %v362_v20  ;;  %v333_v27 = vadd.f32 %v473_v12, %v332_v25  ;;  %v365_v28 = vadd.f32 %v473_v12, %v364_v26 }
  0xee   : > { %395 = vst [vmem:[%s629_s5 + $0x18] sm:$0xff] %v341_v23  ;;  %403 = vst [vmem:[%s629_s5 + $0x58] sm:$0xff] %v373_v24 }
  0xef   : > { %393 = vst [vmem:[%s629_s5 + $0x8] sm:$0xff] %v333_v27  ;;  %401 = vst [vmem:[%s629_s5 + $0x48] sm:$0xff] %v365_v28 }
  0xf1   : > { %v522_v29 = vpop.f32.mrb[4].mxu0  ;;  %v530_v30 = vpop.f32.mrb[4].mxu1 }
  0xf2   : > { %v354_v31 = vadd.f32 %v522_v29, %v473_v12  ;;  %v386_v32 = vadd.f32 %v530_v30, %v473_v12  ;;  %v345_v33 = vpop.f32.mrb[5].mxu0  ;;  %v377_v34 = vpop.f32.mrb[5].mxu1 }
  0xf3   : > { %v346_v35 = vadd.f32 %v473_v12, %v345_v33  ;;  %v378_v36 = vadd.f32 %v473_v12, %v377_v34  ;;  %v523_v37 = vpop.f32.mrb[6].mxu0  ;;  %v531_v38 = vpop.f32.mrb[6].mxu1 }
  0xf4   : > { %398 = vst [vmem:[%s629_s5 + $0x30] sm:$0xff] %v354_v31  ;;  %406 = vst [vmem:[%s629_s5 + $0x70] sm:$0xff] %v386_v32  ;;  %v357_v39 = vadd.f32 %v523_v37, %v473_v12  ;;  %v389_v40 = vadd.f32 %v531_v38, %v473_v12  ;;  %v348_v41 = vpop.f32.mrb[7].mxu0  ;;  %v380_v42 = vpop.f32.mrb[7].mxu1 }
  0xf5   : > { %396 = vst [vmem:[%s629_s5 + $0x20] sm:$0xff] %v346_v35  ;;  %404 = vst [vmem:[%s629_s5 + $0x60] sm:$0xff] %v378_v36  ;;  %v349_v43 = vadd.f32 %v473_v12, %v348_v41  ;;  %v381_v44 = vadd.f32 %v473_v12, %v380_v42 }
  0xf6   : > { %399 = vst [vmem:[%s629_s5 + $0x38] sm:$0xff] %v357_v39  ;;  %407 = vst [vmem:[%s629_s5 + $0x78] sm:$0xff] %v389_v40 }
  0xf7   : > { %397 = vst [vmem:[%s629_s5 + $0x28] sm:$0xff] %v349_v43  ;;  %405 = vst [vmem:[%s629_s5 + $0x68] sm:$0xff] %v381_v44 }
  0xf8 PF: > { %s13_s12 = sadd.s32 1, %s566_s12  }
  0xf9   : > { %p10_p4 = scmp.ge.s32.totalorder %s13_s12, 4  }
  0xfb   :  { %12 = sbr.rel (!%p10_p4) target bundleno = 1 (0x1), region = 62 }

// kernel: ge.15
= control target key start
LH: loop header
LB: loop body
LE: loop exit
PB: predicated region body
PF: predicated region fallthrough
CT: control target
= control target key end

     0   :  { %s7_s6 = smov 3  ;;  %s21_s9 = smov 3  ;;  %vm4_vm0 = vcmask 130048   ;;  %vm11_vm1 = vcmask 1048448   ;;  %vm18_vm2 = vcmask 917248   ;;  %vm25_vm3 = vcmask 786048   ;;  %s119_s0 = inlined_call_operand.vmem [shape: f32[16,16], index: 0, kind: input, shape index: {}]   ;;  %s120_s1 = inlined_call_operand.vmem [shape: f32[256], index: 1, kind: output, shape index: {}]  }
   0x1   :  { %v61_v0 = vld [vmem:[%s119_s0 + $0x7] ss:$8 sm:%s7_s6]   ;;  %s75_s10 = smov 112   ;;  %v63_v1 = vld [vmem:[%s119_s0 + $0x5] ss:$8 sm:%s21_s9]   ;;  %s14_s13 = smov 3 }
   0x2   :  { %9 = vrot.lane.b32.xlu0 %v61_v0, %s75_s10  ;;  %s76_s14 = smov 80   ;;  %v62_v2 = vld [vmem:[%s119_s0 + $0x6] ss:$8 sm:%s14_s13]   ;;  %s28_s17 = smov 3  ;;  %vm32_vm4 = vcmask 654848   ;;  %vm39_vm5 = vcmask 523648  }
   0x3   :  { %23 = vrot.lane.b32.xlu1 %v63_v1, %s76_s14  ;;  %v64_v3 = vld [vmem:[%s119_s0 + $0x4] ss:$8 sm:%s28_s17]   ;;  %s35_s20 = smov 3  ;;  %s42_s21 = smov 3  ;;  %vm46_vm6 = vcmask 392448   ;;  %vm53_vm7 = vcmask 261248  }
   0x4   :  { %s77_s22 = smov 96   ;;  %s78_s23 = smov 64   ;;  %v65_v4 = vld [vmem:[%s119_s0 + $0x3] ss:$8 sm:%s35_s20]   ;;  %v66_v5 = vld [vmem:[%s119_s0 + $0x2] ss:$8 sm:%s42_s21]  }
   0x5   :  { %s2_s26 = smov 3  ;;  %s49_s29 = smov 3 }
   0x6   :  { %16 = vrot.lane.b32.xlu0 %v62_v2, %s77_s22  ;;  %v3_v6 = vld [vmem:[%s119_s0] ss:$8 sm:%s2_s26]   ;;  %s79_s3 = smov 48   ;;  %s80_s4 = smov 32  }
   0x7   :  { %30 = vrot.lane.b32.xlu1 %v64_v3, %s78_s23  ;;  %5 = vst.msk [vmem:[#allocation0] sm:$0x3] %vm4_vm0, %v3_v6   ;;  %v67_v7 = vld [vmem:[%s119_s0 + $0x1] ss:$8 sm:%s49_s29]   ;;  %s81_s0 = smov 16  }
   0xa   :  { %37 = vrot.lane.b32.xlu0 %v65_v4, %s79_s3 }
   0xb   :  { %44 = vrot.lane.b32.xlu1 %v66_v5, %s80_s4 }
   0xe   :  { %51 = vrot.lane.b32.xlu0 %v67_v7, %s81_s0 }
  0x74   :  { %v10_v8 = vpop.permute.xlu0 %9  }
  0x75   :  { %12 = vst.msk [vmem:[#allocation0] sm:$0x3] %vm11_vm1, %v10_v8   ;;  %v24_v9 = vpop.permute.xlu1 %23  }
  0x78   :  { %v17_v10 = vpop.permute.xlu0 %16  }
  0x79   :  { %19 = vst.msk [vmem:[#allocation0] sm:$0x3] %vm18_vm2, %v17_v10   ;;  %v31_v11 = vpop.permute.xlu1 %30  }
  0x7a   :  { %26 = vst.msk [vmem:[#allocation0] sm:$0x3] %vm25_vm3, %v24_v9  }
  0x7b   :  { %33 = vst.msk [vmem:[#allocation0] sm:$0x3] %vm32_vm4, %v31_v11  }
  0x7c   :  { %v38_v12 = vpop.permute.xlu0 %37  }
  0x7d   :  { %40 = vst.msk [vmem:[#allocation0] sm:$0x3] %vm39_vm5, %v38_v12   ;;  %v45_v13 = vpop.permute.xlu1 %44  }
  0x7e   :  { %47 = vst.msk [vmem:[#allocation0] sm:$0x3] %vm46_vm6, %v45_v13  }
  0x80   :  { %v52_v14 = vpop.permute.xlu0 %51  }
  0x81   :  { %54 = vst.msk [vmem:[#allocation0] sm:$0x3] %vm53_vm7, %v52_v14  }
  0x88   :  { %v58_v15 = vld [vmem:[#allocation0] sm:$0x3] }
  0x89   :  { %60 = vst [vmem:[%s120_s1] sm:$0x3] %v58_v15 }

// kernel: maskrcnn_forward.9
= control target key start
LH: loop header
LB: loop body
LE: loop exit
PB: predicated region body
PF: predicated region fallthrough
CT: control target
= control target key end

     0   :  { %s1775_s17 = smov 0   ;;  %s2088_s0 = inlined_call_operand.vmem [shape: bf16[16,256], index: 0, kind: input, shape index: {}]   ;;  %s2089_s1 = inlined_call_operand.vmem [shape: bf16[256,64], index: 1, kind: input, shape index: {}]   ;;  %s2090_s2 = inlined_call_operand.vmem [shape: bf16[64,128], index: 2, kind: input, shape index: {}]   ;;  %s2091_s3 = inlined_call_operand.vmem [shape: f32[1,128], index: 3, kind: input, shape index: {}]   ;;  %s2092_s4 = inlined_call_operand.vmem [shape: bf16[128,128], index: 4, kind: input, shape index: {}]   ;;  %s2093_s5 = inlined_call_operand.vmem [shape: f32[1,128], index: 5, kind: input, shape index: {}]   ;;  %s2094_s6 = inlined_call_operand.vmem [shape: bf16[128,128], index: 6, kind: input, shape index: {}]   ;;  %s2095_s7 = inlined_call_operand.vmem [shape: f32[1,128], index: 7, kind: input, shape index: {}]   ;;  %s2096_s8 = inlined_call_operand.vmem [shape: bf16[64,1024], index: 8, kind: input, shape index: {}]   ;;  %s2097_s9 = inlined_call_operand.vmem [shape: f32[1,1024], index: 9, kind: input, shape index: {}]   ;;  %s2098_s10 = inlined_call_operand.vmem [shape: f32[16,128], index: 10, kind: output, shape index: {0}]   ;;  %s2099_s11 = inlined_call_operand.vmem [shape: f32[16,1024], index: 11, kind: output, shape index: {1}]  }
   0x1 LB: > { %s1426_s18 = sadd.s32 4294967295, %s1710_s17   ;;  %p1430_p0 = scmp.ge.s32.totalorder %s1710_s17, 1  ;;  %s1710_s17 = sphi %s1775_s17, %s22_s17  }
   0x2   : > { %p340_p1 = scmp.lt.s32.totalorder %s1710_s17, 3 }
   0x4   : > { %p341_p2 = pnand %p1430_p0, %p340_p1 }
   0x5   : > { %v1634_v0 = vld [vmem:[%s2089_s1 + $0x40] sm:$0xff] (!%p341_p2)   ;;  %v1636_v2 = vld [vmem:[%s2089_s1 + $0x48] sm:$0xff] (!%p341_p2)   ;;  %p384_p3 = scmp.lt.s32.totalorder (!%p341_p2), %s1426_s18, 1  ;;  %v1712_v3 = vmov (!%p341_p2), 0.0   ;;  %v1638_v5 = vld [vmem:[%s2089_s1 + $0x50] sm:$0xff] (!%p341_p2)   ;;  %vm1713_vm0 = vmmov (!%p341_p2), 0  }
   0x6   : > { %344 = sbr.rel (%p341_p2) target bundleno = 965 (0x3c5), region = 60  ;;  %v1635_v1 = vld [vmem:[%s2089_s1] sm:$0xff] (!%p341_p2)   ;;  %1526 = vmatprep.subr.bf16.mxu0 (!%p341_p2), %v1634_v0  ;;  %1571 = vmatprep.subr.bf16.mxu1 (!%p341_p2), %v1712_v3  ;;  %v1637_v4 = vld [vmem:[%s2089_s1 + $0x8] sm:$0xff] (!%p341_p2)   ;;  %v1639_v6 = vld [vmem:[%s2089_s1 + $0x10] sm:$0xff] (!%p341_p2)   ;;  %vm615_vm1 = vcmask (!%p341_p2), 523264   ;;  %v1714_v63 = vmov (!%p341_p2), 0  }
   0x7   : > { %1527 = vmatpush3.bf16.msra.mxu0 (!%p341_p2), %v1635_v1  ;;  %v1640_v7 = vld [vmem:[%s2089_s1 + $0x58] sm:$0xff] (!%p341_p2)   ;;  %v1642_v9 = vld [vmem:[%s2089_s1 + $0x60] sm:$0xff] (!%p341_p2)   ;;  %v1644_v11 = vld [vmem:[%s2089_s1 + $0x68] sm:$0xff] (!%p341_p2)   ;;  %1579 = vmatprep.mubr.msk.bf16.mxu1 (!%p341_p2), %vm1713_vm0, %v1712_v3 }
   0x8   : > { %1528 = vmatprep.subr.bf16.mxu0 (!%p341_p2), %v1636_v2  ;;  %v1641_v8 = vld [vmem:[%s2089_s1 + $0x18] sm:$0xff] (!%p341_p2)   ;;  %v1643_v10 = vld [vmem:[%s2089_s1 + $0x20] sm:$0xff] (!%p341_p2)   ;;  %v1645_v13 = vld [vmem:[%s2089_s1 + $0x28] sm:$0xff] (!%p341_p2)  }
   0x9   : > { %v1652_v15 = vld [vmem:[%s2090_s2] sm:$0xff] (!%p341_p2)   ;;  %v1646_v16 = vld [vmem:[%s2089_s1 + $0x70] sm:$0xff] (!%p341_p2)   ;;  %v1653_v17 = vld [vmem:[%s2090_s2 + $0x8] sm:$0xff] (!%p341_p2)  }
   0xa   : > { %1572 = vmatpush3.bf16.msra.mxu1 (!%p341_p2), %v1652_v15  ;;  %v1647_v18 = vld [vmem:[%s2089_s1 + $0x30] sm:$0xff] (!%p341_p2)   ;;  %v1648_v19 = vld [vmem:[%s2089_s1 + $0x78] sm:$0xff] (!%p341_p2)   ;;  %v1656_v29 = vld [vmem:[%s2092_s4] sm:$0xff] (!%p341_p2)  }
   0xb   : > { %1529 = vmatpush3.bf16.msra.mxu0 (!%p341_p2), %v1637_v4  ;;  %1573 = vmatprep.subr.bf16.mxu1 (!%p341_p2), %v1712_v3  ;;  %v1654_v20 = vld [vmem:[%s2090_s2 + $0x10] sm:$0xff] (!%p341_p2)   ;;  %v1649_v21 = vld [vmem:[%s2089_s1 + $0x38] sm:$0xff] (!%p341_p2)   ;;  %v1657_v31 = vld [vmem:[%s2092_s4 + $0x8] sm:$0xff] (!%p341_p2)  }
   0xc   : > { %1530 = vmatprep.subr.bf16.mxu0 (!%p341_p2), %v1638_v5  ;;  %v1655_v23 = vld [vmem:[%s2090_s2 + $0x18] sm:$0xff] (!%p341_p2)   ;;  %v1658_v32 = vld [vmem:[%s2092_s4 + $0x10] sm:$0xff] (!%p341_p2)   ;;  %v1660_v34 = vld [vmem:[%s2092_s4 + $0x20] sm:$0xff] (!%p341_p2)  }
   0xd   : > { %s2101_s18 = smov (!%p384_p3, %s1426_s18), 1  ;;  %v1659_v33 = vld [vmem:[%s2092_s4 + $0x18] sm:$0xff]   ;;  %v1661_v35 = vld [vmem:[%s2092_s4 + $0x28] sm:$0xff]   ;;  %v1662_v36 = vld [vmem:[%s2092_s4 + $0x30] sm:$0xff]  }
   0xe   : > { %s1524_s14 = sshll.u32 %s2101_s18, 3  ;;  %1574 = vmatpush3.bf16.msra.mxu1 %v1653_v17  ;;  %v1663_v37 = vld [vmem:[%s2092_s4 + $0x38] sm:$0xff]   ;;  %v886_v38 = vld [vmem:[%s2096_s8] sm:$0xff]  ;;  %v1665_v43 = vld [vmem:[%s2094_s6 + $0x8] sm:$0xff]   ;;  %s1525_s20 = sshll.u32 %s2101_s18, 6 }
   0xf   : > { %1531 = vmatpush3.bf16.msra.mxu0 %v1639_v6  ;;  %s388_s23 = scalar_lea.vmem %s2088_s0, %s1524_s14  ;;  %1575 = vmatprep.subr.bf16.mxu1 %v1712_v3  ;;  %v890_v39 = vld [vmem:[%s2096_s8 + $0x20] sm:$0xff]  ;;  %v1666_v44 = vld [vmem:[%s2094_s6 + $0x10] sm:$0xff]   ;;  %v1667_v45 = vld [vmem:[%s2094_s6 + $0x18] sm:$0xff]   ;;  %s392_s28 = scalar_lea.vmem %s2098_s10, %s1524_s14 }
  0x10   : > { %1532 = vmatprep.subr.bf16.mxu0 %v1640_v7  ;;  %v399_v12 = vld [vmem:[%s388_s23] sm:$0xff]  ;;  %v1479_v40 = vcombine.high %v886_v38, %v890_v39  ;;  %v1478_v41 = vcombine.low %v886_v38, %v890_v39  ;;  %v1669_v47 = vld [vmem:[%s2094_s6 + $0x28] sm:$0xff]   ;;  %v1670_v48 = vld [vmem:[%s2094_s6 + $0x30] sm:$0xff]   ;;  %s2059_s23 = scalar_lea.vmem %s2099_s11, %s1525_s20 }
  0x11   : > { %v1437_v14 = vcombine.high %v399_v12, %v399_v12  ;;  %v1436_v22 = vcombine.low %v399_v12, %v399_v12  ;;  %v1664_v42 = vld [vmem:[%s2094_s6] sm:$0xff]   ;;  %v888_v5 = vld [vmem:[%s2096_s8 + $0x10] sm:$0xff] }
  0x12   : > { %1576 = vmatpush3.bf16.msra.mxu1 %v1654_v20  ;;  %v1668_v46 = vld [vmem:[%s2094_s6 + $0x20] sm:$0xff]   ;;  %v892_v6 = vld [vmem:[%s2096_s8 + $0x30] sm:$0xff] }
  0x13   : > { %1533 = vmatpush3.bf16.msra.mxu0 %v1641_v8  ;;  %567 = vmatprep.mubr.bf16.mxu0 %v1437_v14  ;;  %v1454_v49 = vld [vmem:[%s2091_s3] ss:$0 sm:$0xff]  ;;  %v1483_v8 = vcombine.high %v888_v5, %v892_v6  ;;  %v908_v14 = vld [vmem:[%s2096_s8 + $0xb0] sm:$0xff] }
  0x14   : > { %1534 = vmatprep.subr.bf16.mxu0 %v1642_v9  ;;  %1577 = vmatprep.subr.bf16.mxu1 %v1712_v3  ;;  %v894_v54 = vld [vmem:[%s2096_s8 + $0x40] sm:$0xff]  ;;  %v896_v9 = vld [vmem:[%s2096_s8 + $0x50] sm:$0xff] }
  0x15   : > { %v898_v55 = vld [vmem:[%s2096_s8 + $0x60] sm:$0xff]  ;;  %v912_v17 = vld [vmem:[%s2096_s8 + $0xd0] sm:$0xff] }
  0x16   : > { %1578 = vmatpush3.bf16.msra.mxu1 %v1655_v23  ;;  %v1487_v59 = vcombine.high %v894_v54, %v898_v55  ;;  %v902_v60 = vld [vmem:[%s2096_s8 + $0x80] sm:$0xff]  ;;  %v1486_v62 = vcombine.low %v894_v54, %v898_v55  ;;  %v887_v23 = vld [vmem:[%s2096_s8 + $0x8] sm:$0xff]  ;;  %v889_v54 = vld [vmem:[%s2096_s8 + $0x18] sm:$0xff] }
  0x17   : > { %1535 = vmatpush3.bf16.msra.mxu0 %v1643_v10  ;;  %1583 = vmatprep.subr.bf16.mxu1 %v1712_v3  ;;  %v906_v61 = vld [vmem:[%s2096_s8 + $0xa0] sm:$0xff]  ;;  %v900_v10 = vld [vmem:[%s2096_s8 + $0x70] sm:$0xff]  ;;  %v893_v55 = vld [vmem:[%s2096_s8 + $0x38] sm:$0xff] }
  0x18   : > { %1536 = vmatprep.subr.bf16.mxu0 %v1644_v11  ;;  %v1495_v0 = vcombine.high %v902_v60, %v906_v61  ;;  %v910_v1 = vld [vmem:[%s2096_s8 + $0xc0] sm:$0xff]  ;;  %v1482_v11 = vcombine.low %v888_v5, %v892_v6  ;;  %v1491_v12 = vcombine.high %v896_v9, %v900_v10  ;;  %v1490_v15 = vcombine.low %v896_v9, %v900_v10 }
  0x19   : > { %v914_v2 = vld [vmem:[%s2096_s8 + $0xe0] sm:$0xff]  ;;  %v1484_v5 = vcombine.low %v889_v54, %v893_v55 }
  0x1a   : > { %v1503_v4 = vcombine.high %v910_v1, %v914_v2  ;;  %v1502_v7 = vcombine.low %v910_v1, %v914_v2  ;;  %v901_v1 = vld [vmem:[%s2096_s8 + $0x78] sm:$0xff] }
  0x1b   : > { %1537 = vmatpush3.bf16.msra.mxu0 %v1645_v13  ;;  %v904_v13 = vld [vmem:[%s2096_s8 + $0x90] sm:$0xff] }
  0x1c   : > { %1538 = vmatprep.subr.bf16.mxu0 %v1646_v16  ;;  %v1499_v16 = vcombine.high %v904_v13, %v908_v14 }
  0x1f   : > { %1539 = vmatpush3.bf16.msra.mxu0 %v1647_v18  ;;  %v916_v18 = vld [vmem:[%s2096_s8 + $0xf0] sm:$0xff] }
  0x20   : > { %1540 = vmatprep.subr.bf16.mxu0 %v1648_v19  ;;  %v1498_v19 = vcombine.low %v904_v13, %v908_v14  ;;  %v1507_v20 = vcombine.high %v912_v17, %v916_v18  ;;  %v913_v13 = vld [vmem:[%s2096_s8 + $0xd8] sm:$0xff] }
  0x21   : > { %v917_v14 = vld [vmem:[%s2096_s8 + $0xf8] sm:$0xff] }
  0x23   : > { %1541 = vmatpush3.bf16.msra.mxu0 %v1649_v21  ;;  %v1506_v21 = vcombine.low %v912_v17, %v916_v18 }
  0x24   : > { %1603 = vmatprep.subr.bf16.mxu0 %v1712_v3 }
  0x26   : > { %568 = vmatmul.mubr.bf16.vlgmr.msra.gmra.mrb[0].mxu0 %v1436_v22  ;;  %v1671_v22 = vld [vmem:[%s2094_s6 + $0x38] sm:$0xff]  }
  0x27   : > { %1619 = vmatprep.mubr.msk.bf16.mxu0 %vm1713_vm0, %v1712_v3  ;;  %1604 = vmatpush3.bf16.msra.mxu0 %v1664_v42  ;;  %v907_v42 = vld [vmem:[%s2096_s8 + $0xa8] sm:$0xff] }
  0x28   : > { %1605 = vmatprep.subr.bf16.mxu0 %v1712_v3 }
  0x2b   : > { %1606 = vmatpush3.bf16.msra.mxu0 %v1665_v43 }
  0x2c   : > { %1607 = vmatprep.subr.bf16.mxu0 %v1712_v3 }
  0x2f   : > { %1608 = vmatpush3.bf16.msra.mxu0 %v1666_v44 }
  0x30   : > { %1609 = vmatprep.subr.bf16.mxu0 %v1712_v3 }
  0x33   : > { %1610 = vmatpush3.bf16.msra.mxu0 %v1667_v45 }
  0x34   : > { %1611 = vmatprep.subr.bf16.mxu0 %v1712_v3 }
  0x37   : > { %1612 = vmatpush3.bf16.msra.mxu0 %v1668_v46  ;;  %v2011_v46 = vld [vmem:[%s2097_s9] sm:$0xff] }
  0x38   : > { %1613 = vmatprep.subr.bf16.mxu0 %v1712_v3 }
  0x3b   : > { %1614 = vmatpush3.bf16.msra.mxu0 %v1669_v47 }
  0x3c   : > { %1615 = vmatprep.subr.bf16.mxu0 %v1712_v3 }
  0x3f   : > { %1616 = vmatpush3.bf16.msra.mxu0 %v1670_v48  ;;  %v911_v48 = vld [vmem:[%s2096_s8 + $0xc8] sm:$0xff] }
  0x40   : > { %1617 = vmatprep.subr.bf16.mxu0 %v1712_v3 }
  0x43   : > { %1618 = vmatpush3.bf16.msra.mxu0 %v1671_v22  ;;  %v1508_v22 = vcombine.low %v913_v13, %v917_v14 }
  0xf9   : > { %v1542_v24 = vpop.f32.mrb[0].mxu0 }
  0xfa   : > { %v1543_v25 = vpop.f32.mrb[1].mxu0 }
  0xfb   : > { %v1544_v26 = vadd.f32 %v1543_v25, %v1542_v24  ;;  %v1545_v27 = vpop.f32.mrb[2].mxu0  ;;  %v891_v24 = vld [vmem:[%s2096_s8 + $0x28] sm:$0xff] }
  0xfc   : > { %v1546_v28 = vpop.f32.mrb[3].mxu0  ;;  %v1480_v25 = vcombine.low %v887_v23, %v891_v24  ;;  %v1460_v27 = vld [vmem:[%s2093_s5] ss:$0 sm:$0xff] }
  0xfd   : > { %v1862_v30 = vpack.c.bf16 %v1544_v26, %v1544_v26  ;;  %v1481_v26 = vcombine.high %v887_v23, %v891_v24 }
  0xff   : > { %1580 = vmatmul.mubr.msk.bf16.vlgmr.msra.gmra.mrb[0].mxu1 %vm615_vm1, %v1862_v30  ;;  %1161 = vmatprep.subr.bf16.mxu0 %v1481_v26 }
 0x100   : > { %1584 = vmatpush3.bf16.msra.mxu1 %v1656_v29  ;;  %1599 = vmatprep.mubr.msk.bf16.mxu1 %vm1713_vm0, %v1712_v3 }
 0x101   : > { %1585 = vmatprep.subr.bf16.mxu1 %v1712_v3 }
 0x104   : > { %1586 = vmatpush3.bf16.msra.mxu1 %v1657_v31 }
 0x105   : > { %1587 = vmatprep.subr.bf16.mxu1 %v1712_v3 }
 0x108   : > { %1588 = vmatpush3.bf16.msra.mxu1 %v1658_v32  ;;  %v920_v32 = vlaneseq }
 0x109   : > { %1589 = vmatprep.subr.bf16.mxu1 %v1712_v3 }
 0x10c   : > { %1590 = vmatpush3.bf16.msra.mxu1 %v1659_v33 }
 0x10d   : > { %1591 = vmatprep.subr.bf16.mxu1 %v1712_v3 }
 0x110   : > { %1592 = vmatpush3.bf16.msra.mxu1 %v1660_v34  ;;  %v895_v34 = vld [vmem:[%s2096_s8 + $0x48] sm:$0xff] }
 0x111   : > { %1593 = vmatprep.subr.bf16.mxu1 %v1712_v3 }
 0x114   : > { %1594 = vmatpush3.bf16.msra.mxu1 %v1661_v35  ;;  %v899_v35 = vld [vmem:[%s2096_s8 + $0x68] sm:$0xff] }
 0x115   : > { %1595 = vmatprep.subr.bf16.mxu1 %v1712_v3  ;;  %v1489_v39 = vcombine.high %v895_v34, %v899_v35  ;;  %v1488_v43 = vcombine.low %v895_v34, %v899_v35 }
 0x118   : > { %1596 = vmatpush3.bf16.msra.mxu1 %v1662_v36 }
 0x119   : > { %1597 = vmatprep.subr.bf16.mxu1 %v1712_v3  ;;  %v1494_v3 = vcombine.low %v902_v60, %v906_v61  ;;  %v1485_v60 = vcombine.high %v889_v54, %v893_v55 }
 0x11c   : > { %1598 = vmatpush3.bf16.msra.mxu1 %v1663_v37 }
 0x11d   : > { %1120 = vmatprep.subr.bf16.mxu1 %v1479_v40  ;;  %v1998_v40 = vshrl.u32 %v920_v32, 7 }
 0x11f   : > { %v922_v45 = vsub.s32 0, %v1998_v40  ;;  %v926_v47 = vsub.s32 1, %v1998_v40 }
 0x1d2   : > { %v653_v50 = vpop.f32.mrb[0].mxu1 }
 0x1d3   : > { %v654_v51 = vadd.f32 %v1454_v49, %v653_v50  ;;  %v1581_v52 = vpop.f32.mrb[1].mxu1  ;;  %v915_v49 = vld [vmem:[%s2096_s8 + $0xe8] sm:$0xff] }
 0x1d4   : > { %v656_v53 = vpop.f32.mrb[2].mxu1  ;;  %v1505_v52 = vcombine.high %v911_v48, %v915_v49 }
 0x1d5   : > { %v659_v56 = vmax.f32 %v654_v51, 0.0  ;;  %v1582_v57 = vpop.f32.mrb[3].mxu1  ;;  %v923_v51 = vrot.slane %v2011_v46, %v922_v45  ;;  %v927_v53 = vrot.slane %v2011_v46, %v926_v47  ;;  %v930_v47 = vsub.s32 2, %v1998_v40 }
 0x1d6   : > { %v1504_v57 = vcombine.low %v911_v48, %v915_v49  ;;  %v934_v48 = vsub.s32 3, %v1998_v40 }
 0x1d7   : > { %v660_v58 = vpack.c.bf16 %v659_v56, %v659_v56  ;;  %v931_v49 = vrot.slane %v2011_v46, %v930_v47 }
 0x1d9   : > { %1600 = vmatmul.mubr.bf16.vlgmr.msra.gmra.mrb[4].mxu1 %v660_v58 }
 0x1da   : > { %1121 = vmatpush1.bf16.msra.mxu1 %v1478_v41  ;;  %1152 = vmatprep.mubr.bf16.mxu1 %v1714_v63  ;;  %v903_v41 = vld [vmem:[%s2096_s8 + $0x88] sm:$0xff] }
 0x1db   : > { %1122 = vmatprep.subr.bf16.mxu1 %v1487_v59  ;;  %v1497_v44 = vcombine.high %v903_v41, %v907_v42  ;;  %v1496_v50 = vcombine.low %v903_v41, %v907_v42 }
 0x1de   : > { %1123 = vmatpush1.bf16.msra.mxu1 %v1486_v62 }
 0x1df   : > { %1124 = vmatprep.subr.bf16.mxu1 %v1495_v0  ;;  %v897_v0 = vld [vmem:[%s2096_s8 + $0x58] sm:$0xff] }
 0x1e0   : > { %v1493_v6 = vcombine.high %v897_v0, %v901_v1  ;;  %v1492_v9 = vcombine.low %v897_v0, %v901_v1 }
 0x1e2   : > { %1125 = vmatpush1.bf16.msra.mxu1 %v1494_v3 }
 0x1e3   : > { %1126 = vmatprep.subr.bf16.mxu1 %v1503_v4 }
 0x1e6   : > { %1127 = vmatpush1.bf16.msra.mxu1 %v1502_v7  ;;  %v905_v7 = vld [vmem:[%s2096_s8 + $0x98] sm:$0xff] }
 0x1e7   : > { %1202 = vmatprep.subr.bf16.mxu1 %v1483_v8  ;;  %v909_v8 = vld [vmem:[%s2096_s8 + $0xb8] sm:$0xff] }
 0x1e8   : > { %v1501_v10 = vcombine.high %v905_v7, %v909_v8 }
 0x1e9   : > { %1510 = vmatmul.mubr.msk.bf16.vlgmr.msra.gmra.mrb[8].mxu1 %vm615_vm1, %v1862_v30 }
 0x1ea   : > { %1203 = vmatpush1.bf16.msra.mxu1 %v1482_v11  ;;  %1234 = vmatprep.mubr.bf16.mxu1 %v1714_v63  ;;  %v938_v11 = vsub.s32 4, %v1998_v40 }
 0x1eb   : > { %1204 = vmatprep.subr.bf16.mxu1 %v1491_v12  ;;  %v942_v12 = vsub.s32 5, %v1998_v40 }
 0x1ed   : > { %v943_v17 = vrot.slane %v2011_v46, %v942_v12 }
 0x1ee   : > { %1205 = vmatpush1.bf16.msra.mxu1 %v1490_v15  ;;  %v1500_v15 = vcombine.low %v905_v7, %v909_v8 }
 0x1ef   : > { %1206 = vmatprep.subr.bf16.mxu1 %v1499_v16  ;;  %v939_v16 = vrot.slane %v2011_v46, %v938_v11 }
 0x1f2   : > { %1207 = vmatpush1.bf16.msra.mxu1 %v1498_v19 }
 0x1f3   : > { %1208 = vmatprep.subr.bf16.mxu1 %v1507_v20 }
 0x1f6   : > { %1209 = vmatpush1.bf16.msra.mxu1 %v1506_v21 }
 0x1f9   : > { %1512 = vmatmul.mubr.msk.bf16.vlgmr.msra.gmra.mrb[12].mxu1 %vm615_vm1, %v1862_v30 }
 0x2ac   : > { %v766_v28 = vpop.f32.mrb[4].mxu1 }
 0x2ad   : > { %v767_v29 = vadd.f32 %v1460_v27, %v766_v28  ;;  %v1601_v31 = vpop.f32.mrb[5].mxu1 }
 0x2ae   : > { %v769_v33 = vpop.f32.mrb[6].mxu1 }
 0x2af   : > { %v772_v36 = vmax.f32 %v767_v29, 0.0  ;;  %v1602_v37 = vpop.f32.mrb[7].mxu1 }
 0x2b1   : > { %v773_v38 = vpack.c.bf16 %v772_v36, %v772_v36 }
 0x2b3   : > { %1620 = vmatmul.mubr.bf16.vlgmr.msra.gmra.mrb[4].mxu0 %v773_v38 }
 0x2b4   : > { %1162 = vmatpush1.bf16.msra.mxu0 %v1480_v25  ;;  %1193 = vmatprep.mubr.bf16.mxu0 %v1714_v63 }
 0x2b5   : > { %1163 = vmatprep.subr.bf16.mxu0 %v1489_v39  ;;  %v1469_v39 = vld [vmem:[%s2095_s7] ss:$0 sm:$0xff] }
 0x2b8   : > { %1164 = vmatpush1.bf16.msra.mxu0 %v1488_v43 }
 0x2b9   : > { %1165 = vmatprep.subr.bf16.mxu0 %v1497_v44 }
 0x2bc   : > { %v1154_v56 = vpop.f32.mrb[8].mxu1  ;;  %1166 = vmatpush1.bf16.msra.mxu0 %v1496_v50  ;;  %v935_v50 = vrot.slane %v2011_v46, %v934_v48 }
 0x2bd   : > { %v1155_v58 = vadd.f32 %v1154_v56, %v923_v51  ;;  %v1156_v59 = vpop.f32.mrb[9].mxu1  ;;  %1167 = vmatprep.subr.bf16.mxu0 %v1505_v52 }
 0x2be   : > { %v1157_v61 = vadd.f32 %v1156_v59, %v927_v53  ;;  %v1158_v62 = vpop.f32.mrb[10].mxu1  ;;  %v946_v59 = vsub.s32 6, %v1998_v40 }
 0x2bf   : > { %v1514_v2 = vmul.f32 -1.442695, %v1155_v58  ;;  %v1159_v3 = vpop.f32.mrb[11].mxu1 }
 0x2c0   : > { %v1515_v4 = vmul.f32 -1.442695, %v1157_v61  ;;  %1168 = vmatpush1.bf16.msra.mxu0 %v1504_v57  ;;  %v947_v61 = vrot.slane %v2011_v46, %v946_v59 }
 0x2c1   : > { %1672 = vpow2.f32 %v1514_v2  ;;  %1243 = vmatprep.subr.bf16.mxu0 %v1485_v60  ;;  %v950_v60 = vsub.s32 7, %v1998_v40 }
 0x2c2   : > { %1674 = vpow2.f32 %v1515_v4 }
 0x2c3   : > { %1511 = vmatmul.mubr.msk.bf16.vlgmr.msra.gmra.mrb[8].mxu0 %vm615_vm1, %v1862_v30  ;;  %v951_v62 = vrot.slane %v2011_v46, %v950_v60 }
 0x2c4   : > { %1244 = vmatpush1.bf16.msra.mxu0 %v1484_v5  ;;  %1275 = vmatprep.mubr.bf16.mxu0 %v1714_v63  ;;  %v1509_v63 = vcombine.high %v913_v13, %v917_v14 }
 0x2c5   : > { %1245 = vmatprep.subr.bf16.mxu0 %v1493_v6 }
 0x2c8   : > { %1246 = vmatpush1.bf16.msra.mxu0 %v1492_v9 }
 0x2c9   : > { %1247 = vmatprep.subr.bf16.mxu0 %v1501_v10 }
 0x2cb   : > { %v1673_v18 = vpop.eup %1672 }
 0x2cc   : > { %v1675_v19 = vpop.eup %1674  ;;  %v1308_v20 = vadd.f32 1.0, %v1673_v18  ;;  %v1236_v21 = vpop.f32.mrb[12].mxu1  ;;  %1248 = vmatpush1.bf16.msra.mxu0 %v1500_v15 }
 0x2cd   : > { %v1309_v23 = vadd.f32 1.0, %v1675_v19  ;;  %v1237_v24 = vadd.f32 %v1236_v21, %v939_v16  ;;  %v1238_v25 = vpop.f32.mrb[13].mxu1  ;;  %1249 = vmatprep.subr.bf16.mxu0 %v1509_v63 }
 0x2ce   : > { %1676 = vrcp.f32 %v1308_v20  ;;  %v1239_v26 = vadd.f32 %v1238_v25, %v943_v17  ;;  %v1240_v27 = vpop.f32.mrb[14].mxu1 }
 0x2cf   : > { %1678 = vrcp.f32 %v1309_v23  ;;  %v1518_v28 = vmul.f32 -1.442695, %v1237_v24  ;;  %v1241_v29 = vpop.f32.mrb[15].mxu1 }
 0x2d0   : > { %v1519_v31 = vmul.f32 -1.442695, %v1239_v26  ;;  %1250 = vmatpush1.bf16.msra.mxu0 %v1508_v22 }
 0x2d1   : > { %1680 = vpow2.f32 %v1518_v28 }
 0x2d2   : > { %1682 = vpow2.f32 %v1519_v31 }
 0x2d3   : > { %1513 = vmatmul.mubr.msk.bf16.vlgmr.msra.gmra.mrb[12].mxu0 %vm615_vm1, %v1862_v30 }
 0x2d8   : > { %v1677_v32 = vpop.eup %1676 }
 0x2d9   : > { %v1679_v33 = vpop.eup %1678  ;;  %1332 = vst [vmem:[%s2059_s23] sm:$0xff] %v1677_v32 }
 0x2da   : > { %1333 = vst [vmem:[%s2059_s23 + $0x8] sm:$0xff] %v1679_v33 }
 0x2db   : > { %v1681_v34 = vpop.eup %1680 }
 0x2dc   : > { %v1683_v35 = vpop.eup %1682  ;;  %v1312_v36 = vadd.f32 1.0, %v1681_v34 }
 0x2dd   : > { %v1313_v37 = vadd.f32 1.0, %v1683_v35 }
 0x2de   : > { %1684 = vrcp.f32 %v1312_v36 }
 0x2df   : > { %1686 = vrcp.f32 %v1313_v37 }
 0x2e8   : > { %v1685_v30 = vpop.eup %1684 }
 0x2e9   : > { %v1687_v38 = vpop.eup %1686  ;;  %1336 = vst [vmem:[%s2059_s23 + $0x20] sm:$0xff] %v1685_v30 }
 0x2ea   : > { %1337 = vst [vmem:[%s2059_s23 + $0x28] sm:$0xff] %v1687_v38 }
 0x386   : > { %v879_v41 = vpop.f32.mrb[4].mxu0 }
 0x387   : > { %v880_v42 = vadd.f32 %v1469_v39, %v879_v41  ;;  %v1621_v43 = vpop.f32.mrb[5].mxu0 }
 0x388   : > { %v882_v44 = vpop.f32.mrb[6].mxu0 }
 0x389   : > { %885 = vst [vmem:[%s392_s28] sm:$0xff] %v880_v42  ;;  %v1622_v45 = vpop.f32.mrb[7].mxu0 }
 0x396   : > { %v1195_v51 = vpop.f32.mrb[8].mxu0 }
 0x397   : > { %v1196_v52 = vadd.f32 %v1195_v51, %v931_v49  ;;  %v1197_v53 = vpop.f32.mrb[9].mxu0 }
 0x398   : > { %v1198_v54 = vadd.f32 %v1197_v53, %v935_v50  ;;  %v1199_v55 = vpop.f32.mrb[10].mxu0 }
 0x399   : > { %v1516_v56 = vmul.f32 -1.442695, %v1196_v52  ;;  %v1200_v57 = vpop.f32.mrb[11].mxu0 }
 0x39a   : > { %v1517_v58 = vmul.f32 -1.442695, %v1198_v54 }
 0x39b   : > { %1688 = vpow2.f32 %v1516_v56 }
 0x39c   : > { %1690 = vpow2.f32 %v1517_v58 }
 0x3a5   : > { %v1689_v0 = vpop.eup %1688 }
 0x3a6   : > { %v1691_v1 = vpop.eup %1690  ;;  %v1310_v2 = vadd.f32 1.0, %v1689_v0  ;;  %v1277_v3 = vpop.f32.mrb[12].mxu0 }
 0x3a7   : > { %v1311_v4 = vadd.f32 1.0, %v1691_v1  ;;  %v1278_v5 = vadd.f32 %v1277_v3, %v947_v61  ;;  %v1279_v6 = vpop.f32.mrb[13].mxu0 }
 0x3a8   : > { %1692 = vrcp.f32 %v1310_v2  ;;  %v1280_v7 = vadd.f32 %v1279_v6, %v951_v62  ;;  %v1281_v8 = vpop.f32.mrb[14].mxu0 }
 0x3a9   : > { %1694 = vrcp.f32 %v1311_v4  ;;  %v1520_v9 = vmul.f32 -1.442695, %v1278_v5  ;;  %v1282_v10 = vpop.f32.mrb[15].mxu0 }
 0x3aa   : > { %v1521_v40 = vmul.f32 -1.442695, %v1280_v7 }
 0x3ab   : > { %1696 = vpow2.f32 %v1520_v9 }
 0x3ac   : > { %1698 = vpow2.f32 %v1521_v40 }
 0x3b2   : > { %v1693_v46 = vpop.eup %1692 }
 0x3b3   : > { %v1695_v11 = vpop.eup %1694  ;;  %1334 = vst [vmem:[%s2059_s23 + $0x10] sm:$0xff] %v1693_v46 }
 0x3b4   : > { %1335 = vst [vmem:[%s2059_s23 + $0x18] sm:$0xff] %v1695_v11 }
 0x3b5   : > { %v1697_v12 = vpop.eup %1696 }
 0x3b6   : > { %v1699_v13 = vpop.eup %1698  ;;  %v1314_v14 = vadd.f32 1.0, %v1697_v12 }
 0x3b7   : > { %v1315_v15 = vadd.f32 1.0, %v1699_v13 }
 0x3b8   : > { %1700 = vrcp.f32 %v1314_v14 }
 0x3b9   : > { %1702 = vrcp.f32 %v1315_v15 }
 0x3c2   : > { %v1701_v16 = vpop.eup %1700 }
 0x3c3   : > { %v1703_v63 = vpop.eup %1702  ;;  %1338 = vst [vmem:[%s2059_s23 + $0x30] sm:$0xff] %v1701_v16 }
 0x3c4   : > { %1339 = vst [vmem:[%s2059_s23 + $0x38] sm:$0xff] %v1703_v63 }
 0x3c5 PF: > { %s22_s17 = sadd.s32 1, %s1710_s17  }
 0x3c6   : > { %p19_p4 = scmp.ge.s32.totalorder %s22_s17, 4  }
 0x3c8   :  { %21 = sbr.rel (!%p19_p4) target bundleno = 1 (0x1), region = 102 }

</bundles_post_ra>
